<compile_context>
chip_gen: v6e
topology: v6e:2x2x1
jax: 0.10.0
libtpu: 0.0.40
codegen_flags: <defaults>
</compile_context>

<pallas_src>
import functools
import math

import numpy as np
import jax
import jax.numpy as jnp
from jax.experimental import pallas as pl
from jax.experimental.pallas import tpu as pltpu

_LANE = 128
_SUBLANE = 8

# Conservative per-core budgets that fit v5e/v6e (128 MiB) and v7x (64 MiB).
_WEIGHT_VMEM_BUDGET = 16 << 20   # resident fused-DFT weights (single copy)
_ROW_VMEM_BUDGET = 20 << 20      # row-tile blocks + in-kernel temporaries

# Cache: does this jax build accept pl.Buffered(buffer_count=1)?  (perf knob)
_SINGLE_BUFFER_W_OK = None


def _round_up(x, m):
    return (x + m - 1) // m * m


def _cdiv(a, b):
    return -(-a // b)


# -----------------------------------------------------------------------------
# Deterministic parameter / buffer construction (mirrors QTile.__init__)
# -----------------------------------------------------------------------------
def qtile_setup(q, frequency, duration, sample_rate, mismatch,
                use_bf16=False, weight_vmem_budget=_WEIGHT_VMEM_BUDGET):
    deltam = 2.0 * (mismatch / 3.0) ** 0.5
    qprime = q / 11.0 ** 0.5
    windowsize = 2 * int(frequency / qprime * duration) + 1

    tcum_mismatch = duration * 2.0 * math.pi * frequency / q
    ntiles = int(2 ** math.ceil(math.log2(tcum_mismatch / deltam)))
    assert ntiles % 2 == 0  # power of two; median path assumes even N

    pad = ntiles - windowsize
    pad_left = int((pad - 1) / 2.0)
    pad_right = int((pad + 1) / 2.0)

    half = int((windowsize - 1) / 2)
    idx = np.arange(-half, half + 1)

    # bi-square window (float64 construction)
    wfreq = idx / duration
    xfreq = wfreq * qprime / frequency
    norm_factor = (ntiles / (duration * sample_rate)
                   * (315.0 * qprime / (128.0 * frequency)) ** 0.5)
    window = (1.0 - xfreq ** 2) ** 2 * norm_factor

    data_indices = np.round(idx + 1 + frequency * duration).astype(np.int64)
    contiguous = bool(np.all(np.diff(data_indices) == 1))

    w_dtype = jnp.bfloat16 if use_bf16 else jnp.float32
    w_item = 2 if use_bf16 else 4

    # lane-aligned output halves [re | im]; each padded to a multiple of 128
    n_pad = _round_up(ntiles, _LANE)

    # Contraction (window) tiling: resident if it fits, else 128-row K chunks.
    wk0 = _round_up(windowsize, _SUBLANE)
    full_resident = 2 * wk0 * (2 * n_pad) * w_item          # wr + wi, 1 buffer
    if full_resident <= weight_vmem_budget:
        k_steps, wk = 1, wk0
    else:
        rows_budget = weight_vmem_budget // (2 * 2 * (2 * n_pad) * w_item)
        wk = max(_LANE, rows_budget // _LANE * _LANE)       # multiple of 128
        k_steps = _cdiv(windowsize, wk)
        if k_steps <= 1:
            k_steps, wk = 1, wk0
    w_pad = wk * k_steps

    # Fuse window * pad * ifftshift * ifft into a real DFT pair:
    #   Re(td)[t] = sum_f xr[f]*C[f,t] - xi[f]*S[f,t]
    #   Im(td)[t] = sum_f xr[f]*S[f,t] + xi[f]*C[f,t]
    t = np.arange(ntiles)
    m_pos = pad_left + np.arange(windowsize) - ntiles // 2
    theta = 2.0 * np.pi * np.outer(m_pos, t) / ntiles
    c_mat = window[:, None] * np.cos(theta) / ntiles        # (W, N)
    s_mat = window[:, None] * np.sin(theta) / ntiles        # (W, N)

    wr = np.zeros((w_pad, 2 * n_pad), np.float32)
    wi = np.zeros((w_pad, 2 * n_pad), np.float32)
    wr[:windowsize, :ntiles] = c_mat
    wr[:windowsize, n_pad:n_pad + ntiles] = s_mat
    wi[:windowsize, :ntiles] = -s_mat
    wi[:windowsize, n_pad:n_pad + ntiles] = c_mat

    return dict(
        windowsize=windowsize, ntiles=ntiles, n_pad=n_pad,
        pad_left=pad_left, pad_right=pad_right,
        window=window.astype(np.float32),
        data_indices=data_indices,
        indices_contiguous=contiguous,
        first_index=int(data_indices[0]),
        wk=wk, k_steps=k_steps, w_pad=w_pad,
        in_dtype=w_dtype, w_itemsize=w_item,
        wr=jnp.asarray(wr, dtype=w_dtype),
        wi=jnp.asarray(wi, dtype=w_dtype),
    )


# -----------------------------------------------------------------------------
# Pallas kernel
# -----------------------------------------------------------------------------
def _qtile_kernel(xr_ref, xi_ref, wr_ref, wi_ref, o_ref, *scratch,
                  norm, n_valid, n_pad, k_steps):
    acc_ref = scratch[0] if scratch else None

    # MXU: columns are [re | im], each n_pad wide -> both halves lane-aligned.
    part = (jnp.dot(xr_ref[...], wr_ref[...], preferred_element_type=jnp.float32)
            + jnp.dot(xi_ref[...], wi_ref[...], preferred_element_type=jnp.float32))

    if k_steps > 1:
        @pl.when(pl.program_id(1) == 0)
        def _init():
            acc_ref[...] = jnp.zeros_like(acc_ref)
        acc_ref[...] += part

    def _finalize():
        y = part if k_steps == 1 else acc_ref[...]
        re = y[:, :n_pad]
        im = y[:, n_pad:]
        energy = re * re + im * im          # (TM, n_pad); cols >= n_valid are exactly 0

        if norm == "median":
            rows = energy.shape[0]
            pad_cols = n_pad - n_valid
            # Exact median (torch.quantile 0.5, 'linear', even N): mean of the
            # two middle order statistics, found by a 31-step binary search in
            # the IEEE-754 bit domain (non-negative f32 order == int32 order).
            # The appended zero columns only shift the target ranks.
            bits = pltpu.bitcast(energy, jnp.int32)
            rank_hi = jnp.int32(n_valid // 2 + pad_cols + 1)   # 1-indexed rank of x_(n/2)

            def body(_, carry):
                lo_b, hi_b = carry                              # (rows, 1) int32
                mid = lo_b + jnp.right_shift(hi_b - lo_b, 1)
                cnt = jnp.sum((bits <= mid).astype(jnp.int32),
                              axis=-1, keepdims=True)
                ge = cnt >= rank_hi
                return jnp.where(ge, lo_b, mid + 1), jnp.where(ge, mid, hi_b)

            init = (jnp.zeros((rows, 1), jnp.int32),
                    jnp.full((rows, 1), 2147483647, dtype=jnp.int32))
            lo_b, _ = jax.lax.fori_loop(0, 31, body, init, unroll=True)
            hi = pltpu.bitcast(lo_b, jnp.float32)               # exact x_(n/2)

            # Lower middle order statistic x_(n/2-1): one extra pass.
            lt = energy < hi
            c = jnp.sum(lt.astype(jnp.int32), axis=-1, keepdims=True)
            max_below = jnp.max(jnp.where(lt, energy, jnp.float32(0.0)),
                                axis=-1, keepdims=True)
            lo = jnp.where(c >= jnp.int32(n_valid // 2 + pad_cols), max_below, hi)

            med = jnp.maximum(0.5 * (lo + hi), jnp.float32(1e-37))  # guard zero rows
            inv = pl.reciprocal(med, approx=True)                   # EUP slot
            inv = inv * (2.0 - med * inv)                           # Newton step
            energy = energy * inv
        elif norm == "mean":
            mean = jnp.sum(energy, axis=-1, keepdims=True) * jnp.float32(1.0 / n_valid)
            mean = jnp.maximum(mean, jnp.float32(1e-37))
            inv = pl.reciprocal(mean, approx=True)
            inv = inv * (2.0 - mean * inv)
            energy = energy * inv
        # norm is None -> raw energy

        o_ref[...] = energy.astype(o_ref.dtype)

    if k_steps == 1:
        _finalize()
    else:
        pl.when(pl.program_id(1) == k_steps - 1)(_finalize)


def _build_call(norm, tm, grid_m, m_pad, params, vmem_limit, single_buffer_w):
    wk, n_pad, k_steps = params["wk"], params["n_pad"], params["k_steps"]
    n = params["ntiles"]

    w_kwargs = {}
    if single_buffer_w:
        w_kwargs["pipeline_mode"] = pl.Buffered(buffer_count=1)

    scratch = []
    if k_steps > 1:
        scratch.append(pltpu.VMEM((tm, 2 * n_pad), jnp.float32))

    return pl.pallas_call(
        functools.partial(_qtile_kernel, norm=norm, n_valid=n,
                          n_pad=n_pad, k_steps=k_steps),
        out_shape=jax.ShapeDtypeStruct((m_pad, n_pad), jnp.float32),
        grid_spec=pltpu.PrefetchScalarGridSpec(
            num_scalar_prefetch=0,
            grid=(grid_m, k_steps),
            in_specs=[
                pl.BlockSpec((tm, wk), lambda i, k: (i, k)),
                pl.BlockSpec((tm, wk), lambda i, k: (i, k)),
                pl.BlockSpec((wk, 2 * n_pad), lambda i, k: (k, 0), **w_kwargs),
                pl.BlockSpec((wk, 2 * n_pad), lambda i, k: (k, 0), **w_kwargs),
            ],
            out_specs=pl.BlockSpec((tm, n_pad), lambda i, k: (i, 0)),
            scratch_shapes=scratch,
        ),
        compiler_params=pltpu.CompilerParams(
            dimension_semantics=("parallel", "arbitrary"),
            vmem_limit_bytes=vmem_limit),
    )


# -----------------------------------------------------------------------------
# Wrapper (dim promotion, static frequency slice, tiling, padding)
# -----------------------------------------------------------------------------
def qtile_forward(fseries, params, norm="median"):
    if fseries.ndim > 3:
        raise ValueError("Input data has more than 3 dimensions")
    while fseries.ndim < 3:
        fseries = fseries[None]

    if norm is not None:
        norm = norm.lower() if isinstance(norm, str) else norm
        if norm not in ("median", "mean"):
            raise ValueError("Invalid normalisation %r" % norm)

    b, c, f_len = fseries.shape
    w = params["windowsize"]
    n = params["ntiles"]
    n_pad = params["n_pad"]
    wk = params["wk"]
    k_steps = params["k_steps"]
    w_pad = params["w_pad"]
    in_dtype = params["in_dtype"]
    m = b * c

    # Static selection of the relevant frequencies; cheap contiguous slice
    # whenever possible (it almost always is), gather otherwise.
    start = params["first_index"]
    if params["indices_contiguous"] and 0 <= start and start + w <= f_len:
        xw = fseries[..., start:start + w]
    else:
        xw = fseries[..., jnp.asarray(params["data_indices"])]
    xr = jnp.real(xw).astype(in_dtype).reshape(m, w)
    xi = jnp.imag(xw).astype(in_dtype).reshape(m, w)

    # Row tiling: solve TM from the VMEM budget, and always keep >= 2 row
    # tiles so the "parallel" axis splits across v7x's two TensorCores.
    x_item = 2 if in_dtype == jnp.bfloat16 else 4
    per_row = (2 * 2 * wk * x_item                       # xr, xi double-buffered
               + 2 * n_pad * 4                           # out double-buffered
               + (2 * n_pad * 4 if k_steps > 1 else 0)   # accumulator scratch
               + 8 * n_pad * 4)                          # y / energy / bits temps
    tm = max(_SUBLANE, min(256, (_ROW_VMEM_BUDGET // per_row) // _SUBLANE * _SUBLANE))
    tm = min(tm, max(_SUBLANE, _round_up(_cdiv(m, 2), _SUBLANE)))
    grid_m = max(2, _cdiv(m, tm))
    m_pad = grid_m * tm

    # Zero-pad rows (sliced off later) and the contraction dim (numerically free).
    xr_p = jnp.pad(xr, ((0, m_pad - m), (0, w_pad - w)))
    xi_p = jnp.pad(xi, ((0, m_pad - m), (0, w_pad - w)))

    # Explicit scoped-VMEM limit, sized from the real footprint (weights
    # counted with 2 buffers in case the single-buffer request falls back).
    w_bytes_2buf = 2 * 2 * wk * (2 * n_pad) * params["w_itemsize"]
    vmem_limit = int(min(max(w_bytes_2buf + per_row * tm + (4 << 20), 32 << 20),
                         100 << 20))

    global _SINGLE_BUFFER_W_OK
    args = (xr_p, xi_p, params["wr"], params["wi"])
    want_single = (k_steps == 1) and (_SINGLE_BUFFER_W_OK is not False)
    if want_single:
        try:
            out = _build_call(norm, tm, grid_m, m_pad, params, vmem_limit, True)(*args)
            out = jax.block_until_ready(out)
            _SINGLE_BUFFER_W_OK = True
        except Exception:  # Buffered(1) unsupported -> default double buffering
            _SINGLE_BUFFER_W_OK = False
            out = _build_call(norm, tm, grid_m, m_pad, params, vmem_limit, False)(*args)
    else:
        out = _build_call(norm, tm, grid_m, m_pad, params, vmem_limit, False)(*args)

    return out[:m, :n].reshape(b, c, n)


# -----------------------------------------------------------------------------
# Example / self-check
# -----------------------------------------------------------------------------
if __name__ == "__main__":
    keys = jax.random.split(jax.random.PRNGKey(0), 4)

    def reference(fs, p, norm):
        xw = fs[..., jnp.asarray(p["data_indices"])] * jnp.asarray(p["window"])
        padded = jnp.pad(xw, ((0, 0), (0, 0), (p["pad_left"], p["pad_right"])))
        td = jnp.fft.ifft(jnp.fft.ifftshift(padded, axes=-1), axis=-1)
        e = jnp.real(td) ** 2 + jnp.imag(td) ** 2
        if norm == "median":
            e = e / jnp.quantile(e, 0.5, axis=-1, keepdims=True)
        elif norm == "mean":
            e = e / jnp.mean(e, axis=-1, keepdims=True)
        return e.astype(jnp.float32)

    # ---- case 1: small config (windowsize=17, ntiles=64), resident weights
    params = qtile_setup(12.0, 32.0, 1.0, 256.0, 0.2)
    assert params["k_steps"] == 1
    B, C = 2, 3
    F = int(1.0 * 256.0) // 2 + 1                       # 129
    fseries = (jax.random.normal(keys[0], (B, C, F), dtype=jnp.float32)
               + 1j * jax.random.normal(keys[1], (B, C, F), dtype=jnp.float32)
               ).astype(jnp.complex64)

    out = jax.block_until_ready(qtile_forward(fseries, params, norm="median"))
    assert out.shape == (B, C, params["ntiles"]) and out.dtype == jnp.float32
    np.testing.assert_allclose(np.asarray(out),
                               np.asarray(reference(fseries, params, "median")),
                               rtol=5e-3, atol=5e-3)

    out_mean = jax.block_until_ready(qtile_forward(fseries, params, norm="mean"))
    np.testing.assert_allclose(np.asarray(out_mean),
                               np.asarray(reference(fseries, params, "mean")),
                               rtol=5e-3, atol=5e-3)

    # ---- case 2: larger window + tiny weight budget -> exercises the K-tiled
    #              accumulator path (k_steps > 1)
    params2 = qtile_setup(6.0, 128.0, 2.0, 512.0, 0.2, weight_vmem_budget=1 << 20)
    assert params2["k_steps"] > 1
    F2 = int(2.0 * 512.0) // 2 + 1                      # 513
    fseries2 = (jax.random.normal(keys[2], (1, 2, F2), dtype=jnp.float32)
                + 1j * jax.random.normal(keys[3], (1, 2, F2), dtype=jnp.float32)
                ).astype(jnp.complex64)
    out2 = jax.block_until_ready(qtile_forward(fseries2, params2, norm="median"))
    np.testing.assert_allclose(np.asarray(out2),
                               np.asarray(reference(fseries2, params2, "median")),
                               rtol=2e-2, atol=2e-2)

    print("KERNEL_OK")
</pallas_src>

<mosaic_0001>
module attributes {stable_mosaic.version = 11 : i64} {
  func.func @_qtile_kernel(%arg0: i32, %arg1: i32, %arg2: memref<8x24xf32, #tpu.memory_space<vmem>>, %arg3: memref<8x24xf32, #tpu.memory_space<vmem>>, %arg4: memref<24x256xf32, #tpu.memory_space<vmem>>, %arg5: memref<24x256xf32, #tpu.memory_space<vmem>>, %arg6: memref<8x128xf32, #tpu.memory_space<vmem>>) attributes {dimension_semantics = [#tpu.dimension_semantics<parallel>, #tpu.dimension_semantics<arbitrary>], iteration_bounds = array<i64: 2, 1>, scalar_prefetch = 0 : i64, scratch_operands = 0 : i64, tpu.core_type = #tpu.core_type<tc>, window_params = [{transform_indices = @transform_0, window_bounds = array<i64: 8, 24>}, {transform_indices = @transform_1, window_bounds = array<i64: 8, 24>}, {pipeline_mode = #tpu.pipeline_mode<synchronous>, transform_indices = @transform_2, window_bounds = array<i64: 24, 256>}, {pipeline_mode = #tpu.pipeline_mode<synchronous>, transform_indices = @transform_3, window_bounds = array<i64: 24, 256>}, {transform_indices = @transform_4, window_bounds = array<i64: 8, 128>}]} {
    %c0 = arith.constant 0 : index
    %c0_0 = arith.constant 0 : index
    %0 = vector.load %arg2[%c0, %c0_0] : memref<8x24xf32, #tpu.memory_space<vmem>>, vector<8x24xf32>
    %c0_1 = arith.constant 0 : index
    %c0_2 = arith.constant 0 : index
    %1 = vector.load %arg4[%c0_1, %c0_2] : memref<24x256xf32, #tpu.memory_space<vmem>>, vector<24x256xf32>
    %cst = arith.constant dense<0.000000e+00> : vector<8x256xf32>
    %2 = tpu.matmul %0, %1, %cst {dimension_numbers = #tpu.dot_dimension_numbers<[1], [0], [0], [1], [0, 0, 1, 1], [], []>} : vector<8x24xf32>, vector<24x256xf32>, vector<8x256xf32> -> vector<8x256xf32>
    %c0_3 = arith.constant 0 : index
    %c0_4 = arith.constant 0 : index
    %3 = vector.load %arg3[%c0_3, %c0_4] : memref<8x24xf32, #tpu.memory_space<vmem>>, vector<8x24xf32>
    %c0_5 = arith.constant 0 : index
    %c0_6 = arith.constant 0 : index
    %4 = vector.load %arg5[%c0_5, %c0_6] : memref<24x256xf32, #tpu.memory_space<vmem>>, vector<24x256xf32>
    %cst_7 = arith.constant dense<0.000000e+00> : vector<8x256xf32>
    %5 = tpu.matmul %3, %4, %cst_7 {dimension_numbers = #tpu.dot_dimension_numbers<[1], [0], [0], [1], [0, 0, 1, 1], [], []>} : vector<8x24xf32>, vector<24x256xf32>, vector<8x256xf32> -> vector<8x256xf32>
    %6 = arith.addf %2, %5 : vector<8x256xf32>
    %7 = vector.extract_strided_slice %6 {offsets = [0, 0], sizes = [8, 128], strides = [1, 1]} : vector<8x256xf32> to vector<8x128xf32>
    %8 = vector.extract_strided_slice %6 {offsets = [0, 128], sizes = [8, 128], strides = [1, 1]} : vector<8x256xf32> to vector<8x128xf32>
    %9 = arith.mulf %7, %7 : vector<8x128xf32>
    %10 = arith.mulf %8, %8 : vector<8x128xf32>
    %11 = arith.addf %9, %10 : vector<8x128xf32>
    %12 = tpu.bitcast %11 : vector<8x128xf32> -> vector<8x128xi32>
    %c0_i32 = arith.constant 0 : i32
    %13 = vector.broadcast %c0_i32 : i32 to vector<8x1xi32>
    %c2147483647_i32 = arith.constant 2147483647 : i32
    %14 = vector.broadcast %c2147483647_i32 : i32 to vector<8x1xi32>
    %c97_i32 = arith.constant 97 : i32
    %c0_i32_8 = arith.constant 0 : i32
    %15 = arith.subi %14, %13 : vector<8x1xi32>
    %c1_i32 = arith.constant 1 : i32
    %16 = vector.broadcast %c1_i32 : i32 to vector<8x1xi32>
    %17 = arith.shrsi %15, %16 : vector<8x1xi32>
    %18 = arith.addi %13, %17 : vector<8x1xi32>
    %19 = vector.broadcast %18 : vector<8x1xi32> to vector<8x128xi32>
    %20 = arith.cmpi sle, %12, %19 : vector<8x128xi32>
    %21 = arith.extui %20 : vector<8x128xi1> to vector<8x128xi32>
    %cst_9 = arith.constant dense<0> : vector<8xi32>
    %22 = vector.multi_reduction <add>, %21, %cst_9 [1] : vector<8x128xi32> to vector<8xi32>
    %23 = vector.shape_cast %22 : vector<8xi32> to vector<8x1xi32>
    %24 = vector.broadcast %c97_i32 : i32 to vector<8x1xi32>
    %25 = arith.cmpi sge, %23, %24 : vector<8x1xi32>
    %c1_i32_10 = arith.constant 1 : i32
    %26 = vector.broadcast %c1_i32_10 : i32 to vector<8x1xi32>
    %27 = arith.addi %18, %26 : vector<8x1xi32>
    %28 = arith.select %25, %13, %27 : vector<8x1xi1>, vector<8x1xi32>
    %29 = arith.select %25, %18, %14 : vector<8x1xi1>, vector<8x1xi32>
    %c1_i32_11 = arith.constant 1 : i32
    %30 = arith.subi %29, %28 : vector<8x1xi32>
    %c1_i32_12 = arith.constant 1 : i32
    %31 = vector.broadcast %c1_i32_12 : i32 to vector<8x1xi32>
    %32 = arith.shrsi %30, %31 : vector<8x1xi32>
    %33 = arith.addi %28, %32 : vector<8x1xi32>
    %34 = vector.broadcast %33 : vector<8x1xi32> to vector<8x128xi32>
    %35 = arith.cmpi sle, %12, %34 : vector<8x128xi32>
    %36 = arith.extui %35 : vector<8x128xi1> to vector<8x128xi32>
    %cst_13 = arith.constant dense<0> : vector<8xi32>
    %37 = vector.multi_reduction <add>, %36, %cst_13 [1] : vector<8x128xi32> to vector<8xi32>
    %38 = vector.shape_cast %37 : vector<8xi32> to vector<8x1xi32>
    %39 = vector.broadcast %c97_i32 : i32 to vector<8x1xi32>
    %40 = arith.cmpi sge, %38, %39 : vector<8x1xi32>
    %c1_i32_14 = arith.constant 1 : i32
    %41 = vector.broadcast %c1_i32_14 : i32 to vector<8x1xi32>
    %42 = arith.addi %33, %41 : vector<8x1xi32>
    %43 = arith.select %40, %28, %42 : vector<8x1xi1>, vector<8x1xi32>
    %44 = arith.select %40, %33, %29 : vector<8x1xi1>, vector<8x1xi32>
    %c2_i32 = arith.constant 2 : i32
    %45 = arith.subi %44, %43 : vector<8x1xi32>
    %c1_i32_15 = arith.constant 1 : i32
    %46 = vector.broadcast %c1_i32_15 : i32 to vector<8x1xi32>
    %47 = arith.shrsi %45, %46 : vector<8x1xi32>
    %48 = arith.addi %43, %47 : vector<8x1xi32>
    %49 = vector.broadcast %48 : vector<8x1xi32> to vector<8x128xi32>
    %50 = arith.cmpi sle, %12, %49 : vector<8x128xi32>
    %51 = arith.extui %50 : vector<8x128xi1> to vector<8x128xi32>
    %cst_16 = arith.constant dense<0> : vector<8xi32>
    %52 = vector.multi_reduction <add>, %51, %cst_16 [1] : vector<8x128xi32> to vector<8xi32>
    %53 = vector.shape_cast %52 : vector<8xi32> to vector<8x1xi32>
    %54 = vector.broadcast %c97_i32 : i32 to vector<8x1xi32>
    %55 = arith.cmpi sge, %53, %54 : vector<8x1xi32>
    %c1_i32_17 = arith.constant 1 : i32
    %56 = vector.broadcast %c1_i32_17 : i32 to vector<8x1xi32>
    %57 = arith.addi %48, %56 : vector<8x1xi32>
    %58 = arith.select %55, %43, %57 : vector<8x1xi1>, vector<8x1xi32>
    %59 = arith.select %55, %48, %44 : vector<8x1xi1>, vector<8x1xi32>
    %c3_i32 = arith.constant 3 : i32
    %60 = arith.subi %59, %58 : vector<8x1xi32>
    %c1_i32_18 = arith.constant 1 : i32
    %61 = vector.broadcast %c1_i32_18 : i32 to vector<8x1xi32>
    %62 = arith.shrsi %60, %61 : vector<8x1xi32>
    %63 = arith.addi %58, %62 : vector<8x1xi32>
    %64 = vector.broadcast %63 : vector<8x1xi32> to vector<8x128xi32>
    %65 = arith.cmpi sle, %12, %64 : vector<8x128xi32>
    %66 = arith.extui %65 : vector<8x128xi1> to vector<8x128xi32>
    %cst_19 = arith.constant dense<0> : vector<8xi32>
    %67 = vector.multi_reduction <add>, %66, %cst_19 [1] : vector<8x128xi32> to vector<8xi32>
    %68 = vector.shape_cast %67 : vector<8xi32> to vector<8x1xi32>
    %69 = vector.broadcast %c97_i32 : i32 to vector<8x1xi32>
    %70 = arith.cmpi sge, %68, %69 : vector<8x1xi32>
    %c1_i32_20 = arith.constant 1 : i32
    %71 = vector.broadcast %c1_i32_20 : i32 to vector<8x1xi32>
    %72 = arith.addi %63, %71 : vector<8x1xi32>
    %73 = arith.select %70, %58, %72 : vector<8x1xi1>, vector<8x1xi32>
    %74 = arith.select %70, %63, %59 : vector<8x1xi1>, vector<8x1xi32>
    %c4_i32 = arith.constant 4 : i32
    %75 = arith.subi %74, %73 : vector<8x1xi32>
    %c1_i32_21 = arith.constant 1 : i32
    %76 = vector.broadcast %c1_i32_21 : i32 to vector<8x1xi32>
    %77 = arith.shrsi %75, %76 : vector<8x1xi32>
    %78 = arith.addi %73, %77 : vector<8x1xi32>
    %79 = vector.broadcast %78 : vector<8x1xi32> to vector<8x128xi32>
    %80 = arith.cmpi sle, %12, %79 : vector<8x128xi32>
    %81 = arith.extui %80 : vector<8x128xi1> to vector<8x128xi32>
    %cst_22 = arith.constant dense<0> : vector<8xi32>
    %82 = vector.multi_reduction <add>, %81, %cst_22 [1] : vector<8x128xi32> to vector<8xi32>
    %83 = vector.shape_cast %82 : vector<8xi32> to vector<8x1xi32>
    %84 = vector.broadcast %c97_i32 : i32 to vector<8x1xi32>
    %85 = arith.cmpi sge, %83, %84 : vector<8x1xi32>
    %c1_i32_23 = arith.constant 1 : i32
    %86 = vector.broadcast %c1_i32_23 : i32 to vector<8x1xi32>
    %87 = arith.addi %78, %86 : vector<8x1xi32>
    %88 = arith.select %85, %73, %87 : vector<8x1xi1>, vector<8x1xi32>
    %89 = arith.select %85, %78, %74 : vector<8x1xi1>, vector<8x1xi32>
    %c5_i32 = arith.constant 5 : i32
    %90 = arith.subi %89, %88 : vector<8x1xi32>
    %c1_i32_24 = arith.constant 1 : i32
    %91 = vector.broadcast %c1_i32_24 : i32 to vector<8x1xi32>
    %92 = arith.shrsi %90, %91 : vector<8x1xi32>
    %93 = arith.addi %88, %92 : vector<8x1xi32>
    %94 = vector.broadcast %93 : vector<8x1xi32> to vector<8x128xi32>
    %95 = arith.cmpi sle, %12, %94 : vector<8x128xi32>
    %96 = arith.extui %95 : vector<8x128xi1> to vector<8x128xi32>
    %cst_25 = arith.constant dense<0> : vector<8xi32>
    %97 = vector.multi_reduction <add>, %96, %cst_25 [1] : vector<8x128xi32> to vector<8xi32>
    %98 = vector.shape_cast %97 : vector<8xi32> to vector<8x1xi32>
    %99 = vector.broadcast %c97_i32 : i32 to vector<8x1xi32>
    %100 = arith.cmpi sge, %98, %99 : vector<8x1xi32>
    %c1_i32_26 = arith.constant 1 : i32
    %101 = vector.broadcast %c1_i32_26 : i32 to vector<8x1xi32>
    %102 = arith.addi %93, %101 : vector<8x1xi32>
    %103 = arith.select %100, %88, %102 : vector<8x1xi1>, vector<8x1xi32>
    %104 = arith.select %100, %93, %89 : vector<8x1xi1>, vector<8x1xi32>
    %c6_i32 = arith.constant 6 : i32
    %105 = arith.subi %104, %103 : vector<8x1xi32>
    %c1_i32_27 = arith.constant 1 : i32
    %106 = vector.broadcast %c1_i32_27 : i32 to vector<8x1xi32>
    %107 = arith.shrsi %105, %106 : vector<8x1xi32>
    %108 = arith.addi %103, %107 : vector<8x1xi32>
    %109 = vector.broadcast %108 : vector<8x1xi32> to vector<8x128xi32>
    %110 = arith.cmpi sle, %12, %109 : vector<8x128xi32>
    %111 = arith.extui %110 : vector<8x128xi1> to vector<8x128xi32>
    %cst_28 = arith.constant dense<0> : vector<8xi32>
    %112 = vector.multi_reduction <add>, %111, %cst_28 [1] : vector<8x128xi32> to vector<8xi32>
    %113 = vector.shape_cast %112 : vector<8xi32> to vector<8x1xi32>
    %114 = vector.broadcast %c97_i32 : i32 to vector<8x1xi32>
    %115 = arith.cmpi sge, %113, %114 : vector<8x1xi32>
    %c1_i32_29 = arith.constant 1 : i32
    %116 = vector.broadcast %c1_i32_29 : i32 to vector<8x1xi32>
    %117 = arith.addi %108, %116 : vector<8x1xi32>
    %118 = arith.select %115, %103, %117 : vector<8x1xi1>, vector<8x1xi32>
    %119 = arith.select %115, %108, %104 : vector<8x1xi1>, vector<8x1xi32>
    %c7_i32 = arith.constant 7 : i32
    %120 = arith.subi %119, %118 : vector<8x1xi32>
    %c1_i32_30 = arith.constant 1 : i32
    %121 = vector.broadcast %c1_i32_30 : i32 to vector<8x1xi32>
    %122 = arith.shrsi %120, %121 : vector<8x1xi32>
    %123 = arith.addi %118, %122 : vector<8x1xi32>
    %124 = vector.broadcast %123 : vector<8x1xi32> to vector<8x128xi32>
    %125 = arith.cmpi sle, %12, %124 : vector<8x128xi32>
    %126 = arith.extui %125 : vector<8x128xi1> to vector<8x128xi32>
    %cst_31 = arith.constant dense<0> : vector<8xi32>
    %127 = vector.multi_reduction <add>, %126, %cst_31 [1] : vector<8x128xi32> to vector<8xi32>
    %128 = vector.shape_cast %127 : vector<8xi32> to vector<8x1xi32>
    %129 = vector.broadcast %c97_i32 : i32 to vector<8x1xi32>
    %130 = arith.cmpi sge, %128, %129 : vector<8x1xi32>
    %c1_i32_32 = arith.constant 1 : i32
    %131 = vector.broadcast %c1_i32_32 : i32 to vector<8x1xi32>
    %132 = arith.addi %123, %131 : vector<8x1xi32>
    %133 = arith.select %130, %118, %132 : vector<8x1xi1>, vector<8x1xi32>
    %134 = arith.select %130, %123, %119 : vector<8x1xi1>, vector<8x1xi32>
    %c8_i32 = arith.constant 8 : i32
    %135 = arith.subi %134, %133 : vector<8x1xi32>
    %c1_i32_33 = arith.constant 1 : i32
    %136 = vector.broadcast %c1_i32_33 : i32 to vector<8x1xi32>
    %137 = arith.shrsi %135, %136 : vector<8x1xi32>
    %138 = arith.addi %133, %137 : vector<8x1xi32>
    %139 = vector.broadcast %138 : vector<8x1xi32> to vector<8x128xi32>
    %140 = arith.cmpi sle, %12, %139 : vector<8x128xi32>
    %141 = arith.extui %140 : vector<8x128xi1> to vector<8x128xi32>
    %cst_34 = arith.constant dense<0> : vector<8xi32>
    %142 = vector.multi_reduction <add>, %141, %cst_34 [1] : vector<8x128xi32> to vector<8xi32>
    %143 = vector.shape_cast %142 : vector<8xi32> to vector<8x1xi32>
    %144 = vector.broadcast %c97_i32 : i32 to vector<8x1xi32>
    %145 = arith.cmpi sge, %143, %144 : vector<8x1xi32>
    %c1_i32_35 = arith.constant 1 : i32
    %146 = vector.broadcast %c1_i32_35 : i32 to vector<8x1xi32>
    %147 = arith.addi %138, %146 : vector<8x1xi32>
    %148 = arith.select %145, %133, %147 : vector<8x1xi1>, vector<8x1xi32>
    %149 = arith.select %145, %138, %134 : vector<8x1xi1>, vector<8x1xi32>
    %c9_i32 = arith.constant 9 : i32
    %150 = arith.subi %149, %148 : vector<8x1xi32>
    %c1_i32_36 = arith.constant 1 : i32
    %151 = vector.broadcast %c1_i32_36 : i32 to vector<8x1xi32>
    %152 = arith.shrsi %150, %151 : vector<8x1xi32>
    %153 = arith.addi %148, %152 : vector<8x1xi32>
    %154 = vector.broadcast %153 : vector<8x1xi32> to vector<8x128xi32>
    %155 = arith.cmpi sle, %12, %154 : vector<8x128xi32>
    %156 = arith.extui %155 : vector<8x128xi1> to vector<8x128xi32>
    %cst_37 = arith.constant dense<0> : vector<8xi32>
    %157 = vector.multi_reduction <add>, %156, %cst_37 [1] : vector<8x128xi32> to vector<8xi32>
    %158 = vector.shape_cast %157 : vector<8xi32> to vector<8x1xi32>
    %159 = vector.broadcast %c97_i32 : i32 to vector<8x1xi32>
    %160 = arith.cmpi sge, %158, %159 : vector<8x1xi32>
    %c1_i32_38 = arith.constant 1 : i32
    %161 = vector.broadcast %c1_i32_38 : i32 to vector<8x1xi32>
    %162 = arith.addi %153, %161 : vector<8x1xi32>
    %163 = arith.select %160, %148, %162 : vector<8x1xi1>, vector<8x1xi32>
    %164 = arith.select %160, %153, %149 : vector<8x1xi1>, vector<8x1xi32>
    %c10_i32 = arith.constant 10 : i32
    %165 = arith.subi %164, %163 : vector<8x1xi32>
    %c1_i32_39 = arith.constant 1 : i32
    %166 = vector.broadcast %c1_i32_39 : i32 to vector<8x1xi32>
    %167 = arith.shrsi %165, %166 : vector<8x1xi32>
    %168 = arith.addi %163, %167 : vector<8x1xi32>
    %169 = vector.broadcast %168 : vector<8x1xi32> to vector<8x128xi32>
    %170 = arith.cmpi sle, %12, %169 : vector<8x128xi32>
    %171 = arith.extui %170 : vector<8x128xi1> to vector<8x128xi32>
    %cst_40 = arith.constant dense<0> : vector<8xi32>
    %172 = vector.multi_reduction <add>, %171, %cst_40 [1] : vector<8x128xi32> to vector<8xi32>
    %173 = vector.shape_cast %172 : vector<8xi32> to vector<8x1xi32>
    %174 = vector.broadcast %c97_i32 : i32 to vector<8x1xi32>
    %175 = arith.cmpi sge, %173, %174 : vector<8x1xi32>
    %c1_i32_41 = arith.constant 1 : i32
    %176 = vector.broadcast %c1_i32_41 : i32 to vector<8x1xi32>
    %177 = arith.addi %168, %176 : vector<8x1xi32>
    %178 = arith.select %175, %163, %177 : vector<8x1xi1>, vector<8x1xi32>
    %179 = arith.select %175, %168, %164 : vector<8x1xi1>, vector<8x1xi32>
    %c11_i32 = arith.constant 11 : i32
    %180 = arith.subi %179, %178 : vector<8x1xi32>
    %c1_i32_42 = arith.constant 1 : i32
    %181 = vector.broadcast %c1_i32_42 : i32 to vector<8x1xi32>
    %182 = arith.shrsi %180, %181 : vector<8x1xi32>
    %183 = arith.addi %178, %182 : vector<8x1xi32>
    %184 = vector.broadcast %183 : vector<8x1xi32> to vector<8x128xi32>
    %185 = arith.cmpi sle, %12, %184 : vector<8x128xi32>
    %186 = arith.extui %185 : vector<8x128xi1> to vector<8x128xi32>
    %cst_43 = arith.constant dense<0> : vector<8xi32>
    %187 = vector.multi_reduction <add>, %186, %cst_43 [1] : vector<8x128xi32> to vector<8xi32>
    %188 = vector.shape_cast %187 : vector<8xi32> to vector<8x1xi32>
    %189 = vector.broadcast %c97_i32 : i32 to vector<8x1xi32>
    %190 = arith.cmpi sge, %188, %189 : vector<8x1xi32>
    %c1_i32_44 = arith.constant 1 : i32
    %191 = vector.broadcast %c1_i32_44 : i32 to vector<8x1xi32>
    %192 = arith.addi %183, %191 : vector<8x1xi32>
    %193 = arith.select %190, %178, %192 : vector<8x1xi1>, vector<8x1xi32>
    %194 = arith.select %190, %183, %179 : vector<8x1xi1>, vector<8x1xi32>
    %c12_i32 = arith.constant 12 : i32
    %195 = arith.subi %194, %193 : vector<8x1xi32>
    %c1_i32_45 = arith.constant 1 : i32
    %196 = vector.broadcast %c1_i32_45 : i32 to vector<8x1xi32>
    %197 = arith.shrsi %195, %196 : vector<8x1xi32>
    %198 = arith.addi %193, %197 : vector<8x1xi32>
    %199 = vector.broadcast %198 : vector<8x1xi32> to vector<8x128xi32>
    %200 = arith.cmpi sle, %12, %199 : vector<8x128xi32>
    %201 = arith.extui %200 : vector<8x128xi1> to vector<8x128xi32>
    %cst_46 = arith.constant dense<0> : vector<8xi32>
    %202 = vector.multi_reduction <add>, %201, %cst_46 [1] : vector<8x128xi32> to vector<8xi32>
    %203 = vector.shape_cast %202 : vector<8xi32> to vector<8x1xi32>
    %204 = vector.broadcast %c97_i32 : i32 to vector<8x1xi32>
    %205 = arith.cmpi sge, %203, %204 : vector<8x1xi32>
    %c1_i32_47 = arith.constant 1 : i32
    %206 = vector.broadcast %c1_i32_47 : i32 to vector<8x1xi32>
    %207 = arith.addi %198, %206 : vector<8x1xi32>
    %208 = arith.select %205, %193, %207 : vector<8x1xi1>, vector<8x1xi32>
    %209 = arith.select %205, %198, %194 : vector<8x1xi1>, vector<8x1xi32>
    %c13_i32 = arith.constant 13 : i32
    %210 = arith.subi %209, %208 : vector<8x1xi32>
    %c1_i32_48 = arith.constant 1 : i32
    %211 = vector.broadcast %c1_i32_48 : i32 to vector<8x1xi32>
    %212 = arith.shrsi %210, %211 : vector<8x1xi32>
    %213 = arith.addi %208, %212 : vector<8x1xi32>
    %214 = vector.broadcast %213 : vector<8x1xi32> to vector<8x128xi32>
    %215 = arith.cmpi sle, %12, %214 : vector<8x128xi32>
    %216 = arith.extui %215 : vector<8x128xi1> to vector<8x128xi32>
    %cst_49 = arith.constant dense<0> : vector<8xi32>
    %217 = vector.multi_reduction <add>, %216, %cst_49 [1] : vector<8x128xi32> to vector<8xi32>
    %218 = vector.shape_cast %217 : vector<8xi32> to vector<8x1xi32>
    %219 = vector.broadcast %c97_i32 : i32 to vector<8x1xi32>
    %220 = arith.cmpi sge, %218, %219 : vector<8x1xi32>
    %c1_i32_50 = arith.constant 1 : i32
    %221 = vector.broadcast %c1_i32_50 : i32 to vector<8x1xi32>
    %222 = arith.addi %213, %221 : vector<8x1xi32>
    %223 = arith.select %220, %208, %222 : vector<8x1xi1>, vector<8x1xi32>
    %224 = arith.select %220, %213, %209 : vector<8x1xi1>, vector<8x1xi32>
    %c14_i32 = arith.constant 14 : i32
    %225 = arith.subi %224, %223 : vector<8x1xi32>
    %c1_i32_51 = arith.constant 1 : i32
    %226 = vector.broadcast %c1_i32_51 : i32 to vector<8x1xi32>
    %227 = arith.shrsi %225, %226 : vector<8x1xi32>
    %228 = arith.addi %223, %227 : vector<8x1xi32>
    %229 = vector.broadcast %228 : vector<8x1xi32> to vector<8x128xi32>
    %230 = arith.cmpi sle, %12, %229 : vector<8x128xi32>
    %231 = arith.extui %230 : vector<8x128xi1> to vector<8x128xi32>
    %cst_52 = arith.constant dense<0> : vector<8xi32>
    %232 = vector.multi_reduction <add>, %231, %cst_52 [1] : vector<8x128xi32> to vector<8xi32>
    %233 = vector.shape_cast %232 : vector<8xi32> to vector<8x1xi32>
    %234 = vector.broadcast %c97_i32 : i32 to vector<8x1xi32>
    %235 = arith.cmpi sge, %233, %234 : vector<8x1xi32>
    %c1_i32_53 = arith.constant 1 : i32
    %236 = vector.broadcast %c1_i32_53 : i32 to vector<8x1xi32>
    %237 = arith.addi %228, %236 : vector<8x1xi32>
    %238 = arith.select %235, %223, %237 : vector<8x1xi1>, vector<8x1xi32>
    %239 = arith.select %235, %228, %224 : vector<8x1xi1>, vector<8x1xi32>
    %c15_i32 = arith.constant 15 : i32
    %240 = arith.subi %239, %238 : vector<8x1xi32>
    %c1_i32_54 = arith.constant 1 : i32
    %241 = vector.broadcast %c1_i32_54 : i32 to vector<8x1xi32>
    %242 = arith.shrsi %240, %241 : vector<8x1xi32>
    %243 = arith.addi %238, %242 : vector<8x1xi32>
    %244 = vector.broadcast %243 : vector<8x1xi32> to vector<8x128xi32>
    %245 = arith.cmpi sle, %12, %244 : vector<8x128xi32>
    %246 = arith.extui %245 : vector<8x128xi1> to vector<8x128xi32>
    %cst_55 = arith.constant dense<0> : vector<8xi32>
    %247 = vector.multi_reduction <add>, %246, %cst_55 [1] : vector<8x128xi32> to vector<8xi32>
    %248 = vector.shape_cast %247 : vector<8xi32> to vector<8x1xi32>
    %249 = vector.broadcast %c97_i32 : i32 to vector<8x1xi32>
    %250 = arith.cmpi sge, %248, %249 : vector<8x1xi32>
    %c1_i32_56 = arith.constant 1 : i32
    %251 = vector.broadcast %c1_i32_56 : i32 to vector<8x1xi32>
    %252 = arith.addi %243, %251 : vector<8x1xi32>
    %253 = arith.select %250, %238, %252 : vector<8x1xi1>, vector<8x1xi32>
    %254 = arith.select %250, %243, %239 : vector<8x1xi1>, vector<8x1xi32>
    %c16_i32 = arith.constant 16 : i32
    %255 = arith.subi %254, %253 : vector<8x1xi32>
    %c1_i32_57 = arith.constant 1 : i32
    %256 = vector.broadcast %c1_i32_57 : i32 to vector<8x1xi32>
    %257 = arith.shrsi %255, %256 : vector<8x1xi32>
    %258 = arith.addi %253, %257 : vector<8x1xi32>
    %259 = vector.broadcast %258 : vector<8x1xi32> to vector<8x128xi32>
    %260 = arith.cmpi sle, %12, %259 : vector<8x128xi32>
    %261 = arith.extui %260 : vector<8x128xi1> to vector<8x128xi32>
    %cst_58 = arith.constant dense<0> : vector<8xi32>
    %262 = vector.multi_reduction <add>, %261, %cst_58 [1] : vector<8x128xi32> to vector<8xi32>
    %263 = vector.shape_cast %262 : vector<8xi32> to vector<8x1xi32>
    %264 = vector.broadcast %c97_i32 : i32 to vector<8x1xi32>
    %265 = arith.cmpi sge, %263, %264 : vector<8x1xi32>
    %c1_i32_59 = arith.constant 1 : i32
    %266 = vector.broadcast %c1_i32_59 : i32 to vector<8x1xi32>
    %267 = arith.addi %258, %266 : vector<8x1xi32>
    %268 = arith.select %265, %253, %267 : vector<8x1xi1>, vector<8x1xi32>
    %269 = arith.select %265, %258, %254 : vector<8x1xi1>, vector<8x1xi32>
    %c17_i32 = arith.constant 17 : i32
    %270 = arith.subi %269, %268 : vector<8x1xi32>
    %c1_i32_60 = arith.constant 1 : i32
    %271 = vector.broadcast %c1_i32_60 : i32 to vector<8x1xi32>
    %272 = arith.shrsi %270, %271 : vector<8x1xi32>
    %273 = arith.addi %268, %272 : vector<8x1xi32>
    %274 = vector.broadcast %273 : vector<8x1xi32> to vector<8x128xi32>
    %275 = arith.cmpi sle, %12, %274 : vector<8x128xi32>
    %276 = arith.extui %275 : vector<8x128xi1> to vector<8x128xi32>
    %cst_61 = arith.constant dense<0> : vector<8xi32>
    %277 = vector.multi_reduction <add>, %276, %cst_61 [1] : vector<8x128xi32> to vector<8xi32>
    %278 = vector.shape_cast %277 : vector<8xi32> to vector<8x1xi32>
    %279 = vector.broadcast %c97_i32 : i32 to vector<8x1xi32>
    %280 = arith.cmpi sge, %278, %279 : vector<8x1xi32>
    %c1_i32_62 = arith.constant 1 : i32
    %281 = vector.broadcast %c1_i32_62 : i32 to vector<8x1xi32>
    %282 = arith.addi %273, %281 : vector<8x1xi32>
    %283 = arith.select %280, %268, %282 : vector<8x1xi1>, vector<8x1xi32>
    %284 = arith.select %280, %273, %269 : vector<8x1xi1>, vector<8x1xi32>
    %c18_i32 = arith.constant 18 : i32
    %285 = arith.subi %284, %283 : vector<8x1xi32>
    %c1_i32_63 = arith.constant 1 : i32
    %286 = vector.broadcast %c1_i32_63 : i32 to vector<8x1xi32>
    %287 = arith.shrsi %285, %286 : vector<8x1xi32>
    %288 = arith.addi %283, %287 : vector<8x1xi32>
    %289 = vector.broadcast %288 : vector<8x1xi32> to vector<8x128xi32>
    %290 = arith.cmpi sle, %12, %289 : vector<8x128xi32>
    %291 = arith.extui %290 : vector<8x128xi1> to vector<8x128xi32>
    %cst_64 = arith.constant dense<0> : vector<8xi32>
    %292 = vector.multi_reduction <add>, %291, %cst_64 [1] : vector<8x128xi32> to vector<8xi32>
    %293 = vector.shape_cast %292 : vector<8xi32> to vector<8x1xi32>
    %294 = vector.broadcast %c97_i32 : i32 to vector<8x1xi32>
    %295 = arith.cmpi sge, %293, %294 : vector<8x1xi32>
    %c1_i32_65 = arith.constant 1 : i32
    %296 = vector.broadcast %c1_i32_65 : i32 to vector<8x1xi32>
    %297 = arith.addi %288, %296 : vector<8x1xi32>
    %298 = arith.select %295, %283, %297 : vector<8x1xi1>, vector<8x1xi32>
    %299 = arith.select %295, %288, %284 : vector<8x1xi1>, vector<8x1xi32>
    %c19_i32 = arith.constant 19 : i32
    %300 = arith.subi %299, %298 : vector<8x1xi32>
    %c1_i32_66 = arith.constant 1 : i32
    %301 = vector.broadcast %c1_i32_66 : i32 to vector<8x1xi32>
    %302 = arith.shrsi %300, %301 : vector<8x1xi32>
    %303 = arith.addi %298, %302 : vector<8x1xi32>
    %304 = vector.broadcast %303 : vector<8x1xi32> to vector<8x128xi32>
    %305 = arith.cmpi sle, %12, %304 : vector<8x128xi32>
    %306 = arith.extui %305 : vector<8x128xi1> to vector<8x128xi32>
    %cst_67 = arith.constant dense<0> : vector<8xi32>
    %307 = vector.multi_reduction <add>, %306, %cst_67 [1] : vector<8x128xi32> to vector<8xi32>
    %308 = vector.shape_cast %307 : vector<8xi32> to vector<8x1xi32>
    %309 = vector.broadcast %c97_i32 : i32 to vector<8x1xi32>
    %310 = arith.cmpi sge, %308, %309 : vector<8x1xi32>
    %c1_i32_68 = arith.constant 1 : i32
    %311 = vector.broadcast %c1_i32_68 : i32 to vector<8x1xi32>
    %312 = arith.addi %303, %311 : vector<8x1xi32>
    %313 = arith.select %310, %298, %312 : vector<8x1xi1>, vector<8x1xi32>
    %314 = arith.select %310, %303, %299 : vector<8x1xi1>, vector<8x1xi32>
    %c20_i32 = arith.constant 20 : i32
    %315 = arith.subi %314, %313 : vector<8x1xi32>
    %c1_i32_69 = arith.constant 1 : i32
    %316 = vector.broadcast %c1_i32_69 : i32 to vector<8x1xi32>
    %317 = arith.shrsi %315, %316 : vector<8x1xi32>
    %318 = arith.addi %313, %317 : vector<8x1xi32>
    %319 = vector.broadcast %318 : vector<8x1xi32> to vector<8x128xi32>
    %320 = arith.cmpi sle, %12, %319 : vector<8x128xi32>
    %321 = arith.extui %320 : vector<8x128xi1> to vector<8x128xi32>
    %cst_70 = arith.constant dense<0> : vector<8xi32>
    %322 = vector.multi_reduction <add>, %321, %cst_70 [1] : vector<8x128xi32> to vector<8xi32>
    %323 = vector.shape_cast %322 : vector<8xi32> to vector<8x1xi32>
    %324 = vector.broadcast %c97_i32 : i32 to vector<8x1xi32>
    %325 = arith.cmpi sge, %323, %324 : vector<8x1xi32>
    %c1_i32_71 = arith.constant 1 : i32
    %326 = vector.broadcast %c1_i32_71 : i32 to vector<8x1xi32>
    %327 = arith.addi %318, %326 : vector<8x1xi32>
    %328 = arith.select %325, %313, %327 : vector<8x1xi1>, vector<8x1xi32>
    %329 = arith.select %325, %318, %314 : vector<8x1xi1>, vector<8x1xi32>
    %c21_i32 = arith.constant 21 : i32
    %330 = arith.subi %329, %328 : vector<8x1xi32>
    %c1_i32_72 = arith.constant 1 : i32
    %331 = vector.broadcast %c1_i32_72 : i32 to vector<8x1xi32>
    %332 = arith.shrsi %330, %331 : vector<8x1xi32>
    %333 = arith.addi %328, %332 : vector<8x1xi32>
    %334 = vector.broadcast %333 : vector<8x1xi32> to vector<8x128xi32>
    %335 = arith.cmpi sle, %12, %334 : vector<8x128xi32>
    %336 = arith.extui %335 : vector<8x128xi1> to vector<8x128xi32>
    %cst_73 = arith.constant dense<0> : vector<8xi32>
    %337 = vector.multi_reduction <add>, %336, %cst_73 [1] : vector<8x128xi32> to vector<8xi32>
    %338 = vector.shape_cast %337 : vector<8xi32> to vector<8x1xi32>
    %339 = vector.broadcast %c97_i32 : i32 to vector<8x1xi32>
    %340 = arith.cmpi sge, %338, %339 : vector<8x1xi32>
    %c1_i32_74 = arith.constant 1 : i32
    %341 = vector.broadcast %c1_i32_74 : i32 to vector<8x1xi32>
    %342 = arith.addi %333, %341 : vector<8x1xi32>
    %343 = arith.select %340, %328, %342 : vector<8x1xi1>, vector<8x1xi32>
    %344 = arith.select %340, %333, %329 : vector<8x1xi1>, vector<8x1xi32>
    %c22_i32 = arith.constant 22 : i32
    %345 = arith.subi %344, %343 : vector<8x1xi32>
    %c1_i32_75 = arith.constant 1 : i32
    %346 = vector.broadcast %c1_i32_75 : i32 to vector<8x1xi32>
    %347 = arith.shrsi %345, %346 : vector<8x1xi32>
    %348 = arith.addi %343, %347 : vector<8x1xi32>
    %349 = vector.broadcast %348 : vector<8x1xi32> to vector<8x128xi32>
    %350 = arith.cmpi sle, %12, %349 : vector<8x128xi32>
    %351 = arith.extui %350 : vector<8x128xi1> to vector<8x128xi32>
    %cst_76 = arith.constant dense<0> : vector<8xi32>
    %352 = vector.multi_reduction <add>, %351, %cst_76 [1] : vector<8x128xi32> to vector<8xi32>
    %353 = vector.shape_cast %352 : vector<8xi32> to vector<8x1xi32>
    %354 = vector.broadcast %c97_i32 : i32 to vector<8x1xi32>
    %355 = arith.cmpi sge, %353, %354 : vector<8x1xi32>
    %c1_i32_77 = arith.constant 1 : i32
    %356 = vector.broadcast %c1_i32_77 : i32 to vector<8x1xi32>
    %357 = arith.addi %348, %356 : vector<8x1xi32>
    %358 = arith.select %355, %343, %357 : vector<8x1xi1>, vector<8x1xi32>
    %359 = arith.select %355, %348, %344 : vector<8x1xi1>, vector<8x1xi32>
    %c23_i32 = arith.constant 23 : i32
    %360 = arith.subi %359, %358 : vector<8x1xi32>
    %c1_i32_78 = arith.constant 1 : i32
    %361 = vector.broadcast %c1_i32_78 : i32 to vector<8x1xi32>
    %362 = arith.shrsi %360, %361 : vector<8x1xi32>
    %363 = arith.addi %358, %362 : vector<8x1xi32>
    %364 = vector.broadcast %363 : vector<8x1xi32> to vector<8x128xi32>
    %365 = arith.cmpi sle, %12, %364 : vector<8x128xi32>
    %366 = arith.extui %365 : vector<8x128xi1> to vector<8x128xi32>
    %cst_79 = arith.constant dense<0> : vector<8xi32>
    %367 = vector.multi_reduction <add>, %366, %cst_79 [1] : vector<8x128xi32> to vector<8xi32>
    %368 = vector.shape_cast %367 : vector<8xi32> to vector<8x1xi32>
    %369 = vector.broadcast %c97_i32 : i32 to vector<8x1xi32>
    %370 = arith.cmpi sge, %368, %369 : vector<8x1xi32>
    %c1_i32_80 = arith.constant 1 : i32
    %371 = vector.broadcast %c1_i32_80 : i32 to vector<8x1xi32>
    %372 = arith.addi %363, %371 : vector<8x1xi32>
    %373 = arith.select %370, %358, %372 : vector<8x1xi1>, vector<8x1xi32>
    %374 = arith.select %370, %363, %359 : vector<8x1xi1>, vector<8x1xi32>
    %c24_i32 = arith.constant 24 : i32
    %375 = arith.subi %374, %373 : vector<8x1xi32>
    %c1_i32_81 = arith.constant 1 : i32
    %376 = vector.broadcast %c1_i32_81 : i32 to vector<8x1xi32>
    %377 = arith.shrsi %375, %376 : vector<8x1xi32>
    %378 = arith.addi %373, %377 : vector<8x1xi32>
    %379 = vector.broadcast %378 : vector<8x1xi32> to vector<8x128xi32>
    %380 = arith.cmpi sle, %12, %379 : vector<8x128xi32>
    %381 = arith.extui %380 : vector<8x128xi1> to vector<8x128xi32>
    %cst_82 = arith.constant dense<0> : vector<8xi32>
    %382 = vector.multi_reduction <add>, %381, %cst_82 [1] : vector<8x128xi32> to vector<8xi32>
    %383 = vector.shape_cast %382 : vector<8xi32> to vector<8x1xi32>
    %384 = vector.broadcast %c97_i32 : i32 to vector<8x1xi32>
    %385 = arith.cmpi sge, %383, %384 : vector<8x1xi32>
    %c1_i32_83 = arith.constant 1 : i32
    %386 = vector.broadcast %c1_i32_83 : i32 to vector<8x1xi32>
    %387 = arith.addi %378, %386 : vector<8x1xi32>
    %388 = arith.select %385, %373, %387 : vector<8x1xi1>, vector<8x1xi32>
    %389 = arith.select %385, %378, %374 : vector<8x1xi1>, vector<8x1xi32>
    %c25_i32 = arith.constant 25 : i32
    %390 = arith.subi %389, %388 : vector<8x1xi32>
    %c1_i32_84 = arith.constant 1 : i32
    %391 = vector.broadcast %c1_i32_84 : i32 to vector<8x1xi32>
    %392 = arith.shrsi %390, %391 : vector<8x1xi32>
    %393 = arith.addi %388, %392 : vector<8x1xi32>
    %394 = vector.broadcast %393 : vector<8x1xi32> to vector<8x128xi32>
    %395 = arith.cmpi sle, %12, %394 : vector<8x128xi32>
    %396 = arith.extui %395 : vector<8x128xi1> to vector<8x128xi32>
    %cst_85 = arith.constant dense<0> : vector<8xi32>
    %397 = vector.multi_reduction <add>, %396, %cst_85 [1] : vector<8x128xi32> to vector<8xi32>
    %398 = vector.shape_cast %397 : vector<8xi32> to vector<8x1xi32>
    %399 = vector.broadcast %c97_i32 : i32 to vector<8x1xi32>
    %400 = arith.cmpi sge, %398, %399 : vector<8x1xi32>
    %c1_i32_86 = arith.constant 1 : i32
    %401 = vector.broadcast %c1_i32_86 : i32 to vector<8x1xi32>
    %402 = arith.addi %393, %401 : vector<8x1xi32>
    %403 = arith.select %400, %388, %402 : vector<8x1xi1>, vector<8x1xi32>
    %404 = arith.select %400, %393, %389 : vector<8x1xi1>, vector<8x1xi32>
    %c26_i32 = arith.constant 26 : i32
    %405 = arith.subi %404, %403 : vector<8x1xi32>
    %c1_i32_87 = arith.constant 1 : i32
    %406 = vector.broadcast %c1_i32_87 : i32 to vector<8x1xi32>
    %407 = arith.shrsi %405, %406 : vector<8x1xi32>
    %408 = arith.addi %403, %407 : vector<8x1xi32>
    %409 = vector.broadcast %408 : vector<8x1xi32> to vector<8x128xi32>
    %410 = arith.cmpi sle, %12, %409 : vector<8x128xi32>
    %411 = arith.extui %410 : vector<8x128xi1> to vector<8x128xi32>
    %cst_88 = arith.constant dense<0> : vector<8xi32>
    %412 = vector.multi_reduction <add>, %411, %cst_88 [1] : vector<8x128xi32> to vector<8xi32>
    %413 = vector.shape_cast %412 : vector<8xi32> to vector<8x1xi32>
    %414 = vector.broadcast %c97_i32 : i32 to vector<8x1xi32>
    %415 = arith.cmpi sge, %413, %414 : vector<8x1xi32>
    %c1_i32_89 = arith.constant 1 : i32
    %416 = vector.broadcast %c1_i32_89 : i32 to vector<8x1xi32>
    %417 = arith.addi %408, %416 : vector<8x1xi32>
    %418 = arith.select %415, %403, %417 : vector<8x1xi1>, vector<8x1xi32>
    %419 = arith.select %415, %408, %404 : vector<8x1xi1>, vector<8x1xi32>
    %c27_i32 = arith.constant 27 : i32
    %420 = arith.subi %419, %418 : vector<8x1xi32>
    %c1_i32_90 = arith.constant 1 : i32
    %421 = vector.broadcast %c1_i32_90 : i32 to vector<8x1xi32>
    %422 = arith.shrsi %420, %421 : vector<8x1xi32>
    %423 = arith.addi %418, %422 : vector<8x1xi32>
    %424 = vector.broadcast %423 : vector<8x1xi32> to vector<8x128xi32>
    %425 = arith.cmpi sle, %12, %424 : vector<8x128xi32>
    %426 = arith.extui %425 : vector<8x128xi1> to vector<8x128xi32>
    %cst_91 = arith.constant dense<0> : vector<8xi32>
    %427 = vector.multi_reduction <add>, %426, %cst_91 [1] : vector<8x128xi32> to vector<8xi32>
    %428 = vector.shape_cast %427 : vector<8xi32> to vector<8x1xi32>
    %429 = vector.broadcast %c97_i32 : i32 to vector<8x1xi32>
    %430 = arith.cmpi sge, %428, %429 : vector<8x1xi32>
    %c1_i32_92 = arith.constant 1 : i32
    %431 = vector.broadcast %c1_i32_92 : i32 to vector<8x1xi32>
    %432 = arith.addi %423, %431 : vector<8x1xi32>
    %433 = arith.select %430, %418, %432 : vector<8x1xi1>, vector<8x1xi32>
    %434 = arith.select %430, %423, %419 : vector<8x1xi1>, vector<8x1xi32>
    %c28_i32 = arith.constant 28 : i32
    %435 = arith.subi %434, %433 : vector<8x1xi32>
    %c1_i32_93 = arith.constant 1 : i32
    %436 = vector.broadcast %c1_i32_93 : i32 to vector<8x1xi32>
    %437 = arith.shrsi %435, %436 : vector<8x1xi32>
    %438 = arith.addi %433, %437 : vector<8x1xi32>
    %439 = vector.broadcast %438 : vector<8x1xi32> to vector<8x128xi32>
    %440 = arith.cmpi sle, %12, %439 : vector<8x128xi32>
    %441 = arith.extui %440 : vector<8x128xi1> to vector<8x128xi32>
    %cst_94 = arith.constant dense<0> : vector<8xi32>
    %442 = vector.multi_reduction <add>, %441, %cst_94 [1] : vector<8x128xi32> to vector<8xi32>
    %443 = vector.shape_cast %442 : vector<8xi32> to vector<8x1xi32>
    %444 = vector.broadcast %c97_i32 : i32 to vector<8x1xi32>
    %445 = arith.cmpi sge, %443, %444 : vector<8x1xi32>
    %c1_i32_95 = arith.constant 1 : i32
    %446 = vector.broadcast %c1_i32_95 : i32 to vector<8x1xi32>
    %447 = arith.addi %438, %446 : vector<8x1xi32>
    %448 = arith.select %445, %433, %447 : vector<8x1xi1>, vector<8x1xi32>
    %449 = arith.select %445, %438, %434 : vector<8x1xi1>, vector<8x1xi32>
    %c29_i32 = arith.constant 29 : i32
    %450 = arith.subi %449, %448 : vector<8x1xi32>
    %c1_i32_96 = arith.constant 1 : i32
    %451 = vector.broadcast %c1_i32_96 : i32 to vector<8x1xi32>
    %452 = arith.shrsi %450, %451 : vector<8x1xi32>
    %453 = arith.addi %448, %452 : vector<8x1xi32>
    %454 = vector.broadcast %453 : vector<8x1xi32> to vector<8x128xi32>
    %455 = arith.cmpi sle, %12, %454 : vector<8x128xi32>
    %456 = arith.extui %455 : vector<8x128xi1> to vector<8x128xi32>
    %cst_97 = arith.constant dense<0> : vector<8xi32>
    %457 = vector.multi_reduction <add>, %456, %cst_97 [1] : vector<8x128xi32> to vector<8xi32>
    %458 = vector.shape_cast %457 : vector<8xi32> to vector<8x1xi32>
    %459 = vector.broadcast %c97_i32 : i32 to vector<8x1xi32>
    %460 = arith.cmpi sge, %458, %459 : vector<8x1xi32>
    %c1_i32_98 = arith.constant 1 : i32
    %461 = vector.broadcast %c1_i32_98 : i32 to vector<8x1xi32>
    %462 = arith.addi %453, %461 : vector<8x1xi32>
    %463 = arith.select %460, %448, %462 : vector<8x1xi1>, vector<8x1xi32>
    %464 = arith.select %460, %453, %449 : vector<8x1xi1>, vector<8x1xi32>
    %c30_i32 = arith.constant 30 : i32
    %465 = arith.subi %464, %463 : vector<8x1xi32>
    %c1_i32_99 = arith.constant 1 : i32
    %466 = vector.broadcast %c1_i32_99 : i32 to vector<8x1xi32>
    %467 = arith.shrsi %465, %466 : vector<8x1xi32>
    %468 = arith.addi %463, %467 : vector<8x1xi32>
    %469 = vector.broadcast %468 : vector<8x1xi32> to vector<8x128xi32>
    %470 = arith.cmpi sle, %12, %469 : vector<8x128xi32>
    %471 = arith.extui %470 : vector<8x128xi1> to vector<8x128xi32>
    %cst_100 = arith.constant dense<0> : vector<8xi32>
    %472 = vector.multi_reduction <add>, %471, %cst_100 [1] : vector<8x128xi32> to vector<8xi32>
    %473 = vector.shape_cast %472 : vector<8xi32> to vector<8x1xi32>
    %474 = vector.broadcast %c97_i32 : i32 to vector<8x1xi32>
    %475 = arith.cmpi sge, %473, %474 : vector<8x1xi32>
    %c1_i32_101 = arith.constant 1 : i32
    %476 = vector.broadcast %c1_i32_101 : i32 to vector<8x1xi32>
    %477 = arith.addi %468, %476 : vector<8x1xi32>
    %478 = arith.select %475, %463, %477 : vector<8x1xi1>, vector<8x1xi32>
    %479 = arith.select %475, %468, %464 : vector<8x1xi1>, vector<8x1xi32>
    %480 = tpu.bitcast %478 : vector<8x1xi32> -> vector<8x1xf32>
    %481 = vector.broadcast %480 : vector<8x1xf32> to vector<8x128xf32>
    %482 = arith.cmpf olt, %11, %481 : vector<8x128xf32>
    %483 = arith.extui %482 : vector<8x128xi1> to vector<8x128xi32>
    %cst_102 = arith.constant dense<0> : vector<8xi32>
    %484 = vector.multi_reduction <add>, %483, %cst_102 [1] : vector<8x128xi32> to vector<8xi32>
    %485 = vector.shape_cast %484 : vector<8xi32> to vector<8x1xi32>
    %cst_103 = arith.constant 0.000000e+00 : f32
    %486 = vector.broadcast %cst_103 : f32 to vector<8x128xf32>
    %487 = arith.select %482, %11, %486 : vector<8x128xi1>, vector<8x128xf32>
    %cst_104 = arith.constant dense<0xFF800000> : vector<8xf32>
    %488 = vector.multi_reduction <maximumf>, %487, %cst_104 [1] : vector<8x128xf32> to vector<8xf32>
    %489 = vector.shape_cast %488 : vector<8xf32> to vector<8x1xf32>
    %c96_i32 = arith.constant 96 : i32
    %490 = vector.broadcast %c96_i32 : i32 to vector<8x1xi32>
    %491 = arith.cmpi sge, %485, %490 : vector<8x1xi32>
    %492 = arith.select %491, %489, %480 : vector<8x1xi1>, vector<8x1xf32>
    %493 = arith.addf %492, %480 : vector<8x1xf32>
    %cst_105 = arith.constant 5.000000e-01 : f32
    %494 = vector.broadcast %cst_105 : f32 to vector<8x1xf32>
    %495 = arith.mulf %494, %493 : vector<8x1xf32>
    %cst_106 = arith.constant 9.99999991E-38 : f32
    %496 = vector.broadcast %cst_106 : f32 to vector<8x1xf32>
    %497 = arith.maximumf %495, %496 : vector<8x1xf32>
    %498 = tpu.reciprocal %497 {approx = true} : vector<8x1xf32> -> vector<8x1xf32>
    %499 = arith.mulf %497, %498 : vector<8x1xf32>
    %cst_107 = arith.constant 2.000000e+00 : f32
    %500 = vector.broadcast %cst_107 : f32 to vector<8x1xf32>
    %501 = arith.subf %500, %499 : vector<8x1xf32>
    %502 = arith.mulf %498, %501 : vector<8x1xf32>
    %503 = vector.broadcast %502 : vector<8x1xf32> to vector<8x128xf32>
    %504 = arith.mulf %11, %503 : vector<8x128xf32>
    %c0_108 = arith.constant 0 : index
    %c0_109 = arith.constant 0 : index
    %505 = vector.load %arg6[%c0_108, %c0_109] : memref<8x128xf32, #tpu.memory_space<vmem>>, vector<8x128xf32>
    tpu.vector_store %arg6[%c0_108, %c0_109], %504 {strides = array<i32>} : memref<8x128xf32, #tpu.memory_space<vmem>>, vector<8x128xf32>,
    return
  }
  func.func @transform_0(%arg0: i32, %arg1: i32) -> (i32, i32) {
    %c0_i32 = arith.constant 0 : i32
    return %arg0, %arg1 : i32, i32
  }
  func.func @transform_1(%arg0: i32, %arg1: i32) -> (i32, i32) {
    %c0_i32 = arith.constant 0 : i32
    return %arg0, %arg1 : i32, i32
  }
  func.func @transform_2(%arg0: i32, %arg1: i32) -> (i32, i32) {
    %c0_i32 = arith.constant 0 : i32
    %c0_i32_0 = arith.constant 0 : i32
    return %arg1, %c0_i32 : i32, i32
  }
  func.func @transform_3(%arg0: i32, %arg1: i32) -> (i32, i32) {
    %c0_i32 = arith.constant 0 : i32
    %c0_i32_0 = arith.constant 0 : i32
    return %arg1, %c0_i32 : i32, i32
  }
  func.func @transform_4(%arg0: i32, %arg1: i32) -> (i32, i32) {
    %c0_i32 = arith.constant 0 : i32
    %c0_i32_0 = arith.constant 0 : i32
    return %arg0, %c0_i32 : i32, i32
  }
}

module attributes {stable_mosaic.version = 11 : i64} {
  func.func @_qtile_kernel(%arg0: i32, %arg1: i32, %arg2: memref<8x24xf32, #tpu.memory_space<vmem>>, %arg3: memref<8x24xf32, #tpu.memory_space<vmem>>, %arg4: memref<24x256xf32, #tpu.memory_space<vmem>>, %arg5: memref<24x256xf32, #tpu.memory_space<vmem>>, %arg6: memref<8x128xf32, #tpu.memory_space<vmem>>) attributes {dimension_semantics = [#tpu.dimension_semantics<parallel>, #tpu.dimension_semantics<arbitrary>], iteration_bounds = array<i64: 2, 1>, scalar_prefetch = 0 : i64, scratch_operands = 0 : i64, tpu.core_type = #tpu.core_type<tc>, window_params = [{transform_indices = @transform_0, window_bounds = array<i64: 8, 24>}, {transform_indices = @transform_1, window_bounds = array<i64: 8, 24>}, {transform_indices = @transform_2, window_bounds = array<i64: 24, 256>}, {transform_indices = @transform_3, window_bounds = array<i64: 24, 256>}, {transform_indices = @transform_4, window_bounds = array<i64: 8, 128>}]} {
    %c0 = arith.constant 0 : index
    %c0_0 = arith.constant 0 : index
    %0 = vector.load %arg2[%c0, %c0_0] : memref<8x24xf32, #tpu.memory_space<vmem>>, vector<8x24xf32>
    %c0_1 = arith.constant 0 : index
    %c0_2 = arith.constant 0 : index
    %1 = vector.load %arg4[%c0_1, %c0_2] : memref<24x256xf32, #tpu.memory_space<vmem>>, vector<24x256xf32>
    %cst = arith.constant dense<0.000000e+00> : vector<8x256xf32>
    %2 = tpu.matmul %0, %1, %cst {dimension_numbers = #tpu.dot_dimension_numbers<[1], [0], [0], [1], [0, 0, 1, 1], [], []>} : vector<8x24xf32>, vector<24x256xf32>, vector<8x256xf32> -> vector<8x256xf32>
    %c0_3 = arith.constant 0 : index
    %c0_4 = arith.constant 0 : index
    %3 = vector.load %arg3[%c0_3, %c0_4] : memref<8x24xf32, #tpu.memory_space<vmem>>, vector<8x24xf32>
    %c0_5 = arith.constant 0 : index
    %c0_6 = arith.constant 0 : index
    %4 = vector.load %arg5[%c0_5, %c0_6] : memref<24x256xf32, #tpu.memory_space<vmem>>, vector<24x256xf32>
    %cst_7 = arith.constant dense<0.000000e+00> : vector<8x256xf32>
    %5 = tpu.matmul %3, %4, %cst_7 {dimension_numbers = #tpu.dot_dimension_numbers<[1], [0], [0], [1], [0, 0, 1, 1], [], []>} : vector<8x24xf32>, vector<24x256xf32>, vector<8x256xf32> -> vector<8x256xf32>
    %6 = arith.addf %2, %5 : vector<8x256xf32>
    %7 = vector.extract_strided_slice %6 {offsets = [0, 0], sizes = [8, 128], strides = [1, 1]} : vector<8x256xf32> to vector<8x128xf32>
    %8 = vector.extract_strided_slice %6 {offsets = [0, 128], sizes = [8, 128], strides = [1, 1]} : vector<8x256xf32> to vector<8x128xf32>
    %9 = arith.mulf %7, %7 : vector<8x128xf32>
    %10 = arith.mulf %8, %8 : vector<8x128xf32>
    %11 = arith.addf %9, %10 : vector<8x128xf32>
    %12 = tpu.bitcast %11 : vector<8x128xf32> -> vector<8x128xi32>
    %c0_i32 = arith.constant 0 : i32
    %13 = vector.broadcast %c0_i32 : i32 to vector<8x1xi32>
    %c2147483647_i32 = arith.constant 2147483647 : i32
    %14 = vector.broadcast %c2147483647_i32 : i32 to vector<8x1xi32>
    %c97_i32 = arith.constant 97 : i32
    %c0_i32_8 = arith.constant 0 : i32
    %15 = arith.subi %14, %13 : vector<8x1xi32>
    %c1_i32 = arith.constant 1 : i32
    %16 = vector.broadcast %c1_i32 : i32 to vector<8x1xi32>
    %17 = arith.shrsi %15, %16 : vector<8x1xi32>
    %18 = arith.addi %13, %17 : vector<8x1xi32>
    %19 = vector.broadcast %18 : vector<8x1xi32> to vector<8x128xi32>
    %20 = arith.cmpi sle, %12, %19 : vector<8x128xi32>
    %21 = arith.extui %20 : vector<8x128xi1> to vector<8x128xi32>
    %cst_9 = arith.constant dense<0> : vector<8xi32>
    %22 = vector.multi_reduction <add>, %21, %cst_9 [1] : vector<8x128xi32> to vector<8xi32>
    %23 = vector.shape_cast %22 : vector<8xi32> to vector<8x1xi32>
    %24 = vector.broadcast %c97_i32 : i32 to vector<8x1xi32>
    %25 = arith.cmpi sge, %23, %24 : vector<8x1xi32>
    %c1_i32_10 = arith.constant 1 : i32
    %26 = vector.broadcast %c1_i32_10 : i32 to vector<8x1xi32>
    %27 = arith.addi %18, %26 : vector<8x1xi32>
    %28 = arith.select %25, %13, %27 : vector<8x1xi1>, vector<8x1xi32>
    %29 = arith.select %25, %18, %14 : vector<8x1xi1>, vector<8x1xi32>
    %c1_i32_11 = arith.constant 1 : i32
    %30 = arith.subi %29, %28 : vector<8x1xi32>
    %c1_i32_12 = arith.constant 1 : i32
    %31 = vector.broadcast %c1_i32_12 : i32 to vector<8x1xi32>
    %32 = arith.shrsi %30, %31 : vector<8x1xi32>
    %33 = arith.addi %28, %32 : vector<8x1xi32>
    %34 = vector.broadcast %33 : vector<8x1xi32> to vector<8x128xi32>
    %35 = arith.cmpi sle, %12, %34 : vector<8x128xi32>
    %36 = arith.extui %35 : vector<8x128xi1> to vector<8x128xi32>
    %cst_13 = arith.constant dense<0> : vector<8xi32>
    %37 = vector.multi_reduction <add>, %36, %cst_13 [1] : vector<8x128xi32> to vector<8xi32>
    %38 = vector.shape_cast %37 : vector<8xi32> to vector<8x1xi32>
    %39 = vector.broadcast %c97_i32 : i32 to vector<8x1xi32>
    %40 = arith.cmpi sge, %38, %39 : vector<8x1xi32>
    %c1_i32_14 = arith.constant 1 : i32
    %41 = vector.broadcast %c1_i32_14 : i32 to vector<8x1xi32>
    %42 = arith.addi %33, %41 : vector<8x1xi32>
    %43 = arith.select %40, %28, %42 : vector<8x1xi1>, vector<8x1xi32>
    %44 = arith.select %40, %33, %29 : vector<8x1xi1>, vector<8x1xi32>
    %c2_i32 = arith.constant 2 : i32
    %45 = arith.subi %44, %43 : vector<8x1xi32>
    %c1_i32_15 = arith.constant 1 : i32
    %46 = vector.broadcast %c1_i32_15 : i32 to vector<8x1xi32>
    %47 = arith.shrsi %45, %46 : vector<8x1xi32>
    %48 = arith.addi %43, %47 : vector<8x1xi32>
    %49 = vector.broadcast %48 : vector<8x1xi32> to vector<8x128xi32>
    %50 = arith.cmpi sle, %12, %49 : vector<8x128xi32>
    %51 = arith.extui %50 : vector<8x128xi1> to vector<8x128xi32>
    %cst_16 = arith.constant dense<0> : vector<8xi32>
    %52 = vector.multi_reduction <add>, %51, %cst_16 [1] : vector<8x128xi32> to vector<8xi32>
    %53 = vector.shape_cast %52 : vector<8xi32> to vector<8x1xi32>
    %54 = vector.broadcast %c97_i32 : i32 to vector<8x1xi32>
    %55 = arith.cmpi sge, %53, %54 : vector<8x1xi32>
    %c1_i32_17 = arith.constant 1 : i32
    %56 = vector.broadcast %c1_i32_17 : i32 to vector<8x1xi32>
    %57 = arith.addi %48, %56 : vector<8x1xi32>
    %58 = arith.select %55, %43, %57 : vector<8x1xi1>, vector<8x1xi32>
    %59 = arith.select %55, %48, %44 : vector<8x1xi1>, vector<8x1xi32>
    %c3_i32 = arith.constant 3 : i32
    %60 = arith.subi %59, %58 : vector<8x1xi32>
    %c1_i32_18 = arith.constant 1 : i32
    %61 = vector.broadcast %c1_i32_18 : i32 to vector<8x1xi32>
    %62 = arith.shrsi %60, %61 : vector<8x1xi32>
    %63 = arith.addi %58, %62 : vector<8x1xi32>
    %64 = vector.broadcast %63 : vector<8x1xi32> to vector<8x128xi32>
    %65 = arith.cmpi sle, %12, %64 : vector<8x128xi32>
    %66 = arith.extui %65 : vector<8x128xi1> to vector<8x128xi32>
    %cst_19 = arith.constant dense<0> : vector<8xi32>
    %67 = vector.multi_reduction <add>, %66, %cst_19 [1] : vector<8x128xi32> to vector<8xi32>
    %68 = vector.shape_cast %67 : vector<8xi32> to vector<8x1xi32>
    %69 = vector.broadcast %c97_i32 : i32 to vector<8x1xi32>
    %70 = arith.cmpi sge, %68, %69 : vector<8x1xi32>
    %c1_i32_20 = arith.constant 1 : i32
    %71 = vector.broadcast %c1_i32_20 : i32 to vector<8x1xi32>
    %72 = arith.addi %63, %71 : vector<8x1xi32>
    %73 = arith.select %70, %58, %72 : vector<8x1xi1>, vector<8x1xi32>
    %74 = arith.select %70, %63, %59 : vector<8x1xi1>, vector<8x1xi32>
    %c4_i32 = arith.constant 4 : i32
    %75 = arith.subi %74, %73 : vector<8x1xi32>
    %c1_i32_21 = arith.constant 1 : i32
    %76 = vector.broadcast %c1_i32_21 : i32 to vector<8x1xi32>
    %77 = arith.shrsi %75, %76 : vector<8x1xi32>
    %78 = arith.addi %73, %77 : vector<8x1xi32>
    %79 = vector.broadcast %78 : vector<8x1xi32> to vector<8x128xi32>
    %80 = arith.cmpi sle, %12, %79 : vector<8x128xi32>
    %81 = arith.extui %80 : vector<8x128xi1> to vector<8x128xi32>
    %cst_22 = arith.constant dense<0> : vector<8xi32>
    %82 = vector.multi_reduction <add>, %81, %cst_22 [1] : vector<8x128xi32> to vector<8xi32>
    %83 = vector.shape_cast %82 : vector<8xi32> to vector<8x1xi32>
    %84 = vector.broadcast %c97_i32 : i32 to vector<8x1xi32>
    %85 = arith.cmpi sge, %83, %84 : vector<8x1xi32>
    %c1_i32_23 = arith.constant 1 : i32
    %86 = vector.broadcast %c1_i32_23 : i32 to vector<8x1xi32>
    %87 = arith.addi %78, %86 : vector<8x1xi32>
    %88 = arith.select %85, %73, %87 : vector<8x1xi1>, vector<8x1xi32>
    %89 = arith.select %85, %78, %74 : vector<8x1xi1>, vector<8x1xi32>
    %c5_i32 = arith.constant 5 : i32
    %90 = arith.subi %89, %88 : vector<8x1xi32>
    %c1_i32_24 = arith.constant 1 : i32
    %91 = vector.broadcast %c1_i32_24 : i32 to vector<8x1xi32>
    %92 = arith.shrsi %90, %91 : vector<8x1xi32>
    %93 = arith.addi %88, %92 : vector<8x1xi32>
    %94 = vector.broadcast %93 : vector<8x1xi32> to vector<8x128xi32>
    %95 = arith.cmpi sle, %12, %94 : vector<8x128xi32>
    %96 = arith.extui %95 : vector<8x128xi1> to vector<8x128xi32>
    %cst_25 = arith.constant dense<0> : vector<8xi32>
    %97 = vector.multi_reduction <add>, %96, %cst_25 [1] : vector<8x128xi32> to vector<8xi32>
    %98 = vector.shape_cast %97 : vector<8xi32> to vector<8x1xi32>
    %99 = vector.broadcast %c97_i32 : i32 to vector<8x1xi32>
    %100 = arith.cmpi sge, %98, %99 : vector<8x1xi32>
    %c1_i32_26 = arith.constant 1 : i32
    %101 = vector.broadcast %c1_i32_26 : i32 to vector<8x1xi32>
    %102 = arith.addi %93, %101 : vector<8x1xi32>
    %103 = arith.select %100, %88, %102 : vector<8x1xi1>, vector<8x1xi32>
    %104 = arith.select %100, %93, %89 : vector<8x1xi1>, vector<8x1xi32>
    %c6_i32 = arith.constant 6 : i32
    %105 = arith.subi %104, %103 : vector<8x1xi32>
    %c1_i32_27 = arith.constant 1 : i32
    %106 = vector.broadcast %c1_i32_27 : i32 to vector<8x1xi32>
    %107 = arith.shrsi %105, %106 : vector<8x1xi32>
    %108 = arith.addi %103, %107 : vector<8x1xi32>
    %109 = vector.broadcast %108 : vector<8x1xi32> to vector<8x128xi32>
    %110 = arith.cmpi sle, %12, %109 : vector<8x128xi32>
    %111 = arith.extui %110 : vector<8x128xi1> to vector<8x128xi32>
    %cst_28 = arith.constant dense<0> : vector<8xi32>
    %112 = vector.multi_reduction <add>, %111, %cst_28 [1] : vector<8x128xi32> to vector<8xi32>
    %113 = vector.shape_cast %112 : vector<8xi32> to vector<8x1xi32>
    %114 = vector.broadcast %c97_i32 : i32 to vector<8x1xi32>
    %115 = arith.cmpi sge, %113, %114 : vector<8x1xi32>
    %c1_i32_29 = arith.constant 1 : i32
    %116 = vector.broadcast %c1_i32_29 : i32 to vector<8x1xi32>
    %117 = arith.addi %108, %116 : vector<8x1xi32>
    %118 = arith.select %115, %103, %117 : vector<8x1xi1>, vector<8x1xi32>
    %119 = arith.select %115, %108, %104 : vector<8x1xi1>, vector<8x1xi32>
    %c7_i32 = arith.constant 7 : i32
    %120 = arith.subi %119, %118 : vector<8x1xi32>
    %c1_i32_30 = arith.constant 1 : i32
    %121 = vector.broadcast %c1_i32_30 : i32 to vector<8x1xi32>
    %122 = arith.shrsi %120, %121 : vector<8x1xi32>
    %123 = arith.addi %118, %122 : vector<8x1xi32>
    %124 = vector.broadcast %123 : vector<8x1xi32> to vector<8x128xi32>
    %125 = arith.cmpi sle, %12, %124 : vector<8x128xi32>
    %126 = arith.extui %125 : vector<8x128xi1> to vector<8x128xi32>
    %cst_31 = arith.constant dense<0> : vector<8xi32>
    %127 = vector.multi_reduction <add>, %126, %cst_31 [1] : vector<8x128xi32> to vector<8xi32>
    %128 = vector.shape_cast %127 : vector<8xi32> to vector<8x1xi32>
    %129 = vector.broadcast %c97_i32 : i32 to vector<8x1xi32>
    %130 = arith.cmpi sge, %128, %129 : vector<8x1xi32>
    %c1_i32_32 = arith.constant 1 : i32
    %131 = vector.broadcast %c1_i32_32 : i32 to vector<8x1xi32>
    %132 = arith.addi %123, %131 : vector<8x1xi32>
    %133 = arith.select %130, %118, %132 : vector<8x1xi1>, vector<8x1xi32>
    %134 = arith.select %130, %123, %119 : vector<8x1xi1>, vector<8x1xi32>
    %c8_i32 = arith.constant 8 : i32
    %135 = arith.subi %134, %133 : vector<8x1xi32>
    %c1_i32_33 = arith.constant 1 : i32
    %136 = vector.broadcast %c1_i32_33 : i32 to vector<8x1xi32>
    %137 = arith.shrsi %135, %136 : vector<8x1xi32>
    %138 = arith.addi %133, %137 : vector<8x1xi32>
    %139 = vector.broadcast %138 : vector<8x1xi32> to vector<8x128xi32>
    %140 = arith.cmpi sle, %12, %139 : vector<8x128xi32>
    %141 = arith.extui %140 : vector<8x128xi1> to vector<8x128xi32>
    %cst_34 = arith.constant dense<0> : vector<8xi32>
    %142 = vector.multi_reduction <add>, %141, %cst_34 [1] : vector<8x128xi32> to vector<8xi32>
    %143 = vector.shape_cast %142 : vector<8xi32> to vector<8x1xi32>
    %144 = vector.broadcast %c97_i32 : i32 to vector<8x1xi32>
    %145 = arith.cmpi sge, %143, %144 : vector<8x1xi32>
    %c1_i32_35 = arith.constant 1 : i32
    %146 = vector.broadcast %c1_i32_35 : i32 to vector<8x1xi32>
    %147 = arith.addi %138, %146 : vector<8x1xi32>
    %148 = arith.select %145, %133, %147 : vector<8x1xi1>, vector<8x1xi32>
    %149 = arith.select %145, %138, %134 : vector<8x1xi1>, vector<8x1xi32>
    %c9_i32 = arith.constant 9 : i32
    %150 = arith.subi %149, %148 : vector<8x1xi32>
    %c1_i32_36 = arith.constant 1 : i32
    %151 = vector.broadcast %c1_i32_36 : i32 to vector<8x1xi32>
    %152 = arith.shrsi %150, %151 : vector<8x1xi32>
    %153 = arith.addi %148, %152 : vector<8x1xi32>
    %154 = vector.broadcast %153 : vector<8x1xi32> to vector<8x128xi32>
    %155 = arith.cmpi sle, %12, %154 : vector<8x128xi32>
    %156 = arith.extui %155 : vector<8x128xi1> to vector<8x128xi32>
    %cst_37 = arith.constant dense<0> : vector<8xi32>
    %157 = vector.multi_reduction <add>, %156, %cst_37 [1] : vector<8x128xi32> to vector<8xi32>
    %158 = vector.shape_cast %157 : vector<8xi32> to vector<8x1xi32>
    %159 = vector.broadcast %c97_i32 : i32 to vector<8x1xi32>
    %160 = arith.cmpi sge, %158, %159 : vector<8x1xi32>
    %c1_i32_38 = arith.constant 1 : i32
    %161 = vector.broadcast %c1_i32_38 : i32 to vector<8x1xi32>
    %162 = arith.addi %153, %161 : vector<8x1xi32>
    %163 = arith.select %160, %148, %162 : vector<8x1xi1>, vector<8x1xi32>
    %164 = arith.select %160, %153, %149 : vector<8x1xi1>, vector<8x1xi32>
    %c10_i32 = arith.constant 10 : i32
    %165 = arith.subi %164, %163 : vector<8x1xi32>
    %c1_i32_39 = arith.constant 1 : i32
    %166 = vector.broadcast %c1_i32_39 : i32 to vector<8x1xi32>
    %167 = arith.shrsi %165, %166 : vector<8x1xi32>
    %168 = arith.addi %163, %167 : vector<8x1xi32>
    %169 = vector.broadcast %168 : vector<8x1xi32> to vector<8x128xi32>
    %170 = arith.cmpi sle, %12, %169 : vector<8x128xi32>
    %171 = arith.extui %170 : vector<8x128xi1> to vector<8x128xi32>
    %cst_40 = arith.constant dense<0> : vector<8xi32>
    %172 = vector.multi_reduction <add>, %171, %cst_40 [1] : vector<8x128xi32> to vector<8xi32>
    %173 = vector.shape_cast %172 : vector<8xi32> to vector<8x1xi32>
    %174 = vector.broadcast %c97_i32 : i32 to vector<8x1xi32>
    %175 = arith.cmpi sge, %173, %174 : vector<8x1xi32>
    %c1_i32_41 = arith.constant 1 : i32
    %176 = vector.broadcast %c1_i32_41 : i32 to vector<8x1xi32>
    %177 = arith.addi %168, %176 : vector<8x1xi32>
    %178 = arith.select %175, %163, %177 : vector<8x1xi1>, vector<8x1xi32>
    %179 = arith.select %175, %168, %164 : vector<8x1xi1>, vector<8x1xi32>
    %c11_i32 = arith.constant 11 : i32
    %180 = arith.subi %179, %178 : vector<8x1xi32>
    %c1_i32_42 = arith.constant 1 : i32
    %181 = vector.broadcast %c1_i32_42 : i32 to vector<8x1xi32>
    %182 = arith.shrsi %180, %181 : vector<8x1xi32>
    %183 = arith.addi %178, %182 : vector<8x1xi32>
    %184 = vector.broadcast %183 : vector<8x1xi32> to vector<8x128xi32>
    %185 = arith.cmpi sle, %12, %184 : vector<8x128xi32>
    %186 = arith.extui %185 : vector<8x128xi1> to vector<8x128xi32>
    %cst_43 = arith.constant dense<0> : vector<8xi32>
    %187 = vector.multi_reduction <add>, %186, %cst_43 [1] : vector<8x128xi32> to vector<8xi32>
    %188 = vector.shape_cast %187 : vector<8xi32> to vector<8x1xi32>
    %189 = vector.broadcast %c97_i32 : i32 to vector<8x1xi32>
    %190 = arith.cmpi sge, %188, %189 : vector<8x1xi32>
    %c1_i32_44 = arith.constant 1 : i32
    %191 = vector.broadcast %c1_i32_44 : i32 to vector<8x1xi32>
    %192 = arith.addi %183, %191 : vector<8x1xi32>
    %193 = arith.select %190, %178, %192 : vector<8x1xi1>, vector<8x1xi32>
    %194 = arith.select %190, %183, %179 : vector<8x1xi1>, vector<8x1xi32>
    %c12_i32 = arith.constant 12 : i32
    %195 = arith.subi %194, %193 : vector<8x1xi32>
    %c1_i32_45 = arith.constant 1 : i32
    %196 = vector.broadcast %c1_i32_45 : i32 to vector<8x1xi32>
    %197 = arith.shrsi %195, %196 : vector<8x1xi32>
    %198 = arith.addi %193, %197 : vector<8x1xi32>
    %199 = vector.broadcast %198 : vector<8x1xi32> to vector<8x128xi32>
    %200 = arith.cmpi sle, %12, %199 : vector<8x128xi32>
    %201 = arith.extui %200 : vector<8x128xi1> to vector<8x128xi32>
    %cst_46 = arith.constant dense<0> : vector<8xi32>
    %202 = vector.multi_reduction <add>, %201, %cst_46 [1] : vector<8x128xi32> to vector<8xi32>
    %203 = vector.shape_cast %202 : vector<8xi32> to vector<8x1xi32>
    %204 = vector.broadcast %c97_i32 : i32 to vector<8x1xi32>
    %205 = arith.cmpi sge, %203, %204 : vector<8x1xi32>
    %c1_i32_47 = arith.constant 1 : i32
    %206 = vector.broadcast %c1_i32_47 : i32 to vector<8x1xi32>
    %207 = arith.addi %198, %206 : vector<8x1xi32>
    %208 = arith.select %205, %193, %207 : vector<8x1xi1>, vector<8x1xi32>
    %209 = arith.select %205, %198, %194 : vector<8x1xi1>, vector<8x1xi32>
    %c13_i32 = arith.constant 13 : i32
    %210 = arith.subi %209, %208 : vector<8x1xi32>
    %c1_i32_48 = arith.constant 1 : i32
    %211 = vector.broadcast %c1_i32_48 : i32 to vector<8x1xi32>
    %212 = arith.shrsi %210, %211 : vector<8x1xi32>
    %213 = arith.addi %208, %212 : vector<8x1xi32>
    %214 = vector.broadcast %213 : vector<8x1xi32> to vector<8x128xi32>
    %215 = arith.cmpi sle, %12, %214 : vector<8x128xi32>
    %216 = arith.extui %215 : vector<8x128xi1> to vector<8x128xi32>
    %cst_49 = arith.constant dense<0> : vector<8xi32>
    %217 = vector.multi_reduction <add>, %216, %cst_49 [1] : vector<8x128xi32> to vector<8xi32>
    %218 = vector.shape_cast %217 : vector<8xi32> to vector<8x1xi32>
    %219 = vector.broadcast %c97_i32 : i32 to vector<8x1xi32>
    %220 = arith.cmpi sge, %218, %219 : vector<8x1xi32>
    %c1_i32_50 = arith.constant 1 : i32
    %221 = vector.broadcast %c1_i32_50 : i32 to vector<8x1xi32>
    %222 = arith.addi %213, %221 : vector<8x1xi32>
    %223 = arith.select %220, %208, %222 : vector<8x1xi1>, vector<8x1xi32>
    %224 = arith.select %220, %213, %209 : vector<8x1xi1>, vector<8x1xi32>
    %c14_i32 = arith.constant 14 : i32
    %225 = arith.subi %224, %223 : vector<8x1xi32>
    %c1_i32_51 = arith.constant 1 : i32
    %226 = vector.broadcast %c1_i32_51 : i32 to vector<8x1xi32>
    %227 = arith.shrsi %225, %226 : vector<8x1xi32>
    %228 = arith.addi %223, %227 : vector<8x1xi32>
    %229 = vector.broadcast %228 : vector<8x1xi32> to vector<8x128xi32>
    %230 = arith.cmpi sle, %12, %229 : vector<8x128xi32>
    %231 = arith.extui %230 : vector<8x128xi1> to vector<8x128xi32>
    %cst_52 = arith.constant dense<0> : vector<8xi32>
    %232 = vector.multi_reduction <add>, %231, %cst_52 [1] : vector<8x128xi32> to vector<8xi32>
    %233 = vector.shape_cast %232 : vector<8xi32> to vector<8x1xi32>
    %234 = vector.broadcast %c97_i32 : i32 to vector<8x1xi32>
    %235 = arith.cmpi sge, %233, %234 : vector<8x1xi32>
    %c1_i32_53 = arith.constant 1 : i32
    %236 = vector.broadcast %c1_i32_53 : i32 to vector<8x1xi32>
    %237 = arith.addi %228, %236 : vector<8x1xi32>
    %238 = arith.select %235, %223, %237 : vector<8x1xi1>, vector<8x1xi32>
    %239 = arith.select %235, %228, %224 : vector<8x1xi1>, vector<8x1xi32>
    %c15_i32 = arith.constant 15 : i32
    %240 = arith.subi %239, %238 : vector<8x1xi32>
    %c1_i32_54 = arith.constant 1 : i32
    %241 = vector.broadcast %c1_i32_54 : i32 to vector<8x1xi32>
    %242 = arith.shrsi %240, %241 : vector<8x1xi32>
    %243 = arith.addi %238, %242 : vector<8x1xi32>
    %244 = vector.broadcast %243 : vector<8x1xi32> to vector<8x128xi32>
    %245 = arith.cmpi sle, %12, %244 : vector<8x128xi32>
    %246 = arith.extui %245 : vector<8x128xi1> to vector<8x128xi32>
    %cst_55 = arith.constant dense<0> : vector<8xi32>
    %247 = vector.multi_reduction <add>, %246, %cst_55 [1] : vector<8x128xi32> to vector<8xi32>
    %248 = vector.shape_cast %247 : vector<8xi32> to vector<8x1xi32>
    %249 = vector.broadcast %c97_i32 : i32 to vector<8x1xi32>
    %250 = arith.cmpi sge, %248, %249 : vector<8x1xi32>
    %c1_i32_56 = arith.constant 1 : i32
    %251 = vector.broadcast %c1_i32_56 : i32 to vector<8x1xi32>
    %252 = arith.addi %243, %251 : vector<8x1xi32>
    %253 = arith.select %250, %238, %252 : vector<8x1xi1>, vector<8x1xi32>
    %254 = arith.select %250, %243, %239 : vector<8x1xi1>, vector<8x1xi32>
    %c16_i32 = arith.constant 16 : i32
    %255 = arith.subi %254, %253 : vector<8x1xi32>
    %c1_i32_57 = arith.constant 1 : i32
    %256 = vector.broadcast %c1_i32_57 : i32 to vector<8x1xi32>
    %257 = arith.shrsi %255, %256 : vector<8x1xi32>
    %258 = arith.addi %253, %257 : vector<8x1xi32>
    %259 = vector.broadcast %258 : vector<8x1xi32> to vector<8x128xi32>
    %260 = arith.cmpi sle, %12, %259 : vector<8x128xi32>
    %261 = arith.extui %260 : vector<8x128xi1> to vector<8x128xi32>
    %cst_58 = arith.constant dense<0> : vector<8xi32>
    %262 = vector.multi_reduction <add>, %261, %cst_58 [1] : vector<8x128xi32> to vector<8xi32>
    %263 = vector.shape_cast %262 : vector<8xi32> to vector<8x1xi32>
    %264 = vector.broadcast %c97_i32 : i32 to vector<8x1xi32>
    %265 = arith.cmpi sge, %263, %264 : vector<8x1xi32>
    %c1_i32_59 = arith.constant 1 : i32
    %266 = vector.broadcast %c1_i32_59 : i32 to vector<8x1xi32>
    %267 = arith.addi %258, %266 : vector<8x1xi32>
    %268 = arith.select %265, %253, %267 : vector<8x1xi1>, vector<8x1xi32>
    %269 = arith.select %265, %258, %254 : vector<8x1xi1>, vector<8x1xi32>
    %c17_i32 = arith.constant 17 : i32
    %270 = arith.subi %269, %268 : vector<8x1xi32>
    %c1_i32_60 = arith.constant 1 : i32
    %271 = vector.broadcast %c1_i32_60 : i32 to vector<8x1xi32>
    %272 = arith.shrsi %270, %271 : vector<8x1xi32>
    %273 = arith.addi %268, %272 : vector<8x1xi32>
    %274 = vector.broadcast %273 : vector<8x1xi32> to vector<8x128xi32>
    %275 = arith.cmpi sle, %12, %274 : vector<8x128xi32>
    %276 = arith.extui %275 : vector<8x128xi1> to vector<8x128xi32>
    %cst_61 = arith.constant dense<0> : vector<8xi32>
    %277 = vector.multi_reduction <add>, %276, %cst_61 [1] : vector<8x128xi32> to vector<8xi32>
    %278 = vector.shape_cast %277 : vector<8xi32> to vector<8x1xi32>
    %279 = vector.broadcast %c97_i32 : i32 to vector<8x1xi32>
    %280 = arith.cmpi sge, %278, %279 : vector<8x1xi32>
    %c1_i32_62 = arith.constant 1 : i32
    %281 = vector.broadcast %c1_i32_62 : i32 to vector<8x1xi32>
    %282 = arith.addi %273, %281 : vector<8x1xi32>
    %283 = arith.select %280, %268, %282 : vector<8x1xi1>, vector<8x1xi32>
    %284 = arith.select %280, %273, %269 : vector<8x1xi1>, vector<8x1xi32>
    %c18_i32 = arith.constant 18 : i32
    %285 = arith.subi %284, %283 : vector<8x1xi32>
    %c1_i32_63 = arith.constant 1 : i32
    %286 = vector.broadcast %c1_i32_63 : i32 to vector<8x1xi32>
    %287 = arith.shrsi %285, %286 : vector<8x1xi32>
    %288 = arith.addi %283, %287 : vector<8x1xi32>
    %289 = vector.broadcast %288 : vector<8x1xi32> to vector<8x128xi32>
    %290 = arith.cmpi sle, %12, %289 : vector<8x128xi32>
    %291 = arith.extui %290 : vector<8x128xi1> to vector<8x128xi32>
    %cst_64 = arith.constant dense<0> : vector<8xi32>
    %292 = vector.multi_reduction <add>, %291, %cst_64 [1] : vector<8x128xi32> to vector<8xi32>
    %293 = vector.shape_cast %292 : vector<8xi32> to vector<8x1xi32>
    %294 = vector.broadcast %c97_i32 : i32 to vector<8x1xi32>
    %295 = arith.cmpi sge, %293, %294 : vector<8x1xi32>
    %c1_i32_65 = arith.constant 1 : i32
    %296 = vector.broadcast %c1_i32_65 : i32 to vector<8x1xi32>
    %297 = arith.addi %288, %296 : vector<8x1xi32>
    %298 = arith.select %295, %283, %297 : vector<8x1xi1>, vector<8x1xi32>
    %299 = arith.select %295, %288, %284 : vector<8x1xi1>, vector<8x1xi32>
    %c19_i32 = arith.constant 19 : i32
    %300 = arith.subi %299, %298 : vector<8x1xi32>
    %c1_i32_66 = arith.constant 1 : i32
    %301 = vector.broadcast %c1_i32_66 : i32 to vector<8x1xi32>
    %302 = arith.shrsi %300, %301 : vector<8x1xi32>
    %303 = arith.addi %298, %302 : vector<8x1xi32>
    %304 = vector.broadcast %303 : vector<8x1xi32> to vector<8x128xi32>
    %305 = arith.cmpi sle, %12, %304 : vector<8x128xi32>
    %306 = arith.extui %305 : vector<8x128xi1> to vector<8x128xi32>
    %cst_67 = arith.constant dense<0> : vector<8xi32>
    %307 = vector.multi_reduction <add>, %306, %cst_67 [1] : vector<8x128xi32> to vector<8xi32>
    %308 = vector.shape_cast %307 : vector<8xi32> to vector<8x1xi32>
    %309 = vector.broadcast %c97_i32 : i32 to vector<8x1xi32>
    %310 = arith.cmpi sge, %308, %309 : vector<8x1xi32>
    %c1_i32_68 = arith.constant 1 : i32
    %311 = vector.broadcast %c1_i32_68 : i32 to vector<8x1xi32>
    %312 = arith.addi %303, %311 : vector<8x1xi32>
    %313 = arith.select %310, %298, %312 : vector<8x1xi1>, vector<8x1xi32>
    %314 = arith.select %310, %303, %299 : vector<8x1xi1>, vector<8x1xi32>
    %c20_i32 = arith.constant 20 : i32
    %315 = arith.subi %314, %313 : vector<8x1xi32>
    %c1_i32_69 = arith.constant 1 : i32
    %316 = vector.broadcast %c1_i32_69 : i32 to vector<8x1xi32>
    %317 = arith.shrsi %315, %316 : vector<8x1xi32>
    %318 = arith.addi %313, %317 : vector<8x1xi32>
    %319 = vector.broadcast %318 : vector<8x1xi32> to vector<8x128xi32>
    %320 = arith.cmpi sle, %12, %319 : vector<8x128xi32>
    %321 = arith.extui %320 : vector<8x128xi1> to vector<8x128xi32>
    %cst_70 = arith.constant dense<0> : vector<8xi32>
    %322 = vector.multi_reduction <add>, %321, %cst_70 [1] : vector<8x128xi32> to vector<8xi32>
    %323 = vector.shape_cast %322 : vector<8xi32> to vector<8x1xi32>
    %324 = vector.broadcast %c97_i32 : i32 to vector<8x1xi32>
    %325 = arith.cmpi sge, %323, %324 : vector<8x1xi32>
    %c1_i32_71 = arith.constant 1 : i32
    %326 = vector.broadcast %c1_i32_71 : i32 to vector<8x1xi32>
    %327 = arith.addi %318, %326 : vector<8x1xi32>
    %328 = arith.select %325, %313, %327 : vector<8x1xi1>, vector<8x1xi32>
    %329 = arith.select %325, %318, %314 : vector<8x1xi1>, vector<8x1xi32>
    %c21_i32 = arith.constant 21 : i32
    %330 = arith.subi %329, %328 : vector<8x1xi32>
    %c1_i32_72 = arith.constant 1 : i32
    %331 = vector.broadcast %c1_i32_72 : i32 to vector<8x1xi32>
    %332 = arith.shrsi %330, %331 : vector<8x1xi32>
    %333 = arith.addi %328, %332 : vector<8x1xi32>
    %334 = vector.broadcast %333 : vector<8x1xi32> to vector<8x128xi32>
    %335 = arith.cmpi sle, %12, %334 : vector<8x128xi32>
    %336 = arith.extui %335 : vector<8x128xi1> to vector<8x128xi32>
    %cst_73 = arith.constant dense<0> : vector<8xi32>
    %337 = vector.multi_reduction <add>, %336, %cst_73 [1] : vector<8x128xi32> to vector<8xi32>
    %338 = vector.shape_cast %337 : vector<8xi32> to vector<8x1xi32>
    %339 = vector.broadcast %c97_i32 : i32 to vector<8x1xi32>
    %340 = arith.cmpi sge, %338, %339 : vector<8x1xi32>
    %c1_i32_74 = arith.constant 1 : i32
    %341 = vector.broadcast %c1_i32_74 : i32 to vector<8x1xi32>
    %342 = arith.addi %333, %341 : vector<8x1xi32>
    %343 = arith.select %340, %328, %342 : vector<8x1xi1>, vector<8x1xi32>
    %344 = arith.select %340, %333, %329 : vector<8x1xi1>, vector<8x1xi32>
    %c22_i32 = arith.constant 22 : i32
    %345 = arith.subi %344, %343 : vector<8x1xi32>
    %c1_i32_75 = arith.constant 1 : i32
    %346 = vector.broadcast %c1_i32_75 : i32 to vector<8x1xi32>
    %347 = arith.shrsi %345, %346 : vector<8x1xi32>
    %348 = arith.addi %343, %347 : vector<8x1xi32>
    %349 = vector.broadcast %348 : vector<8x1xi32> to vector<8x128xi32>
    %350 = arith.cmpi sle, %12, %349 : vector<8x128xi32>
    %351 = arith.extui %350 : vector<8x128xi1> to vector<8x128xi32>
    %cst_76 = arith.constant dense<0> : vector<8xi32>
    %352 = vector.multi_reduction <add>, %351, %cst_76 [1] : vector<8x128xi32> to vector<8xi32>
    %353 = vector.shape_cast %352 : vector<8xi32> to vector<8x1xi32>
    %354 = vector.broadcast %c97_i32 : i32 to vector<8x1xi32>
    %355 = arith.cmpi sge, %353, %354 : vector<8x1xi32>
    %c1_i32_77 = arith.constant 1 : i32
    %356 = vector.broadcast %c1_i32_77 : i32 to vector<8x1xi32>
    %357 = arith.addi %348, %356 : vector<8x1xi32>
    %358 = arith.select %355, %343, %357 : vector<8x1xi1>, vector<8x1xi32>
    %359 = arith.select %355, %348, %344 : vector<8x1xi1>, vector<8x1xi32>
    %c23_i32 = arith.constant 23 : i32
    %360 = arith.subi %359, %358 : vector<8x1xi32>
    %c1_i32_78 = arith.constant 1 : i32
    %361 = vector.broadcast %c1_i32_78 : i32 to vector<8x1xi32>
    %362 = arith.shrsi %360, %361 : vector<8x1xi32>
    %363 = arith.addi %358, %362 : vector<8x1xi32>
    %364 = vector.broadcast %363 : vector<8x1xi32> to vector<8x128xi32>
    %365 = arith.cmpi sle, %12, %364 : vector<8x128xi32>
    %366 = arith.extui %365 : vector<8x128xi1> to vector<8x128xi32>
    %cst_79 = arith.constant dense<0> : vector<8xi32>
    %367 = vector.multi_reduction <add>, %366, %cst_79 [1] : vector<8x128xi32> to vector<8xi32>
    %368 = vector.shape_cast %367 : vector<8xi32> to vector<8x1xi32>
    %369 = vector.broadcast %c97_i32 : i32 to vector<8x1xi32>
    %370 = arith.cmpi sge, %368, %369 : vector<8x1xi32>
    %c1_i32_80 = arith.constant 1 : i32
    %371 = vector.broadcast %c1_i32_80 : i32 to vector<8x1xi32>
    %372 = arith.addi %363, %371 : vector<8x1xi32>
    %373 = arith.select %370, %358, %372 : vector<8x1xi1>, vector<8x1xi32>
    %374 = arith.select %370, %363, %359 : vector<8x1xi1>, vector<8x1xi32>
    %c24_i32 = arith.constant 24 : i32
    %375 = arith.subi %374, %373 : vector<8x1xi32>
    %c1_i32_81 = arith.constant 1 : i32
    %376 = vector.broadcast %c1_i32_81 : i32 to vector<8x1xi32>
    %377 = arith.shrsi %375, %376 : vector<8x1xi32>
    %378 = arith.addi %373, %377 : vector<8x1xi32>
    %379 = vector.broadcast %378 : vector<8x1xi32> to vector<8x128xi32>
    %380 = arith.cmpi sle, %12, %379 : vector<8x128xi32>
    %381 = arith.extui %380 : vector<8x128xi1> to vector<8x128xi32>
    %cst_82 = arith.constant dense<0> : vector<8xi32>
    %382 = vector.multi_reduction <add>, %381, %cst_82 [1] : vector<8x128xi32> to vector<8xi32>
    %383 = vector.shape_cast %382 : vector<8xi32> to vector<8x1xi32>
    %384 = vector.broadcast %c97_i32 : i32 to vector<8x1xi32>
    %385 = arith.cmpi sge, %383, %384 : vector<8x1xi32>
    %c1_i32_83 = arith.constant 1 : i32
    %386 = vector.broadcast %c1_i32_83 : i32 to vector<8x1xi32>
    %387 = arith.addi %378, %386 : vector<8x1xi32>
    %388 = arith.select %385, %373, %387 : vector<8x1xi1>, vector<8x1xi32>
    %389 = arith.select %385, %378, %374 : vector<8x1xi1>, vector<8x1xi32>
    %c25_i32 = arith.constant 25 : i32
    %390 = arith.subi %389, %388 : vector<8x1xi32>
    %c1_i32_84 = arith.constant 1 : i32
    %391 = vector.broadcast %c1_i32_84 : i32 to vector<8x1xi32>
    %392 = arith.shrsi %390, %391 : vector<8x1xi32>
    %393 = arith.addi %388, %392 : vector<8x1xi32>
    %394 = vector.broadcast %393 : vector<8x1xi32> to vector<8x128xi32>
    %395 = arith.cmpi sle, %12, %394 : vector<8x128xi32>
    %396 = arith.extui %395 : vector<8x128xi1> to vector<8x128xi32>
    %cst_85 = arith.constant dense<0> : vector<8xi32>
    %397 = vector.multi_reduction <add>, %396, %cst_85 [1] : vector<8x128xi32> to vector<8xi32>
    %398 = vector.shape_cast %397 : vector<8xi32> to vector<8x1xi32>
    %399 = vector.broadcast %c97_i32 : i32 to vector<8x1xi32>
    %400 = arith.cmpi sge, %398, %399 : vector<8x1xi32>
    %c1_i32_86 = arith.constant 1 : i32
    %401 = vector.broadcast %c1_i32_86 : i32 to vector<8x1xi32>
    %402 = arith.addi %393, %401 : vector<8x1xi32>
    %403 = arith.select %400, %388, %402 : vector<8x1xi1>, vector<8x1xi32>
    %404 = arith.select %400, %393, %389 : vector<8x1xi1>, vector<8x1xi32>
    %c26_i32 = arith.constant 26 : i32
    %405 = arith.subi %404, %403 : vector<8x1xi32>
    %c1_i32_87 = arith.constant 1 : i32
    %406 = vector.broadcast %c1_i32_87 : i32 to vector<8x1xi32>
    %407 = arith.shrsi %405, %406 : vector<8x1xi32>
    %408 = arith.addi %403, %407 : vector<8x1xi32>
    %409 = vector.broadcast %408 : vector<8x1xi32> to vector<8x128xi32>
    %410 = arith.cmpi sle, %12, %409 : vector<8x128xi32>
    %411 = arith.extui %410 : vector<8x128xi1> to vector<8x128xi32>
    %cst_88 = arith.constant dense<0> : vector<8xi32>
    %412 = vector.multi_reduction <add>, %411, %cst_88 [1] : vector<8x128xi32> to vector<8xi32>
    %413 = vector.shape_cast %412 : vector<8xi32> to vector<8x1xi32>
    %414 = vector.broadcast %c97_i32 : i32 to vector<8x1xi32>
    %415 = arith.cmpi sge, %413, %414 : vector<8x1xi32>
    %c1_i32_89 = arith.constant 1 : i32
    %416 = vector.broadcast %c1_i32_89 : i32 to vector<8x1xi32>
    %417 = arith.addi %408, %416 : vector<8x1xi32>
    %418 = arith.select %415, %403, %417 : vector<8x1xi1>, vector<8x1xi32>
    %419 = arith.select %415, %408, %404 : vector<8x1xi1>, vector<8x1xi32>
    %c27_i32 = arith.constant 27 : i32
    %420 = arith.subi %419, %418 : vector<8x1xi32>
    %c1_i32_90 = arith.constant 1 : i32
    %421 = vector.broadcast %c1_i32_90 : i32 to vector<8x1xi32>
    %422 = arith.shrsi %420, %421 : vector<8x1xi32>
    %423 = arith.addi %418, %422 : vector<8x1xi32>
    %424 = vector.broadcast %423 : vector<8x1xi32> to vector<8x128xi32>
    %425 = arith.cmpi sle, %12, %424 : vector<8x128xi32>
    %426 = arith.extui %425 : vector<8x128xi1> to vector<8x128xi32>
    %cst_91 = arith.constant dense<0> : vector<8xi32>
    %427 = vector.multi_reduction <add>, %426, %cst_91 [1] : vector<8x128xi32> to vector<8xi32>
    %428 = vector.shape_cast %427 : vector<8xi32> to vector<8x1xi32>
    %429 = vector.broadcast %c97_i32 : i32 to vector<8x1xi32>
    %430 = arith.cmpi sge, %428, %429 : vector<8x1xi32>
    %c1_i32_92 = arith.constant 1 : i32
    %431 = vector.broadcast %c1_i32_92 : i32 to vector<8x1xi32>
    %432 = arith.addi %423, %431 : vector<8x1xi32>
    %433 = arith.select %430, %418, %432 : vector<8x1xi1>, vector<8x1xi32>
    %434 = arith.select %430, %423, %419 : vector<8x1xi1>, vector<8x1xi32>
    %c28_i32 = arith.constant 28 : i32
    %435 = arith.subi %434, %433 : vector<8x1xi32>
    %c1_i32_93 = arith.constant 1 : i32
    %436 = vector.broadcast %c1_i32_93 : i32 to vector<8x1xi32>
    %437 = arith.shrsi %435, %436 : vector<8x1xi32>
    %438 = arith.addi %433, %437 : vector<8x1xi32>
    %439 = vector.broadcast %438 : vector<8x1xi32> to vector<8x128xi32>
    %440 = arith.cmpi sle, %12, %439 : vector<8x128xi32>
    %441 = arith.extui %440 : vector<8x128xi1> to vector<8x128xi32>
    %cst_94 = arith.constant dense<0> : vector<8xi32>
    %442 = vector.multi_reduction <add>, %441, %cst_94 [1] : vector<8x128xi32> to vector<8xi32>
    %443 = vector.shape_cast %442 : vector<8xi32> to vector<8x1xi32>
    %444 = vector.broadcast %c97_i32 : i32 to vector<8x1xi32>
    %445 = arith.cmpi sge, %443, %444 : vector<8x1xi32>
    %c1_i32_95 = arith.constant 1 : i32
    %446 = vector.broadcast %c1_i32_95 : i32 to vector<8x1xi32>
    %447 = arith.addi %438, %446 : vector<8x1xi32>
    %448 = arith.select %445, %433, %447 : vector<8x1xi1>, vector<8x1xi32>
    %449 = arith.select %445, %438, %434 : vector<8x1xi1>, vector<8x1xi32>
    %c29_i32 = arith.constant 29 : i32
    %450 = arith.subi %449, %448 : vector<8x1xi32>
    %c1_i32_96 = arith.constant 1 : i32
    %451 = vector.broadcast %c1_i32_96 : i32 to vector<8x1xi32>
    %452 = arith.shrsi %450, %451 : vector<8x1xi32>
    %453 = arith.addi %448, %452 : vector<8x1xi32>
    %454 = vector.broadcast %453 : vector<8x1xi32> to vector<8x128xi32>
    %455 = arith.cmpi sle, %12, %454 : vector<8x128xi32>
    %456 = arith.extui %455 : vector<8x128xi1> to vector<8x128xi32>
    %cst_97 = arith.constant dense<0> : vector<8xi32>
    %457 = vector.multi_reduction <add>, %456, %cst_97 [1] : vector<8x128xi32> to vector<8xi32>
    %458 = vector.shape_cast %457 : vector<8xi32> to vector<8x1xi32>
    %459 = vector.broadcast %c97_i32 : i32 to vector<8x1xi32>
    %460 = arith.cmpi sge, %458, %459 : vector<8x1xi32>
    %c1_i32_98 = arith.constant 1 : i32
    %461 = vector.broadcast %c1_i32_98 : i32 to vector<8x1xi32>
    %462 = arith.addi %453, %461 : vector<8x1xi32>
    %463 = arith.select %460, %448, %462 : vector<8x1xi1>, vector<8x1xi32>
    %464 = arith.select %460, %453, %449 : vector<8x1xi1>, vector<8x1xi32>
    %c30_i32 = arith.constant 30 : i32
    %465 = arith.subi %464, %463 : vector<8x1xi32>
    %c1_i32_99 = arith.constant 1 : i32
    %466 = vector.broadcast %c1_i32_99 : i32 to vector<8x1xi32>
    %467 = arith.shrsi %465, %466 : vector<8x1xi32>
    %468 = arith.addi %463, %467 : vector<8x1xi32>
    %469 = vector.broadcast %468 : vector<8x1xi32> to vector<8x128xi32>
    %470 = arith.cmpi sle, %12, %469 : vector<8x128xi32>
    %471 = arith.extui %470 : vector<8x128xi1> to vector<8x128xi32>
    %cst_100 = arith.constant dense<0> : vector<8xi32>
    %472 = vector.multi_reduction <add>, %471, %cst_100 [1] : vector<8x128xi32> to vector<8xi32>
    %473 = vector.shape_cast %472 : vector<8xi32> to vector<8x1xi32>
    %474 = vector.broadcast %c97_i32 : i32 to vector<8x1xi32>
    %475 = arith.cmpi sge, %473, %474 : vector<8x1xi32>
    %c1_i32_101 = arith.constant 1 : i32
    %476 = vector.broadcast %c1_i32_101 : i32 to vector<8x1xi32>
    %477 = arith.addi %468, %476 : vector<8x1xi32>
    %478 = arith.select %475, %463, %477 : vector<8x1xi1>, vector<8x1xi32>
    %479 = arith.select %475, %468, %464 : vector<8x1xi1>, vector<8x1xi32>
    %480 = tpu.bitcast %478 : vector<8x1xi32> -> vector<8x1xf32>
    %481 = vector.broadcast %480 : vector<8x1xf32> to vector<8x128xf32>
    %482 = arith.cmpf olt, %11, %481 : vector<8x128xf32>
    %483 = arith.extui %482 : vector<8x128xi1> to vector<8x128xi32>
    %cst_102 = arith.constant dense<0> : vector<8xi32>
    %484 = vector.multi_reduction <add>, %483, %cst_102 [1] : vector<8x128xi32> to vector<8xi32>
    %485 = vector.shape_cast %484 : vector<8xi32> to vector<8x1xi32>
    %cst_103 = arith.constant 0.000000e+00 : f32
    %486 = vector.broadcast %cst_103 : f32 to vector<8x128xf32>
    %487 = arith.select %482, %11, %486 : vector<8x128xi1>, vector<8x128xf32>
    %cst_104 = arith.constant dense<0xFF800000> : vector<8xf32>
    %488 = vector.multi_reduction <maximumf>, %487, %cst_104 [1] : vector<8x128xf32> to vector<8xf32>
    %489 = vector.shape_cast %488 : vector<8xf32> to vector<8x1xf32>
    %c96_i32 = arith.constant 96 : i32
    %490 = vector.broadcast %c96_i32 : i32 to vector<8x1xi32>
    %491 = arith.cmpi sge, %485, %490 : vector<8x1xi32>
    %492 = arith.select %491, %489, %480 : vector<8x1xi1>, vector<8x1xf32>
    %493 = arith.addf %492, %480 : vector<8x1xf32>
    %cst_105 = arith.constant 5.000000e-01 : f32
    %494 = vector.broadcast %cst_105 : f32 to vector<8x1xf32>
    %495 = arith.mulf %494, %493 : vector<8x1xf32>
    %cst_106 = arith.constant 9.99999991E-38 : f32
    %496 = vector.broadcast %cst_106 : f32 to vector<8x1xf32>
    %497 = arith.maximumf %495, %496 : vector<8x1xf32>
    %498 = tpu.reciprocal %497 {approx = true} : vector<8x1xf32> -> vector<8x1xf32>
    %499 = arith.mulf %497, %498 : vector<8x1xf32>
    %cst_107 = arith.constant 2.000000e+00 : f32
    %500 = vector.broadcast %cst_107 : f32 to vector<8x1xf32>
    %501 = arith.subf %500, %499 : vector<8x1xf32>
    %502 = arith.mulf %498, %501 : vector<8x1xf32>
    %503 = vector.broadcast %502 : vector<8x1xf32> to vector<8x128xf32>
    %504 = arith.mulf %11, %503 : vector<8x128xf32>
    %c0_108 = arith.constant 0 : index
    %c0_109 = arith.constant 0 : index
    %505 = vector.load %arg6[%c0_108, %c0_109] : memref<8x128xf32, #tpu.memory_space<vmem>>, vector<8x128xf32>
    tpu.vector_store %arg6[%c0_108, %c0_109], %504 {strides = array<i32>} : memref<8x128xf32, #tpu.memory_space<vmem>>, vector<8x128xf32>,
    return
  }
  func.func @transform_0(%arg0: i32, %arg1: i32) -> (i32, i32) {
    %c0_i32 = arith.constant 0 : i32
    return %arg0, %arg1 : i32, i32
  }
  func.func @transform_1(%arg0: i32, %arg1: i32) -> (i32, i32) {
    %c0_i32 = arith.constant 0 : i32
    return %arg0, %arg1 : i32, i32
  }
  func.func @transform_2(%arg0: i32, %arg1: i32) -> (i32, i32) {
    %c0_i32 = arith.constant 0 : i32
    %c0_i32_0 = arith.constant 0 : i32
    return %arg1, %c0_i32 : i32, i32
  }
  func.func @transform_3(%arg0: i32, %arg1: i32) -> (i32, i32) {
    %c0_i32 = arith.constant 0 : i32
    %c0_i32_0 = arith.constant 0 : i32
    return %arg1, %c0_i32 : i32, i32
  }
  func.func @transform_4(%arg0: i32, %arg1: i32) -> (i32, i32) {
    %c0_i32 = arith.constant 0 : i32
    %c0_i32_0 = arith.constant 0 : i32
    return %arg0, %c0_i32 : i32, i32
  }
}

</mosaic_0001>

<bundles_post_ra>
// kernel: tpu_custom_call.1
= control target key start
LH: loop header
LB: loop body
LE: loop exit
PB: predicated region body
PF: predicated region fallthrough
CT: control target
= control target key end

     0   :  { %s1924_s0 = inlined_call_operand.hbm [shape: f32[16,24], index: 0, kind: input, shape index: {}]   ;;  %s1925_s1 = inlined_call_operand.hbm [shape: f32[16,24], index: 1, kind: input, shape index: {}]   ;;  %s1926_s2 = inlined_call_operand.hbm [shape: f32[24,256], index: 2, kind: input, shape index: {}]   ;;  %s1927_s3 = inlined_call_operand.hbm [shape: f32[24,256], index: 3, kind: input, shape index: {}]   ;;  %s1928_s4 = inlined_call_operand.hbm [shape: f32[16,128], index: 4, kind: output, shape index: {}]  }
   0x1   :  { %1930 = sst [smem:[#allocation16_spill]] %s1924_s0 }
   0x2   :  { %1931 = sst [smem:[#allocation17_spill]] %s1925_s1 }
   0x3   :  { %9 = vsyncpa [#allocation3], 0 }
   0x4   :  { %11 = vsyncpa [#allocation3 + $0x1], 0 }
   0x5   :  { %12 = vsyncpa [#allocation6], 0 }
   0x6   :  { %14 = vsyncpa [#allocation6 + $0x1], 0 }
   0x7   :  { %15 = vsyncpa [#allocation9], 0 }
   0x8   :  { %16 = vsyncpa [#allocation4], 0 }
   0x9   :  { %18 = vsyncpa [#allocation4 + $0x1], 0  ;;  %s1655_s15 = smov 0   ;;  %s1657_s16 = smov 0  }
   0xa   :  { %s1659_s17 = smov 0   ;;  %s1661_s18 = smov 0  }
   0xb   :  { %s1663_s19 = smov 0   ;;  %s1665_s20 = smov 0  }
   0xc LB: > { %s1686_s21 = sadd.s32 4294967295, %s1617_s20   ;;  %s1300_s22 = sadd.s32 4294967294, %s1617_s20   ;;  %s1617_s20 = sphi %s1665_s20, %s24_s20   ;;  %s1613_s19 = sphi %s1663_s19, %s1951_s19   ;;  %s1609_s18 = sphi %s1661_s18, %s1950_s18   ;;  %s1605_s17 = sphi %s1659_s17, %s1949_s17   ;;  %s1601_s16 = sphi %s1657_s16, %s1948_s16   ;;  %s1597_s15 = sphi %s1655_s15, %s1947_s15  }
   0xd   : > { %p58_p0 = scmp.ne.s32.totalorder %s1601_s16, %s1597_s15  ;;  %p1929_p1 = scmp.eq.s32.totalorder %s1686_s21, 0 }
   0xe   : > { %p168_p3 = scmp.eq.s32.totalorder %s1300_s22, 1  ;;  %p1301_p5 = scmp.ge.s32.totalorder %s1617_s20, 1 }
   0xf   : > { %p1695_p4 = por %p1929_p1, %p58_p0  ;;  %p175_p7 = scmp.lt.s32.totalorder %s1617_s20, 3 }
  0x10   : > { %p1700_p6 = por %p168_p3, %p58_p0  ;;  %s1619_s26 = smov [#allocation7]  }
  0x11   : > { %p1705_p8 = pnand %p1301_p5, %p175_p7  ;;  %s191_s27 = sshll.u32 %s1619_s26, 4  ;;  %s192_s27 = int_to_ptr.vmem [resolvable:$true] %s191_s27 }
  0x12   : > { %s1933_s24 = scalar_select %p1700_p6, 1, 0 }
  0x13   : > { %p1335_p9 = pneg %p1705_p8  ;;  %s1620_s29 = smov [#allocation8]  }
  0x14   : > { %s208_s30 = sshll.u32 %s1620_s29, 4  ;;  %s1428_s5 = scalar_lea.vmem %s192_s27, 768  ;;  %s209_s30 = int_to_ptr.vmem [resolvable:$true] %s208_s30 }
  0x15   : > { %p1714_p11 = pnand %p1335_p9, %p1929_p1  ;;  %p1429_p13 = scmp.ne.s32.totalorder %s192_s27, %s1428_s5 }
  0x16   : > { %p1436_p5 = scmp.lt.s32.totalorder %s192_s27, %s192_s27  ;;  %p1437_p7 = scmp.lt.s32.totalorder %s1428_s5, %s1428_s5 }
  0x17   : > { %p1419_p12 = pneg %p1714_p11 }
  0x18   : > { %p1438_p10 = por %p1437_p7, %p1436_p5 }
  0x19   : > { %p1431_p0 = pnand %p1429_p13, %p1419_p12 }
  0x1b   : > { %p1432_p3 = pneg %p1431_p0 }
  0x1d   : > { %p1439_p9 = pnand %p1438_p10, %p1432_p3 }
  0x1f   : > { %1442 = shalt.err (!%p1439_p9)
}
  0x20   : > { %s1621_s6 = smov 256   ;;  %s1622_s7 = smov 16  }
  0x21   : > { %1338 = dma.hbm_to_vmem [thread:$0]  (!%p1714_p11), %s1926_s2, 768, %s192_s27, [#allocation6], %s1621_s6, %s1621_s6, %s1622_s7  }
  0x22   : > { %s1454_s10 = scalar_lea.vmem %s209_s30, 768  ;;  %p1462_p2 = scmp.lt.s32.totalorder %s209_s30, %s209_s30 }
  0x23   : > { %p1455_p1 = scmp.ne.s32.totalorder %s209_s30, %s1454_s10  ;;  %p1463_p6 = scmp.lt.s32.totalorder %s1454_s10, %s1454_s10 }
  0x25   : > { %p1457_p13 = pnand %p1455_p1, %p1419_p12  ;;  %p1464_p5 = por %p1463_p6, %p1462_p2 }
  0x27   : > { %p1458_p0 = pneg %p1457_p13 }
  0x29   : > { %p1465_p10 = pnand %p1464_p5, %p1458_p0 }
  0x2b   : > { %1468 = shalt.err (!%p1465_p10)
}
  0x2c   : > { %1341 = dma.hbm_to_vmem [thread:$0]  (!%p1714_p11), %s1927_s3, 768, %s209_s30, [#allocation9], %s1621_s6, %s1621_s6, %s1622_s7  }
  0x2d   : > { %s36_s13 = sadd.s32 1, %s1613_s19  ;;  %s45_s14 = sadd.s32 1, %s1605_s17 }
  0x2e   : > { %p38_p1 = scmp.ge.s32.totalorder %s36_s13, 2  ;;  %p52_p2 = scmp.ne.s32.totalorder %s1605_s17, %s1601_s16 }
  0x2f   : > { %p53_p6 = scmp.eq.s32.totalorder %s1617_s20, 0  ;;  %p1355_p12 = scmp.lt.s32.totalorder %s1617_s20, 2 }
  0x30   : > { %s1953_s13 = smov (%p38_p1, %s36_s13), 0  ;;  %p1936_p7 = scmp.eq.s32.totalorder %s1686_s21, 1 }
  0x31   : > { %p54_p3 = por %p53_p6, %p52_p2  ;;  %s40_s26 = ssub.s32 %s1613_s19, %s1953_s13 }
  0x32   : > { %p1746_p9 = por %p1936_p7, %p52_p2  ;;  %s222_s27 = sand.u32 1, %s1605_s17  }
  0x33   : > { %p43_p13 = scmp.eq.s32.totalorder %s40_s26, 0  ;;  %s1305_s28 = sshll.u32 %s222_s27, 3 }
  0x34   : > { %s1306_s29 = sshll.u32 %s1613_s19, 7  ;;  %s1938_s0 = sld [smem:[#allocation16_spill]] }
  0x35   : > { %s1755_s30 = scalar_select %p43_p13, %s1605_s17, %s45_s14  }
  0x36   : > { %s226_s8 = scalar_lea.vmem [#allocation2], %s1305_s28  ;;  %p1762_p11 = pnand %p1355_p12, %p54_p3 }
  0x37   : > { %s234_s9 = sshll.u32 %s226_s8, 4  ;;  %s1940_s1 = sld [smem:[#allocation17_spill]]  ;;  %s235_s9 = int_to_ptr.vmem [resolvable:$true] %s234_s9 }
  0x38   : > { %s223_s14 = scalar_lea.sflag [#allocation3], %s222_s27  ;;  %p1471_p0 = pneg %p1762_p11 }
  0x39   : > { %s1482_s5 = scalar_lea.vmem %s235_s9, 128  ;;  %s1623_s6 = smov [#allocation2]  }
  0x3a   : > { %s232_s7 = scalar_lea.hbm %s1938_s0, %s1306_s29  ;;  %p1483_p5 = scmp.ne.s32.totalorder %s235_s9, %s1482_s5 }
  0x3b   : > { %s1487_s8 = sshll.u32 %s1623_s6, 4  ;;  %s1488_s8 = int_to_ptr.vmem [resolvable:$false] %s1487_s8 }
  0x3c   : > { %p1485_p10 = pnand %p1483_p5, %p1471_p0  ;;  %s1489_s0 = scalar_lea.vmem %s1488_s8, 256 }
  0x3d   : > { %s1769_s26 = scalar_lea.hbm %s1940_s1, %s1306_s29  ;;  %p1490_p2 = scmp.lt.s32.totalorder %s235_s9, %s1488_s8 }
  0x3e   : > { %p1486_p1 = pneg %p1485_p10  ;;  %p1491_p6 = scmp.lt.s32.totalorder %s1489_s0, %s1482_s5 }
  0x40   : > { %p1492_p12 = por %p1491_p6, %p1490_p2 }
  0x42   : > { %p1493_p3 = pnand %p1492_p12, %p1486_p1 }
  0x44   : > { %1496 = shalt.err (!%p1493_p3)
}
  0x45   : > { %1345 = dma.hbm_to_vmem [thread:$0]  (!%p1762_p11), %s232_s7, 128, %s235_s9, %s223_s14  }
  0x46   : > { %s241_s27 = sand.u32 1, %s1617_s20   ;;  %s245_s29 = scalar_lea.vmem [#allocation5], %s1305_s28 }
  0x47   : > { %s253_s11 = sshll.u32 %s245_s29, 4  ;;  %s242_s12 = scalar_lea.sflag [#allocation6], %s241_s27  ;;  %s254_s11 = int_to_ptr.vmem [resolvable:$true] %s253_s11 }
  0x48   : > { %s1510_s1 = scalar_lea.vmem %s254_s11, 128  ;;  %s1624_s0 = smov [#allocation5]  }
  0x49   : > { %p1511_p7 = scmp.ne.s32.totalorder %s254_s11, %s1510_s1  ;;  %s1515_s5 = sshll.u32 %s1624_s0, 4  ;;  %s1516_s5 = int_to_ptr.vmem [resolvable:$false] %s1515_s5 }
  0x4a   : > { %s1517_s6 = scalar_lea.vmem %s1516_s5, 256  ;;  %p1518_p10 = scmp.lt.s32.totalorder %s254_s11, %s1516_s5 }
  0x4b   : > { %p1513_p13 = pnand %p1511_p7, %p1471_p0  ;;  %p1519_p1 = scmp.lt.s32.totalorder %s1517_s6, %s1510_s1 }
  0x4d   : > { %p1514_p5 = pneg %p1513_p13  ;;  %p1520_p2 = por %p1519_p1, %p1518_p10 }
  0x4f   : > { %p1521_p6 = pnand %p1520_p2, %p1514_p5 }
  0x51   : > { %1524 = shalt.err (!%p1521_p6)
}
  0x52   : > { %1348 = dma.hbm_to_vmem [thread:$0]  (!%p1762_p11), %s1769_s26, 128, %s254_s11, %s242_s12  }
  0x53   : > { %262 = sbr.rel (%p1705_p8) target bundleno = 5396 (0x1514), region = 36  ;;  %s1788_s28 = sand.u32 (!%p1705_p8), 1, %s1601_s16  }
  0x54   : > { %s1791_s7 = sshll.u32 (!%p1705_p8), %s1788_s28, 3  ;;  %s265_s1 = scalar_lea.sflag (!%p1705_p8), [#allocation3], %s1788_s28 }
  0x55   : > { %s268_s9 = scalar_lea.vmem (!%p1705_p8), [#allocation2], %s1791_s7 }
  0x58   : > { %1576 = dma.done.wait (%p1695_p4), %s265_s1, 128  }
  0x59   : > { %1578 = vsyncadd (%p1695_p4), %s265_s1, 4294967168  ;;  %s273_s25 = sand.u32 1, %s1686_s21   ;;  %s277_s26 = scalar_lea.vmem [#allocation5], %s1791_s7 }
  0x5a   : > { %s274_s10 = scalar_lea.sflag [#allocation6], %s273_s25 }
  0x5b   : > { %1580 = dma.done.wait (%p1695_p4), %s274_s10, 128  }
  0x5c   : > { %1582 = vsyncadd (%p1695_p4), %s274_s10, 4294967168  ;;  %p1941_p8 = scmp.eq.s32.totalorder %s1686_s21, 0 }
  0x5e   : > { %1584 = dma.done.wait (%p1941_p8), [#allocation6], 768   ;;  %p1942_p11 = pmov %p1941_p8 }
  0x5f   : > { %p1943_p0 = pmov %p1941_p8 }
  0x60   : > { %1586 = vsyncadd (%p1942_p11), [#allocation6], 4294966528 }
  0x61   : > { %1588 = dma.done.wait (%p1943_p0), [#allocation9], 768   ;;  %p1944_p12 = pmov %p1943_p0 }
  0x62   : > { %v1625_v0 = vmov 0.0   ;;  %v330_v1 = vld [vmem:[#allocation8 + $0x28] sm:$0xff]  ;;  %v323_v2 = vld [vmem:[#allocation7 + $0x28] sm:$0xff]  ;;  %v329_v3 = vld [vmem:[#allocation8 + $0x20] sm:$0xff]  ;;  %vm331_vm0 = vcmask 195584   ;;  %v1626_v24 = vmov 0  }
  0x63   : > { %1590 = vsyncadd (%p1944_p12), [#allocation9], 4294966528  ;;  %399 = vmatprep.mubr.f32.mxu0 %v1625_v0  ;;  %473 = vmatprep.mubr.f32.mxu1 %v1625_v0  ;;  %v322_v4 = vld [vmem:[#allocation7 + $0x20] sm:$0xff]  ;;  %v328_v5 = vld [vmem:[#allocation8 + $0x18] sm:$0xff]  ;;  %v1627_v36 = vmov 1073741824   ;;  %s1318_s21 = sshll.u32 %s1609_s18, 7 }
  0x64   : > { %361 = vmatprep.subr.mxu0 %v330_v1  ;;  %435 = vmatprep.subr.mxu1 %v323_v2  ;;  %v321_v6 = vld [vmem:[#allocation7 + $0x18] sm:$0xff]  ;;  %v327_v7 = vld [vmem:[#allocation8 + $0x10] sm:$0xff]  ;;  %v320_v8 = vld [vmem:[#allocation7 + $0x10] sm:$0xff]  ;;  %v1628_v38 = vmov 2147483647   ;;  %s314_s23 = scalar_lea.vmem [#allocation10], %s1791_s7  ;;  %s1171_s29 = scalar_lea.hbm %s1928_s4, %s1318_s21 }
  0x65   : > { %362 = vmatpush1.msra.mxu0 %v329_v3  ;;  %436 = vmatpush1.msra.mxu1 %v322_v4  ;;  %v326_v9 = vld [vmem:[#allocation8 + $0x8] sm:$0xff]  ;;  %v319_v10 = vld [vmem:[#allocation7 + $0x8] sm:$0xff]  ;;  %v325_v11 = vld [vmem:[#allocation8] sm:$0xff]  ;;  %s1173_s14 = sshll.u32 %s314_s23, 4  ;;  %s1160_s11 = scalar_lea.sflag [#allocation4], %s1788_s28  ;;  %s1174_s14 = int_to_ptr.vmem [resolvable:$true] %s1173_s14 }
  0x66   : > { %363 = vmatprep.subr.mxu0 %v328_v5  ;;  %437 = vmatprep.subr.mxu1 %v321_v6  ;;  %v318_v12 = vld [vmem:[#allocation7] sm:$0xff]  ;;  %v324_v13 = vld [vmem:[%s277_s26] sm:$0xff]  ;;  %s1525_s12 = scalar_lea.vmem %s1174_s14, 128  ;;  %s1629_s0 = smov [#allocation10]  }
  0x67   : > { %364 = vmatpush1.msra.mxu0 %v327_v7  ;;  %438 = vmatpush1.msra.mxu1 %v320_v8  ;;  %v317_v14 = vld [vmem:[%s268_s9] sm:$0xff]  ;;  %p1526_p4 = scmp.ne.s32.totalorder %s1174_s14, %s1525_s12  ;;  %s1529_s5 = sshll.u32 %s1629_s0, 4  ;;  %s1530_s5 = int_to_ptr.vmem [resolvable:$false] %s1529_s5 }
  0x68   : > { %365 = vmatprep.subr.mxu0 %v326_v9  ;;  %439 = vmatprep.subr.mxu1 %v319_v10  ;;  %s1531_s18 = scalar_lea.vmem %s1530_s5, 256  ;;  %p1532_p13 = scmp.lt.s32.totalorder %s1174_s14, %s1530_s5 }
  0x69   : > { %366 = vmatpush1.msra.mxu0 %v325_v11  ;;  %440 = vmatpush1.msra.mxu1 %v318_v12  ;;  %p1527_p3 = pnand %p1526_p4, %p1746_p9  ;;  %p1533_p5 = scmp.lt.s32.totalorder %s1531_s18, %s1525_s12 }
  0x6a   : > { %1315 = vmatmul.mubr.msk.f32.vlgmr.msra.gmra.mxu0 %vm331_vm0, %v324_v13  ;;  %1316 = vmatmul.mubr.msk.f32.vlgmr.msra.gmra.mxu1 %vm331_vm0, %v317_v14 }
  0x6b   : > { %p1528_p7 = pneg %p1527_p3  ;;  %p1534_p10 = por %p1533_p5, %p1532_p13 }
  0x6d   : > { %p1535_p1 = pnand %p1534_p10, %p1528_p7 }
 0x12a   : > { %v401_v15 = vpop.f32.mrf.mxu0  ;;  %v475_v16 = vpop.f32.mrf.mxu1 }
 0x12b   : > { %v476_v17 = vadd.f32 %v475_v16, %v401_v15 }
 0x12c   : > { %v403_v18 = vpop.f32.mrf.mxu0  ;;  %v477_v19 = vpop.f32.mrf.mxu1 }
 0x12d   : > { %v478_v20 = vadd.f32 %v477_v19, %v403_v18  ;;  %v480_v21 = vmul.f32 %v476_v17, %v476_v17 }
 0x12f   : > { %v481_v22 = vmul.f32 %v478_v20, %v478_v20 }
 0x131   : > { %v1815_v23 = vadd.f32 %v481_v22, %v480_v21 }
 0x133   : > { %vm484_vm1 = vcmp.le.s32.totalorder %v1815_v23, 1073741823 }
 0x134   : > { %v485_v25 = vsel %vm484_vm1, 1, %v1626_v24 }
 0x135   : > { %v487_v26 = vshrl.u32 %v485_v25, 16  ;;  %v486_v28 = vand.u32 65535, %v485_v25 }
 0x137   : > { %v489_v27 = vcvt.s32.f32 %v487_v26  ;;  %v488_v29 = vcvt.s32.f32 %v486_v28 }
 0x139   : > { %492 = vadd.xlane.f32.xlu0 %v489_v27 }
 0x13d   : > { %490 = vadd.xlane.f32.xlu0 %v488_v29 }
 0x1c2   : > { %v493_v30 = vpop.xlane.xlu0 %492 }
 0x1c3   : > { %v495_v31 = vcvt.f32.s32 %v493_v30 }
 0x1c5   : > { %v496_v33 = vshll.u32 %v495_v31, 16 }
 0x1c6   : > { %v491_v32 = vpop.xlane.xlu0 %490 }
 0x1c7   : > { %v494_v34 = vcvt.f32.s32 %v491_v32 }
 0x1c9   : > { %v497_v35 = vadd.s32 %v496_v33, %v494_v34 }
 0x1cb   : > { %vm498_vm2 = vcmp.ge.s32.totalorder %v497_v35, 97 }
 0x1cc   : > { %v499_v37 = vsel %vm498_vm2, 0, %v1627_v36  ;;  %v500_v39 = vsel %vm498_vm2, 1073741823, %v1628_v38 }
 0x1cd   : > { %v501_v40 = vsub.s32 %v500_v39, %v499_v37 }
 0x1cf   : > { %v502_v41 = vshra.s32 %v501_v40, 1 }
 0x1d1   : > { %v503_v42 = vadd.s32 %v502_v41, %v499_v37 }
 0x1d3   : > { %vm504_vm3 = vcmp.le.s32.totalorder %v1815_v23, %v503_v42  ;;  %v519_v54 = vadd.s32 1, %v503_v42 }
 0x1d4   : > { %v505_v43 = vsel %vm504_vm3, 1, %v1626_v24 }
 0x1d5   : > { %v507_v44 = vshrl.u32 %v505_v43, 16  ;;  %v506_v46 = vand.u32 65535, %v505_v43 }
 0x1d7   : > { %v509_v45 = vcvt.s32.f32 %v507_v44  ;;  %v508_v47 = vcvt.s32.f32 %v506_v46 }
 0x1d9   : > { %512 = vadd.xlane.f32.xlu1 %v509_v45 }
 0x1dd   : > { %510 = vadd.xlane.f32.xlu1 %v508_v47 }
 0x262   : > { %v513_v48 = vpop.xlane.xlu1 %512 }
 0x263   : > { %v515_v49 = vcvt.f32.s32 %v513_v48 }
 0x265   : > { %v516_v51 = vshll.u32 %v515_v49, 16 }
 0x266   : > { %v511_v50 = vpop.xlane.xlu1 %510 }
 0x267   : > { %v514_v52 = vcvt.f32.s32 %v511_v50 }
 0x269   : > { %v517_v53 = vadd.s32 %v516_v51, %v514_v52 }
 0x26b   : > { %vm518_vm4 = vcmp.ge.s32.totalorder %v517_v53, 97 }
 0x26c   : > { %v520_v55 = vsel %vm518_vm4, %v499_v37, %v519_v54  ;;  %v521_v56 = vsel %vm518_vm4, %v503_v42, %v500_v39 }
 0x26d   : > { %v522_v57 = vsub.s32 %v521_v56, %v520_v55 }
 0x26f   : > { %v523_v58 = vshra.s32 %v522_v57, 1 }
 0x271   : > { %v524_v59 = vadd.s32 %v523_v58, %v520_v55 }
 0x273   : > { %vm525_vm5 = vcmp.le.s32.totalorder %v1815_v23, %v524_v59  ;;  %v540_v7 = vadd.s32 1, %v524_v59 }
 0x274   : > { %v526_v60 = vsel %vm525_vm5, 1, %v1626_v24 }
 0x275   : > { %v528_v61 = vshrl.u32 %v526_v60, 16  ;;  %v527_v62 = vand.u32 65535, %v526_v60 }
 0x277   : > { %v530_v63 = vcvt.s32.f32 %v528_v61  ;;  %v529_v0 = vcvt.s32.f32 %v527_v62 }
 0x279   : > { %533 = vadd.xlane.f32.xlu0 %v530_v63  ;;  %531 = vadd.xlane.f32.xlu1 %v529_v0 }
 0x302   : > { %v534_v1 = vpop.xlane.xlu0 %533  ;;  %v532_v2 = vpop.xlane.xlu1 %531 }
 0x303   : > { %v536_v3 = vcvt.f32.s32 %v534_v1  ;;  %v535_v5 = vcvt.f32.s32 %v532_v2 }
 0x305   : > { %v537_v4 = vshll.u32 %v536_v3, 16 }
 0x307   : > { %v538_v6 = vadd.s32 %v537_v4, %v535_v5 }
 0x309   : > { %vm539_vm6 = vcmp.ge.s32.totalorder %v538_v6, 97 }
 0x30a   : > { %v541_v8 = vsel %vm539_vm6, %v520_v55, %v540_v7  ;;  %v542_v9 = vsel %vm539_vm6, %v524_v59, %v521_v56 }
 0x30b   : > { %v543_v10 = vsub.s32 %v542_v9, %v541_v8 }
 0x30d   : > { %v544_v11 = vshra.s32 %v543_v10, 1 }
 0x30f   : > { %v545_v12 = vadd.s32 %v544_v11, %v541_v8 }
 0x311   : > { %vm546_vm7 = vcmp.le.s32.totalorder %v1815_v23, %v545_v12  ;;  %v561_v26 = vadd.s32 1, %v545_v12 }
 0x312   : > { %v547_v13 = vsel %vm546_vm7, 1, %v1626_v24 }
 0x313   : > { %v549_v14 = vshrl.u32 %v547_v13, 16  ;;  %v548_v15 = vand.u32 65535, %v547_v13 }
 0x315   : > { %v551_v16 = vcvt.s32.f32 %v549_v14  ;;  %v550_v17 = vcvt.s32.f32 %v548_v15 }
 0x317   : > { %554 = vadd.xlane.f32.xlu0 %v551_v16  ;;  %552 = vadd.xlane.f32.xlu1 %v550_v17 }
 0x3a0   : > { %v555_v18 = vpop.xlane.xlu0 %554  ;;  %v553_v19 = vpop.xlane.xlu1 %552 }
 0x3a1   : > { %v557_v20 = vcvt.f32.s32 %v555_v18  ;;  %v556_v22 = vcvt.f32.s32 %v553_v19 }
 0x3a3   : > { %v558_v21 = vshll.u32 %v557_v20, 16 }
 0x3a5   : > { %v559_v25 = vadd.s32 %v558_v21, %v556_v22 }
 0x3a7   : > { %vm560_vm8 = vcmp.ge.s32.totalorder %v559_v25, 97 }
 0x3a8   : > { %v562_v27 = vsel %vm560_vm8, %v541_v8, %v561_v26  ;;  %v563_v28 = vsel %vm560_vm8, %v545_v12, %v542_v9 }
 0x3a9   : > { %v564_v29 = vsub.s32 %v563_v28, %v562_v27 }
 0x3ab   : > { %v565_v30 = vshra.s32 %v564_v29, 1 }
 0x3ad   : > { %v566_v31 = vadd.s32 %v565_v30, %v562_v27 }
 0x3af   : > { %vm567_vm9 = vcmp.le.s32.totalorder %v1815_v23, %v566_v31  ;;  %v582_v43 = vadd.s32 1, %v566_v31 }
 0x3b0   : > { %v568_v32 = vsel %vm567_vm9, 1, %v1626_v24 }
 0x3b1   : > { %v570_v33 = vshrl.u32 %v568_v32, 16  ;;  %v569_v34 = vand.u32 65535, %v568_v32 }
 0x3b3   : > { %v572_v35 = vcvt.s32.f32 %v570_v33  ;;  %v571_v36 = vcvt.s32.f32 %v569_v34 }
 0x3b5   : > { %575 = vadd.xlane.f32.xlu0 %v572_v35  ;;  %573 = vadd.xlane.f32.xlu1 %v571_v36 }
 0x43e   : > { %v576_v37 = vpop.xlane.xlu0 %575  ;;  %v574_v38 = vpop.xlane.xlu1 %573 }
 0x43f   : > { %v578_v39 = vcvt.f32.s32 %v576_v37  ;;  %v577_v41 = vcvt.f32.s32 %v574_v38 }
 0x441   : > { %v579_v40 = vshll.u32 %v578_v39, 16 }
 0x443   : > { %v580_v42 = vadd.s32 %v579_v40, %v577_v41 }
 0x445   : > { %vm581_vm10 = vcmp.ge.s32.totalorder %v580_v42, 97 }
 0x446   : > { %v583_v44 = vsel %vm581_vm10, %v562_v27, %v582_v43  ;;  %v584_v45 = vsel %vm581_vm10, %v566_v31, %v563_v28 }
 0x447   : > { %v585_v46 = vsub.s32 %v584_v45, %v583_v44 }
 0x449   : > { %v586_v47 = vshra.s32 %v585_v46, 1 }
 0x44b   : > { %v587_v48 = vadd.s32 %v586_v47, %v583_v44 }
 0x44d   : > { %vm588_vm11 = vcmp.le.s32.totalorder %v1815_v23, %v587_v48  ;;  %v603_v60 = vadd.s32 1, %v587_v48 }
 0x44e   : > { %v589_v49 = vsel %vm588_vm11, 1, %v1626_v24 }
 0x44f   : > { %v591_v50 = vshrl.u32 %v589_v49, 16  ;;  %v590_v51 = vand.u32 65535, %v589_v49 }
 0x451   : > { %v593_v52 = vcvt.s32.f32 %v591_v50  ;;  %v592_v53 = vcvt.s32.f32 %v590_v51 }
 0x453   : > { %596 = vadd.xlane.f32.xlu0 %v593_v52  ;;  %594 = vadd.xlane.f32.xlu1 %v592_v53 }
 0x4dc   : > { %v597_v54 = vpop.xlane.xlu0 %596  ;;  %v595_v55 = vpop.xlane.xlu1 %594 }
 0x4dd   : > { %v599_v56 = vcvt.f32.s32 %v597_v54  ;;  %v598_v58 = vcvt.f32.s32 %v595_v55 }
 0x4df   : > { %v600_v57 = vshll.u32 %v599_v56, 16 }
 0x4e1   : > { %v601_v59 = vadd.s32 %v600_v57, %v598_v58 }
 0x4e3   : > { %vm602_vm12 = vcmp.ge.s32.totalorder %v601_v59, 97 }
 0x4e4   : > { %v604_v61 = vsel %vm602_vm12, %v583_v44, %v603_v60  ;;  %v605_v62 = vsel %vm602_vm12, %v587_v48, %v584_v45 }
 0x4e5   : > { %v606_v63 = vsub.s32 %v605_v62, %v604_v61 }
 0x4e7   : > { %v607_v0 = vshra.s32 %v606_v63, 1 }
 0x4e9   : > { %v608_v1 = vadd.s32 %v607_v0, %v604_v61 }
 0x4eb   : > { %vm609_vm13 = vcmp.le.s32.totalorder %v1815_v23, %v608_v1  ;;  %v624_v13 = vadd.s32 1, %v608_v1 }
 0x4ec   : > { %v610_v2 = vsel %vm609_vm13, 1, %v1626_v24 }
 0x4ed   : > { %v612_v3 = vshrl.u32 %v610_v2, 16  ;;  %v611_v4 = vand.u32 65535, %v610_v2 }
 0x4ef   : > { %v614_v5 = vcvt.s32.f32 %v612_v3  ;;  %v613_v6 = vcvt.s32.f32 %v611_v4 }
 0x4f1   : > { %617 = vadd.xlane.f32.xlu0 %v614_v5  ;;  %615 = vadd.xlane.f32.xlu1 %v613_v6 }
 0x57a   : > { %v618_v7 = vpop.xlane.xlu0 %617  ;;  %v616_v8 = vpop.xlane.xlu1 %615 }
 0x57b   : > { %v620_v9 = vcvt.f32.s32 %v618_v7  ;;  %v619_v11 = vcvt.f32.s32 %v616_v8 }
 0x57d   : > { %v621_v10 = vshll.u32 %v620_v9, 16 }
 0x57f   : > { %v622_v12 = vadd.s32 %v621_v10, %v619_v11 }
 0x581   : > { %vm623_vm14 = vcmp.ge.s32.totalorder %v622_v12, 97 }
 0x582   : > { %v625_v14 = vsel %vm623_vm14, %v604_v61, %v624_v13  ;;  %v626_v15 = vsel %vm623_vm14, %v608_v1, %v605_v62 }
 0x583   : > { %v627_v16 = vsub.s32 %v626_v15, %v625_v14 }
 0x585   : > { %v628_v17 = vshra.s32 %v627_v16, 1 }
 0x587   : > { %v629_v18 = vadd.s32 %v628_v17, %v625_v14 }
 0x589   : > { %vm630_vm15 = vcmp.le.s32.totalorder %v1815_v23, %v629_v18  ;;  %v645_v32 = vadd.s32 1, %v629_v18 }
 0x58a   : > { %v631_v19 = vsel %vm630_vm15, 1, %v1626_v24 }
 0x58b   : > { %v633_v20 = vshrl.u32 %v631_v19, 16  ;;  %v632_v21 = vand.u32 65535, %v631_v19 }
 0x58d   : > { %v635_v22 = vcvt.s32.f32 %v633_v20  ;;  %v634_v25 = vcvt.s32.f32 %v632_v21 }
 0x58f   : > { %638 = vadd.xlane.f32.xlu0 %v635_v22  ;;  %636 = vadd.xlane.f32.xlu1 %v634_v25 }
 0x618   : > { %v639_v26 = vpop.xlane.xlu0 %638  ;;  %v637_v27 = vpop.xlane.xlu1 %636 }
 0x619   : > { %v641_v28 = vcvt.f32.s32 %v639_v26  ;;  %v640_v30 = vcvt.f32.s32 %v637_v27 }
 0x61b   : > { %v642_v29 = vshll.u32 %v641_v28, 16 }
 0x61d   : > { %v643_v31 = vadd.s32 %v642_v29, %v640_v30 }
 0x61f   : > { %vm644_vm0 = vcmp.ge.s32.totalorder %v643_v31, 97 }
 0x620   : > { %v646_v33 = vsel %vm644_vm0, %v625_v14, %v645_v32  ;;  %v647_v34 = vsel %vm644_vm0, %v629_v18, %v626_v15 }
 0x621   : > { %v648_v35 = vsub.s32 %v647_v34, %v646_v33 }
 0x623   : > { %v649_v36 = vshra.s32 %v648_v35, 1 }
 0x625   : > { %v650_v37 = vadd.s32 %v649_v36, %v646_v33 }
 0x627   : > { %vm651_vm1 = vcmp.le.s32.totalorder %v1815_v23, %v650_v37  ;;  %v666_v49 = vadd.s32 1, %v650_v37 }
 0x628   : > { %v652_v38 = vsel %vm651_vm1, 1, %v1626_v24 }
 0x629   : > { %v654_v39 = vshrl.u32 %v652_v38, 16  ;;  %v653_v40 = vand.u32 65535, %v652_v38 }
 0x62b   : > { %v656_v41 = vcvt.s32.f32 %v654_v39  ;;  %v655_v42 = vcvt.s32.f32 %v653_v40 }
 0x62d   : > { %659 = vadd.xlane.f32.xlu0 %v656_v41  ;;  %657 = vadd.xlane.f32.xlu1 %v655_v42 }
 0x6b6   : > { %v660_v43 = vpop.xlane.xlu0 %659  ;;  %v658_v44 = vpop.xlane.xlu1 %657 }
 0x6b7   : > { %v662_v45 = vcvt.f32.s32 %v660_v43  ;;  %v661_v47 = vcvt.f32.s32 %v658_v44 }
 0x6b9   : > { %v663_v46 = vshll.u32 %v662_v45, 16 }
 0x6bb   : > { %v664_v48 = vadd.s32 %v663_v46, %v661_v47 }
 0x6bd   : > { %vm665_vm2 = vcmp.ge.s32.totalorder %v664_v48, 97 }
 0x6be   : > { %v667_v50 = vsel %vm665_vm2, %v646_v33, %v666_v49  ;;  %v668_v51 = vsel %vm665_vm2, %v650_v37, %v647_v34 }
 0x6bf   : > { %v669_v52 = vsub.s32 %v668_v51, %v667_v50 }
 0x6c1   : > { %v670_v53 = vshra.s32 %v669_v52, 1 }
 0x6c3   : > { %v671_v54 = vadd.s32 %v670_v53, %v667_v50 }
 0x6c5   : > { %vm672_vm3 = vcmp.le.s32.totalorder %v1815_v23, %v671_v54  ;;  %v687_v2 = vadd.s32 1, %v671_v54 }
 0x6c6   : > { %v673_v55 = vsel %vm672_vm3, 1, %v1626_v24 }
 0x6c7   : > { %v675_v56 = vshrl.u32 %v673_v55, 16  ;;  %v674_v57 = vand.u32 65535, %v673_v55 }
 0x6c9   : > { %v677_v58 = vcvt.s32.f32 %v675_v56  ;;  %v676_v59 = vcvt.s32.f32 %v674_v57 }
 0x6cb   : > { %680 = vadd.xlane.f32.xlu0 %v677_v58  ;;  %678 = vadd.xlane.f32.xlu1 %v676_v59 }
 0x754   : > { %v681_v60 = vpop.xlane.xlu0 %680  ;;  %v679_v61 = vpop.xlane.xlu1 %678 }
 0x755   : > { %v683_v62 = vcvt.f32.s32 %v681_v60  ;;  %v682_v0 = vcvt.f32.s32 %v679_v61 }
 0x757   : > { %v684_v63 = vshll.u32 %v683_v62, 16 }
 0x759   : > { %v685_v1 = vadd.s32 %v684_v63, %v682_v0 }
 0x75b   : > { %vm686_vm4 = vcmp.ge.s32.totalorder %v685_v1, 97 }
 0x75c   : > { %v688_v3 = vsel %vm686_vm4, %v667_v50, %v687_v2  ;;  %v689_v4 = vsel %vm686_vm4, %v671_v54, %v668_v51 }
 0x75d   : > { %v690_v5 = vsub.s32 %v689_v4, %v688_v3 }
 0x75f   : > { %v691_v6 = vshra.s32 %v690_v5, 1 }
 0x761   : > { %v692_v7 = vadd.s32 %v691_v6, %v688_v3 }
 0x763   : > { %vm693_vm5 = vcmp.le.s32.totalorder %v1815_v23, %v692_v7  ;;  %v708_v19 = vadd.s32 1, %v692_v7 }
 0x764   : > { %v694_v8 = vsel %vm693_vm5, 1, %v1626_v24 }
 0x765   : > { %v696_v9 = vshrl.u32 %v694_v8, 16  ;;  %v695_v10 = vand.u32 65535, %v694_v8 }
 0x767   : > { %v698_v11 = vcvt.s32.f32 %v696_v9  ;;  %v697_v12 = vcvt.s32.f32 %v695_v10 }
 0x769   : > { %701 = vadd.xlane.f32.xlu0 %v698_v11  ;;  %699 = vadd.xlane.f32.xlu1 %v697_v12 }
 0x7f2   : > { %v702_v13 = vpop.xlane.xlu0 %701  ;;  %v700_v14 = vpop.xlane.xlu1 %699 }
 0x7f3   : > { %v704_v15 = vcvt.f32.s32 %v702_v13  ;;  %v703_v17 = vcvt.f32.s32 %v700_v14 }
 0x7f5   : > { %v705_v16 = vshll.u32 %v704_v15, 16 }
 0x7f7   : > { %v706_v18 = vadd.s32 %v705_v16, %v703_v17 }
 0x7f9   : > { %vm707_vm6 = vcmp.ge.s32.totalorder %v706_v18, 97 }
 0x7fa   : > { %v709_v20 = vsel %vm707_vm6, %v688_v3, %v708_v19  ;;  %v710_v21 = vsel %vm707_vm6, %v692_v7, %v689_v4 }
 0x7fb   : > { %v711_v22 = vsub.s32 %v710_v21, %v709_v20 }
 0x7fd   : > { %v712_v25 = vshra.s32 %v711_v22, 1 }
 0x7ff   : > { %v713_v26 = vadd.s32 %v712_v25, %v709_v20 }
 0x801   : > { %vm714_vm7 = vcmp.le.s32.totalorder %v1815_v23, %v713_v26  ;;  %v729_v38 = vadd.s32 1, %v713_v26 }
 0x802   : > { %v715_v27 = vsel %vm714_vm7, 1, %v1626_v24 }
 0x803   : > { %v717_v28 = vshrl.u32 %v715_v27, 16  ;;  %v716_v29 = vand.u32 65535, %v715_v27 }
 0x805   : > { %v719_v30 = vcvt.s32.f32 %v717_v28  ;;  %v718_v31 = vcvt.s32.f32 %v716_v29 }
 0x807   : > { %722 = vadd.xlane.f32.xlu0 %v719_v30  ;;  %720 = vadd.xlane.f32.xlu1 %v718_v31 }
 0x890   : > { %v723_v32 = vpop.xlane.xlu0 %722  ;;  %v721_v33 = vpop.xlane.xlu1 %720 }
 0x891   : > { %v725_v34 = vcvt.f32.s32 %v723_v32  ;;  %v724_v36 = vcvt.f32.s32 %v721_v33 }
 0x893   : > { %v726_v35 = vshll.u32 %v725_v34, 16 }
 0x895   : > { %v727_v37 = vadd.s32 %v726_v35, %v724_v36 }
 0x897   : > { %vm728_vm8 = vcmp.ge.s32.totalorder %v727_v37, 97 }
 0x898   : > { %v730_v39 = vsel %vm728_vm8, %v709_v20, %v729_v38  ;;  %v731_v40 = vsel %vm728_vm8, %v713_v26, %v710_v21 }
 0x899   : > { %v732_v41 = vsub.s32 %v731_v40, %v730_v39 }
 0x89b   : > { %v733_v42 = vshra.s32 %v732_v41, 1 }
 0x89d   : > { %v734_v43 = vadd.s32 %v733_v42, %v730_v39 }
 0x89f   : > { %vm735_vm9 = vcmp.le.s32.totalorder %v1815_v23, %v734_v43  ;;  %v750_v55 = vadd.s32 1, %v734_v43 }
 0x8a0   : > { %v736_v44 = vsel %vm735_vm9, 1, %v1626_v24 }
 0x8a1   : > { %v738_v45 = vshrl.u32 %v736_v44, 16  ;;  %v737_v46 = vand.u32 65535, %v736_v44 }
 0x8a3   : > { %v740_v47 = vcvt.s32.f32 %v738_v45  ;;  %v739_v48 = vcvt.s32.f32 %v737_v46 }
 0x8a5   : > { %743 = vadd.xlane.f32.xlu0 %v740_v47  ;;  %741 = vadd.xlane.f32.xlu1 %v739_v48 }
 0x92e   : > { %v744_v49 = vpop.xlane.xlu0 %743  ;;  %v742_v50 = vpop.xlane.xlu1 %741 }
 0x92f   : > { %v746_v51 = vcvt.f32.s32 %v744_v49  ;;  %v745_v53 = vcvt.f32.s32 %v742_v50 }
 0x931   : > { %v747_v52 = vshll.u32 %v746_v51, 16 }
 0x933   : > { %v748_v54 = vadd.s32 %v747_v52, %v745_v53 }
 0x935   : > { %vm749_vm10 = vcmp.ge.s32.totalorder %v748_v54, 97 }
 0x936   : > { %v751_v56 = vsel %vm749_vm10, %v730_v39, %v750_v55  ;;  %v752_v57 = vsel %vm749_vm10, %v734_v43, %v731_v40 }
 0x937   : > { %v753_v58 = vsub.s32 %v752_v57, %v751_v56 }
 0x939   : > { %v754_v59 = vshra.s32 %v753_v58, 1 }
 0x93b   : > { %v755_v60 = vadd.s32 %v754_v59, %v751_v56 }
 0x93d   : > { %vm756_vm11 = vcmp.le.s32.totalorder %v1815_v23, %v755_v60  ;;  %v771_v8 = vadd.s32 1, %v755_v60 }
 0x93e   : > { %v757_v61 = vsel %vm756_vm11, 1, %v1626_v24 }
 0x93f   : > { %v759_v62 = vshrl.u32 %v757_v61, 16  ;;  %v758_v63 = vand.u32 65535, %v757_v61 }
 0x941   : > { %v761_v0 = vcvt.s32.f32 %v759_v62  ;;  %v760_v1 = vcvt.s32.f32 %v758_v63 }
 0x943   : > { %764 = vadd.xlane.f32.xlu0 %v761_v0  ;;  %762 = vadd.xlane.f32.xlu1 %v760_v1 }
 0x9cc   : > { %v765_v2 = vpop.xlane.xlu0 %764  ;;  %v763_v3 = vpop.xlane.xlu1 %762 }
 0x9cd   : > { %v767_v4 = vcvt.f32.s32 %v765_v2  ;;  %v766_v6 = vcvt.f32.s32 %v763_v3 }
 0x9cf   : > { %v768_v5 = vshll.u32 %v767_v4, 16 }
 0x9d1   : > { %v769_v7 = vadd.s32 %v768_v5, %v766_v6 }
 0x9d3   : > { %vm770_vm12 = vcmp.ge.s32.totalorder %v769_v7, 97 }
 0x9d4   : > { %v772_v9 = vsel %vm770_vm12, %v751_v56, %v771_v8  ;;  %v773_v10 = vsel %vm770_vm12, %v755_v60, %v752_v57 }
 0x9d5   : > { %v774_v11 = vsub.s32 %v773_v10, %v772_v9 }
 0x9d7   : > { %v775_v12 = vshra.s32 %v774_v11, 1 }
 0x9d9   : > { %v776_v13 = vadd.s32 %v775_v12, %v772_v9 }
 0x9db   : > { %vm777_vm13 = vcmp.le.s32.totalorder %v1815_v23, %v776_v13  ;;  %v792_v27 = vadd.s32 1, %v776_v13 }
 0x9dc   : > { %v778_v14 = vsel %vm777_vm13, 1, %v1626_v24 }
 0x9dd   : > { %v780_v15 = vshrl.u32 %v778_v14, 16  ;;  %v779_v16 = vand.u32 65535, %v778_v14 }
 0x9df   : > { %v782_v17 = vcvt.s32.f32 %v780_v15  ;;  %v781_v18 = vcvt.s32.f32 %v779_v16 }
 0x9e1   : > { %785 = vadd.xlane.f32.xlu0 %v782_v17  ;;  %783 = vadd.xlane.f32.xlu1 %v781_v18 }
 0xa6a   : > { %v786_v19 = vpop.xlane.xlu0 %785  ;;  %v784_v20 = vpop.xlane.xlu1 %783 }
 0xa6b   : > { %v788_v21 = vcvt.f32.s32 %v786_v19  ;;  %v787_v25 = vcvt.f32.s32 %v784_v20 }
 0xa6d   : > { %v789_v22 = vshll.u32 %v788_v21, 16 }
 0xa6f   : > { %v790_v26 = vadd.s32 %v789_v22, %v787_v25 }
 0xa71   : > { %vm791_vm14 = vcmp.ge.s32.totalorder %v790_v26, 97 }
 0xa72   : > { %v793_v28 = vsel %vm791_vm14, %v772_v9, %v792_v27  ;;  %v794_v29 = vsel %vm791_vm14, %v776_v13, %v773_v10 }
 0xa73   : > { %v795_v30 = vsub.s32 %v794_v29, %v793_v28 }
 0xa75   : > { %v796_v31 = vshra.s32 %v795_v30, 1 }
 0xa77   : > { %v797_v32 = vadd.s32 %v796_v31, %v793_v28 }
 0xa79   : > { %vm798_vm15 = vcmp.le.s32.totalorder %v1815_v23, %v797_v32  ;;  %v813_v44 = vadd.s32 1, %v797_v32 }
 0xa7a   : > { %v799_v33 = vsel %vm798_vm15, 1, %v1626_v24 }
 0xa7b   : > { %v801_v34 = vshrl.u32 %v799_v33, 16  ;;  %v800_v35 = vand.u32 65535, %v799_v33 }
 0xa7d   : > { %v803_v36 = vcvt.s32.f32 %v801_v34  ;;  %v802_v37 = vcvt.s32.f32 %v800_v35 }
 0xa7f   : > { %806 = vadd.xlane.f32.xlu0 %v803_v36  ;;  %804 = vadd.xlane.f32.xlu1 %v802_v37 }
 0xb08   : > { %v807_v38 = vpop.xlane.xlu0 %806  ;;  %v805_v39 = vpop.xlane.xlu1 %804 }
 0xb09   : > { %v809_v40 = vcvt.f32.s32 %v807_v38  ;;  %v808_v42 = vcvt.f32.s32 %v805_v39 }
 0xb0b   : > { %v810_v41 = vshll.u32 %v809_v40, 16 }
 0xb0d   : > { %v811_v43 = vadd.s32 %v810_v41, %v808_v42 }
 0xb0f   : > { %vm812_vm0 = vcmp.ge.s32.totalorder %v811_v43, 97 }
 0xb10   : > { %v814_v45 = vsel %vm812_vm0, %v793_v28, %v813_v44  ;;  %v815_v46 = vsel %vm812_vm0, %v797_v32, %v794_v29 }
 0xb11   : > { %v816_v47 = vsub.s32 %v815_v46, %v814_v45 }
 0xb13   : > { %v817_v48 = vshra.s32 %v816_v47, 1 }
 0xb15   : > { %v818_v49 = vadd.s32 %v817_v48, %v814_v45 }
 0xb17   : > { %vm819_vm1 = vcmp.le.s32.totalorder %v1815_v23, %v818_v49  ;;  %v834_v61 = vadd.s32 1, %v818_v49 }
 0xb18   : > { %v820_v50 = vsel %vm819_vm1, 1, %v1626_v24 }
 0xb19   : > { %v822_v51 = vshrl.u32 %v820_v50, 16  ;;  %v821_v52 = vand.u32 65535, %v820_v50 }
 0xb1b   : > { %v824_v53 = vcvt.s32.f32 %v822_v51  ;;  %v823_v54 = vcvt.s32.f32 %v821_v52 }
 0xb1d   : > { %827 = vadd.xlane.f32.xlu0 %v824_v53  ;;  %825 = vadd.xlane.f32.xlu1 %v823_v54 }
 0xba6   : > { %v828_v55 = vpop.xlane.xlu0 %827  ;;  %v826_v56 = vpop.xlane.xlu1 %825 }
 0xba7   : > { %v830_v57 = vcvt.f32.s32 %v828_v55  ;;  %v829_v59 = vcvt.f32.s32 %v826_v56 }
 0xba9   : > { %v831_v58 = vshll.u32 %v830_v57, 16 }
 0xbab   : > { %v832_v60 = vadd.s32 %v831_v58, %v829_v59 }
 0xbad   : > { %vm833_vm2 = vcmp.ge.s32.totalorder %v832_v60, 97 }
 0xbae   : > { %v835_v62 = vsel %vm833_vm2, %v814_v45, %v834_v61  ;;  %v836_v63 = vsel %vm833_vm2, %v818_v49, %v815_v46 }
 0xbaf   : > { %v837_v0 = vsub.s32 %v836_v63, %v835_v62 }
 0xbb1   : > { %v838_v1 = vshra.s32 %v837_v0, 1 }
 0xbb3   : > { %v839_v2 = vadd.s32 %v838_v1, %v835_v62 }
 0xbb5   : > { %vm840_vm3 = vcmp.le.s32.totalorder %v1815_v23, %v839_v2  ;;  %v855_v14 = vadd.s32 1, %v839_v2 }
 0xbb6   : > { %v841_v3 = vsel %vm840_vm3, 1, %v1626_v24 }
 0xbb7   : > { %v843_v4 = vshrl.u32 %v841_v3, 16  ;;  %v842_v5 = vand.u32 65535, %v841_v3 }
 0xbb9   : > { %v845_v6 = vcvt.s32.f32 %v843_v4  ;;  %v844_v7 = vcvt.s32.f32 %v842_v5 }
 0xbbb   : > { %848 = vadd.xlane.f32.xlu0 %v845_v6  ;;  %846 = vadd.xlane.f32.xlu1 %v844_v7 }
 0xc44   : > { %v849_v8 = vpop.xlane.xlu0 %848  ;;  %v847_v9 = vpop.xlane.xlu1 %846 }
 0xc45   : > { %v851_v10 = vcvt.f32.s32 %v849_v8  ;;  %v850_v12 = vcvt.f32.s32 %v847_v9 }
 0xc47   : > { %v852_v11 = vshll.u32 %v851_v10, 16 }
 0xc49   : > { %v853_v13 = vadd.s32 %v852_v11, %v850_v12 }
 0xc4b   : > { %vm854_vm4 = vcmp.ge.s32.totalorder %v853_v13, 97 }
 0xc4c   : > { %v856_v15 = vsel %vm854_vm4, %v835_v62, %v855_v14  ;;  %v857_v16 = vsel %vm854_vm4, %v839_v2, %v836_v63 }
 0xc4d   : > { %v858_v17 = vsub.s32 %v857_v16, %v856_v15 }
 0xc4f   : > { %v859_v18 = vshra.s32 %v858_v17, 1 }
 0xc51   : > { %v860_v19 = vadd.s32 %v859_v18, %v856_v15 }
 0xc53   : > { %vm861_vm5 = vcmp.le.s32.totalorder %v1815_v23, %v860_v19  ;;  %v876_v33 = vadd.s32 1, %v860_v19 }
 0xc54   : > { %v862_v20 = vsel %vm861_vm5, 1, %v1626_v24 }
 0xc55   : > { %v864_v21 = vshrl.u32 %v862_v20, 16  ;;  %v863_v22 = vand.u32 65535, %v862_v20 }
 0xc57   : > { %v866_v25 = vcvt.s32.f32 %v864_v21  ;;  %v865_v26 = vcvt.s32.f32 %v863_v22 }
 0xc59   : > { %869 = vadd.xlane.f32.xlu0 %v866_v25  ;;  %867 = vadd.xlane.f32.xlu1 %v865_v26 }
 0xce2   : > { %v870_v27 = vpop.xlane.xlu0 %869  ;;  %v868_v28 = vpop.xlane.xlu1 %867 }
 0xce3   : > { %v872_v29 = vcvt.f32.s32 %v870_v27  ;;  %v871_v31 = vcvt.f32.s32 %v868_v28 }
 0xce5   : > { %v873_v30 = vshll.u32 %v872_v29, 16 }
 0xce7   : > { %v874_v32 = vadd.s32 %v873_v30, %v871_v31 }
 0xce9   : > { %vm875_vm6 = vcmp.ge.s32.totalorder %v874_v32, 97 }
 0xcea   : > { %v877_v34 = vsel %vm875_vm6, %v856_v15, %v876_v33  ;;  %v878_v35 = vsel %vm875_vm6, %v860_v19, %v857_v16 }
 0xceb   : > { %v879_v36 = vsub.s32 %v878_v35, %v877_v34 }
 0xced   : > { %v880_v37 = vshra.s32 %v879_v36, 1 }
 0xcef   : > { %v881_v38 = vadd.s32 %v880_v37, %v877_v34 }
 0xcf1   : > { %vm882_vm7 = vcmp.le.s32.totalorder %v1815_v23, %v881_v38  ;;  %v897_v50 = vadd.s32 1, %v881_v38 }
 0xcf2   : > { %v883_v39 = vsel %vm882_vm7, 1, %v1626_v24 }
 0xcf3   : > { %v885_v40 = vshrl.u32 %v883_v39, 16  ;;  %v884_v41 = vand.u32 65535, %v883_v39 }
 0xcf5   : > { %v887_v42 = vcvt.s32.f32 %v885_v40  ;;  %v886_v43 = vcvt.s32.f32 %v884_v41 }
 0xcf7   : > { %890 = vadd.xlane.f32.xlu0 %v887_v42  ;;  %888 = vadd.xlane.f32.xlu1 %v886_v43 }
 0xd80   : > { %v891_v44 = vpop.xlane.xlu0 %890  ;;  %v889_v45 = vpop.xlane.xlu1 %888 }
 0xd81   : > { %v893_v46 = vcvt.f32.s32 %v891_v44  ;;  %v892_v48 = vcvt.f32.s32 %v889_v45 }
 0xd83   : > { %v894_v47 = vshll.u32 %v893_v46, 16 }
 0xd85   : > { %v895_v49 = vadd.s32 %v894_v47, %v892_v48 }
 0xd87   : > { %vm896_vm8 = vcmp.ge.s32.totalorder %v895_v49, 97 }
 0xd88   : > { %v898_v51 = vsel %vm896_vm8, %v877_v34, %v897_v50  ;;  %v899_v52 = vsel %vm896_vm8, %v881_v38, %v878_v35 }
 0xd89   : > { %v900_v53 = vsub.s32 %v899_v52, %v898_v51 }
 0xd8b   : > { %v901_v54 = vshra.s32 %v900_v53, 1 }
 0xd8d   : > { %v902_v55 = vadd.s32 %v901_v54, %v898_v51 }
 0xd8f   : > { %vm903_vm9 = vcmp.le.s32.totalorder %v1815_v23, %v902_v55  ;;  %v918_v3 = vadd.s32 1, %v902_v55 }
 0xd90   : > { %v904_v56 = vsel %vm903_vm9, 1, %v1626_v24 }
 0xd91   : > { %v906_v57 = vshrl.u32 %v904_v56, 16  ;;  %v905_v58 = vand.u32 65535, %v904_v56 }
 0xd93   : > { %v908_v59 = vcvt.s32.f32 %v906_v57  ;;  %v907_v60 = vcvt.s32.f32 %v905_v58 }
 0xd95   : > { %911 = vadd.xlane.f32.xlu0 %v908_v59  ;;  %909 = vadd.xlane.f32.xlu1 %v907_v60 }
 0xe1e   : > { %v912_v61 = vpop.xlane.xlu0 %911  ;;  %v910_v62 = vpop.xlane.xlu1 %909 }
 0xe1f   : > { %v914_v63 = vcvt.f32.s32 %v912_v61  ;;  %v913_v1 = vcvt.f32.s32 %v910_v62 }
 0xe21   : > { %v915_v0 = vshll.u32 %v914_v63, 16 }
 0xe23   : > { %v916_v2 = vadd.s32 %v915_v0, %v913_v1 }
 0xe25   : > { %vm917_vm10 = vcmp.ge.s32.totalorder %v916_v2, 97 }
 0xe26   : > { %v919_v4 = vsel %vm917_vm10, %v898_v51, %v918_v3  ;;  %v920_v5 = vsel %vm917_vm10, %v902_v55, %v899_v52 }
 0xe27   : > { %v921_v6 = vsub.s32 %v920_v5, %v919_v4 }
 0xe29   : > { %v922_v7 = vshra.s32 %v921_v6, 1 }
 0xe2b   : > { %v923_v8 = vadd.s32 %v922_v7, %v919_v4 }
 0xe2d   : > { %vm924_vm11 = vcmp.le.s32.totalorder %v1815_v23, %v923_v8  ;;  %v939_v20 = vadd.s32 1, %v923_v8 }
 0xe2e   : > { %v925_v9 = vsel %vm924_vm11, 1, %v1626_v24 }
 0xe2f   : > { %v927_v10 = vshrl.u32 %v925_v9, 16  ;;  %v926_v11 = vand.u32 65535, %v925_v9 }
 0xe31   : > { %v929_v12 = vcvt.s32.f32 %v927_v10  ;;  %v928_v13 = vcvt.s32.f32 %v926_v11 }
 0xe33   : > { %932 = vadd.xlane.f32.xlu0 %v929_v12  ;;  %930 = vadd.xlane.f32.xlu1 %v928_v13 }
 0xebc   : > { %v933_v14 = vpop.xlane.xlu0 %932  ;;  %v931_v15 = vpop.xlane.xlu1 %930 }
 0xebd   : > { %v935_v16 = vcvt.f32.s32 %v933_v14  ;;  %v934_v18 = vcvt.f32.s32 %v931_v15 }
 0xebf   : > { %v936_v17 = vshll.u32 %v935_v16, 16 }
 0xec1   : > { %v937_v19 = vadd.s32 %v936_v17, %v934_v18 }
 0xec3   : > { %vm938_vm12 = vcmp.ge.s32.totalorder %v937_v19, 97 }
 0xec4   : > { %v940_v21 = vsel %vm938_vm12, %v919_v4, %v939_v20  ;;  %v941_v22 = vsel %vm938_vm12, %v923_v8, %v920_v5 }
 0xec5   : > { %v942_v25 = vsub.s32 %v941_v22, %v940_v21 }
 0xec7   : > { %v943_v26 = vshra.s32 %v942_v25, 1 }
 0xec9   : > { %v944_v27 = vadd.s32 %v943_v26, %v940_v21 }
 0xecb   : > { %vm945_vm13 = vcmp.le.s32.totalorder %v1815_v23, %v944_v27  ;;  %v960_v39 = vadd.s32 1, %v944_v27 }
 0xecc   : > { %v946_v28 = vsel %vm945_vm13, 1, %v1626_v24 }
 0xecd   : > { %v948_v29 = vshrl.u32 %v946_v28, 16  ;;  %v947_v30 = vand.u32 65535, %v946_v28 }
 0xecf   : > { %v950_v31 = vcvt.s32.f32 %v948_v29  ;;  %v949_v32 = vcvt.s32.f32 %v947_v30 }
 0xed1   : > { %953 = vadd.xlane.f32.xlu0 %v950_v31  ;;  %951 = vadd.xlane.f32.xlu1 %v949_v32 }
 0xf5a   : > { %v954_v33 = vpop.xlane.xlu0 %953  ;;  %v952_v34 = vpop.xlane.xlu1 %951 }
 0xf5b   : > { %v956_v35 = vcvt.f32.s32 %v954_v33  ;;  %v955_v37 = vcvt.f32.s32 %v952_v34 }
 0xf5d   : > { %v957_v36 = vshll.u32 %v956_v35, 16 }
 0xf5f   : > { %v958_v38 = vadd.s32 %v957_v36, %v955_v37 }
 0xf61   : > { %vm959_vm14 = vcmp.ge.s32.totalorder %v958_v38, 97 }
 0xf62   : > { %v961_v40 = vsel %vm959_vm14, %v940_v21, %v960_v39  ;;  %v962_v41 = vsel %vm959_vm14, %v944_v27, %v941_v22 }
 0xf63   : > { %v963_v42 = vsub.s32 %v962_v41, %v961_v40 }
 0xf65   : > { %v964_v43 = vshra.s32 %v963_v42, 1 }
 0xf67   : > { %v965_v44 = vadd.s32 %v964_v43, %v961_v40 }
 0xf69   : > { %vm966_vm15 = vcmp.le.s32.totalorder %v1815_v23, %v965_v44  ;;  %v981_v56 = vadd.s32 1, %v965_v44 }
 0xf6a   : > { %v967_v45 = vsel %vm966_vm15, 1, %v1626_v24 }
 0xf6b   : > { %v969_v46 = vshrl.u32 %v967_v45, 16  ;;  %v968_v47 = vand.u32 65535, %v967_v45 }
 0xf6d   : > { %v971_v48 = vcvt.s32.f32 %v969_v46  ;;  %v970_v49 = vcvt.s32.f32 %v968_v47 }
 0xf6f   : > { %974 = vadd.xlane.f32.xlu0 %v971_v48  ;;  %972 = vadd.xlane.f32.xlu1 %v970_v49 }
 0xff8   : > { %v975_v50 = vpop.xlane.xlu0 %974  ;;  %v973_v51 = vpop.xlane.xlu1 %972 }
 0xff9   : > { %v977_v52 = vcvt.f32.s32 %v975_v50  ;;  %v976_v54 = vcvt.f32.s32 %v973_v51 }
 0xffb   : > { %v978_v53 = vshll.u32 %v977_v52, 16 }
 0xffd   : > { %v979_v55 = vadd.s32 %v978_v53, %v976_v54 }
 0xfff   : > { %vm980_vm0 = vcmp.ge.s32.totalorder %v979_v55, 97 }
0x1000   : > { %v982_v57 = vsel %vm980_vm0, %v961_v40, %v981_v56  ;;  %v983_v58 = vsel %vm980_vm0, %v965_v44, %v962_v41 }
0x1001   : > { %v984_v59 = vsub.s32 %v983_v58, %v982_v57 }
0x1003   : > { %v985_v60 = vshra.s32 %v984_v59, 1 }
0x1005   : > { %v986_v61 = vadd.s32 %v985_v60, %v982_v57 }
0x1007   : > { %vm987_vm1 = vcmp.le.s32.totalorder %v1815_v23, %v986_v61  ;;  %v1002_v9 = vadd.s32 1, %v986_v61 }
0x1008   : > { %v988_v62 = vsel %vm987_vm1, 1, %v1626_v24 }
0x1009   : > { %v990_v63 = vshrl.u32 %v988_v62, 16  ;;  %v989_v0 = vand.u32 65535, %v988_v62 }
0x100b   : > { %v992_v1 = vcvt.s32.f32 %v990_v63  ;;  %v991_v2 = vcvt.s32.f32 %v989_v0 }
0x100d   : > { %995 = vadd.xlane.f32.xlu0 %v992_v1  ;;  %993 = vadd.xlane.f32.xlu1 %v991_v2 }
0x1096   : > { %v996_v3 = vpop.xlane.xlu0 %995  ;;  %v994_v4 = vpop.xlane.xlu1 %993 }
0x1097   : > { %v998_v5 = vcvt.f32.s32 %v996_v3  ;;  %v997_v7 = vcvt.f32.s32 %v994_v4 }
0x1099   : > { %v999_v6 = vshll.u32 %v998_v5, 16 }
0x109b   : > { %v1000_v8 = vadd.s32 %v999_v6, %v997_v7 }
0x109d   : > { %vm1001_vm2 = vcmp.ge.s32.totalorder %v1000_v8, 97 }
0x109e   : > { %v1003_v10 = vsel %vm1001_vm2, %v982_v57, %v1002_v9  ;;  %v1004_v11 = vsel %vm1001_vm2, %v986_v61, %v983_v58 }
0x109f   : > { %v1005_v12 = vsub.s32 %v1004_v11, %v1003_v10 }
0x10a1   : > { %v1006_v13 = vshra.s32 %v1005_v12, 1 }
0x10a3   : > { %v1007_v14 = vadd.s32 %v1006_v13, %v1003_v10 }
0x10a5   : > { %vm1008_vm3 = vcmp.le.s32.totalorder %v1815_v23, %v1007_v14  ;;  %v1023_v28 = vadd.s32 1, %v1007_v14 }
0x10a6   : > { %v1009_v15 = vsel %vm1008_vm3, 1, %v1626_v24 }
0x10a7   : > { %v1011_v16 = vshrl.u32 %v1009_v15, 16  ;;  %v1010_v17 = vand.u32 65535, %v1009_v15 }
0x10a9   : > { %v1013_v18 = vcvt.s32.f32 %v1011_v16  ;;  %v1012_v19 = vcvt.s32.f32 %v1010_v17 }
0x10ab   : > { %1016 = vadd.xlane.f32.xlu0 %v1013_v18  ;;  %1014 = vadd.xlane.f32.xlu1 %v1012_v19 }
0x1134   : > { %v1017_v20 = vpop.xlane.xlu0 %1016  ;;  %v1015_v21 = vpop.xlane.xlu1 %1014 }
0x1135   : > { %v1019_v22 = vcvt.f32.s32 %v1017_v20  ;;  %v1018_v26 = vcvt.f32.s32 %v1015_v21 }
0x1137   : > { %v1020_v25 = vshll.u32 %v1019_v22, 16 }
0x1139   : > { %v1021_v27 = vadd.s32 %v1020_v25, %v1018_v26 }
0x113b   : > { %vm1022_vm4 = vcmp.ge.s32.totalorder %v1021_v27, 97 }
0x113c   : > { %v1024_v29 = vsel %vm1022_vm4, %v1003_v10, %v1023_v28  ;;  %v1025_v30 = vsel %vm1022_vm4, %v1007_v14, %v1004_v11 }
0x113d   : > { %v1026_v31 = vsub.s32 %v1025_v30, %v1024_v29 }
0x113f   : > { %v1027_v32 = vshra.s32 %v1026_v31, 1 }
0x1141   : > { %v1028_v33 = vadd.s32 %v1027_v32, %v1024_v29 }
0x1143   : > { %vm1029_vm5 = vcmp.le.s32.totalorder %v1815_v23, %v1028_v33  ;;  %v1044_v45 = vadd.s32 1, %v1028_v33 }
0x1144   : > { %v1030_v34 = vsel %vm1029_vm5, 1, %v1626_v24 }
0x1145   : > { %v1032_v35 = vshrl.u32 %v1030_v34, 16  ;;  %v1031_v36 = vand.u32 65535, %v1030_v34 }
0x1147   : > { %v1034_v37 = vcvt.s32.f32 %v1032_v35  ;;  %v1033_v38 = vcvt.s32.f32 %v1031_v36 }
0x1149   : > { %1037 = vadd.xlane.f32.xlu0 %v1034_v37  ;;  %1035 = vadd.xlane.f32.xlu1 %v1033_v38 }
0x11d2   : > { %v1038_v39 = vpop.xlane.xlu0 %1037  ;;  %v1036_v40 = vpop.xlane.xlu1 %1035 }
0x11d3   : > { %v1040_v41 = vcvt.f32.s32 %v1038_v39  ;;  %v1039_v43 = vcvt.f32.s32 %v1036_v40 }
0x11d5   : > { %v1041_v42 = vshll.u32 %v1040_v41, 16 }
0x11d7   : > { %v1042_v44 = vadd.s32 %v1041_v42, %v1039_v43 }
0x11d9   : > { %vm1043_vm6 = vcmp.ge.s32.totalorder %v1042_v44, 97 }
0x11da   : > { %v1045_v46 = vsel %vm1043_vm6, %v1024_v29, %v1044_v45  ;;  %v1046_v47 = vsel %vm1043_vm6, %v1028_v33, %v1025_v30 }
0x11db   : > { %v1047_v48 = vsub.s32 %v1046_v47, %v1045_v46 }
0x11dd   : > { %v1048_v49 = vshra.s32 %v1047_v48, 1 }
0x11df   : > { %v1049_v50 = vadd.s32 %v1048_v49, %v1045_v46 }
0x11e1   : > { %vm1050_vm7 = vcmp.le.s32.totalorder %v1815_v23, %v1049_v50  ;;  %v1065_v62 = vadd.s32 1, %v1049_v50 }
0x11e2   : > { %v1051_v51 = vsel %vm1050_vm7, 1, %v1626_v24 }
0x11e3   : > { %v1053_v52 = vshrl.u32 %v1051_v51, 16  ;;  %v1052_v53 = vand.u32 65535, %v1051_v51 }
0x11e5   : > { %v1055_v54 = vcvt.s32.f32 %v1053_v52  ;;  %v1054_v55 = vcvt.s32.f32 %v1052_v53 }
0x11e7   : > { %1058 = vadd.xlane.f32.xlu0 %v1055_v54  ;;  %1056 = vadd.xlane.f32.xlu1 %v1054_v55 }
0x1270   : > { %v1059_v56 = vpop.xlane.xlu0 %1058  ;;  %v1057_v57 = vpop.xlane.xlu1 %1056 }
0x1271   : > { %v1061_v58 = vcvt.f32.s32 %v1059_v56  ;;  %v1060_v60 = vcvt.f32.s32 %v1057_v57 }
0x1273   : > { %v1062_v59 = vshll.u32 %v1061_v58, 16 }
0x1275   : > { %v1063_v61 = vadd.s32 %v1062_v59, %v1060_v60 }
0x1277   : > { %vm1064_vm8 = vcmp.ge.s32.totalorder %v1063_v61, 97 }
0x1278   : > { %v1066_v63 = vsel %vm1064_vm8, %v1045_v46, %v1065_v62  ;;  %v1067_v0 = vsel %vm1064_vm8, %v1049_v50, %v1046_v47 }
0x1279   : > { %v1068_v1 = vsub.s32 %v1067_v0, %v1066_v63 }
0x127b   : > { %v1069_v2 = vshra.s32 %v1068_v1, 1 }
0x127d   : > { %v1070_v3 = vadd.s32 %v1069_v2, %v1066_v63 }
0x127f   : > { %vm1071_vm9 = vcmp.le.s32.totalorder %v1815_v23, %v1070_v3  ;;  %v1086_v15 = vadd.s32 1, %v1070_v3 }
0x1280   : > { %v1072_v4 = vsel %vm1071_vm9, 1, %v1626_v24 }
0x1281   : > { %v1074_v5 = vshrl.u32 %v1072_v4, 16  ;;  %v1073_v6 = vand.u32 65535, %v1072_v4 }
0x1283   : > { %v1076_v7 = vcvt.s32.f32 %v1074_v5  ;;  %v1075_v8 = vcvt.s32.f32 %v1073_v6 }
0x1285   : > { %1079 = vadd.xlane.f32.xlu0 %v1076_v7  ;;  %1077 = vadd.xlane.f32.xlu1 %v1075_v8 }
0x130e   : > { %v1080_v9 = vpop.xlane.xlu0 %1079  ;;  %v1078_v10 = vpop.xlane.xlu1 %1077 }
0x130f   : > { %v1082_v11 = vcvt.f32.s32 %v1080_v9  ;;  %v1081_v13 = vcvt.f32.s32 %v1078_v10 }
0x1311   : > { %v1083_v12 = vshll.u32 %v1082_v11, 16 }
0x1313   : > { %v1084_v14 = vadd.s32 %v1083_v12, %v1081_v13 }
0x1315   : > { %vm1085_vm10 = vcmp.ge.s32.totalorder %v1084_v14, 97 }
0x1316   : > { %v1087_v16 = vsel %vm1085_vm10, %v1066_v63, %v1086_v15  ;;  %v1088_v17 = vsel %vm1085_vm10, %v1070_v3, %v1067_v0 }
0x1317   : > { %v1089_v18 = vsub.s32 %v1088_v17, %v1087_v16 }
0x1319   : > { %v1090_v19 = vshra.s32 %v1089_v18, 1 }
0x131b   : > { %v1091_v20 = vadd.s32 %v1090_v19, %v1087_v16 }
0x131d   : > { %vm1092_vm11 = vcmp.le.s32.totalorder %v1815_v23, %v1091_v20  ;;  %v1107_v34 = vadd.s32 1, %v1091_v20 }
0x131e   : > { %v1093_v21 = vsel %vm1092_vm11, 1, %v1626_v24 }
0x131f   : > { %v1095_v22 = vshrl.u32 %v1093_v21, 16  ;;  %v1094_v25 = vand.u32 65535, %v1093_v21 }
0x1321   : > { %v1097_v26 = vcvt.s32.f32 %v1095_v22  ;;  %v1096_v27 = vcvt.s32.f32 %v1094_v25 }
0x1323   : > { %1100 = vadd.xlane.f32.xlu0 %v1097_v26  ;;  %1098 = vadd.xlane.f32.xlu1 %v1096_v27 }
0x13ac   : > { %v1101_v28 = vpop.xlane.xlu0 %1100  ;;  %v1099_v29 = vpop.xlane.xlu1 %1098 }
0x13ad   : > { %v1103_v30 = vcvt.f32.s32 %v1101_v28  ;;  %v1102_v32 = vcvt.f32.s32 %v1099_v29 }
0x13af   : > { %v1104_v31 = vshll.u32 %v1103_v30, 16 }
0x13b1   : > { %v1105_v33 = vadd.s32 %v1104_v31, %v1102_v32 }
0x13b3   : > { %vm1106_vm12 = vcmp.ge.s32.totalorder %v1105_v33, 97 }
0x13b4   : > { %v1108_v35 = vsel %vm1106_vm12, %v1087_v16, %v1107_v34  ;;  %v1109_v36 = vsel %vm1106_vm12, %v1091_v20, %v1088_v17 }
0x13b5   : > { %v1110_v37 = vsub.s32 %v1109_v36, %v1108_v35 }
0x13b7   : > { %v1111_v38 = vshra.s32 %v1110_v37, 1 }
0x13b9   : > { %v1112_v39 = vadd.s32 %v1111_v38, %v1108_v35 }
0x13bb   : > { %vm1113_vm13 = vcmp.le.s32.totalorder %v1815_v23, %v1112_v39  ;;  %v1128_v51 = vadd.s32 1, %v1112_v39 }
0x13bc   : > { %v1114_v40 = vsel %vm1113_vm13, 1, %v1626_v24 }
0x13bd   : > { %v1116_v41 = vshrl.u32 %v1114_v40, 16  ;;  %v1115_v42 = vand.u32 65535, %v1114_v40 }
0x13bf   : > { %v1118_v43 = vcvt.s32.f32 %v1116_v41  ;;  %v1117_v44 = vcvt.s32.f32 %v1115_v42 }
0x13c1   : > { %1121 = vadd.xlane.f32.xlu0 %v1118_v43  ;;  %1119 = vadd.xlane.f32.xlu1 %v1117_v44 }
0x144a   : > { %v1122_v45 = vpop.xlane.xlu0 %1121  ;;  %v1120_v46 = vpop.xlane.xlu1 %1119 }
0x144b   : > { %v1124_v47 = vcvt.f32.s32 %v1122_v45  ;;  %v1123_v49 = vcvt.f32.s32 %v1120_v46 }
0x144d   : > { %v1125_v48 = vshll.u32 %v1124_v47, 16 }
0x144f   : > { %v1126_v50 = vadd.s32 %v1125_v48, %v1123_v49 }
0x1451   : > { %vm1127_vm14 = vcmp.ge.s32.totalorder %v1126_v50, 97 }
0x1452   : > { %v1129_v52 = vsel %vm1127_vm14, %v1108_v35, %v1128_v51 }
0x1453   : > { %vm1131_vm15 = vcmp.lt.f32.partialorder %v1815_v23, %v1129_v52 }
0x1454   : > { %v1132_v53 = vsel %vm1131_vm15, 1, %v1626_v24  ;;  %v1145_v58 = vsel %vm1131_vm15, %v1815_v23, 0.0 }
0x1455   : > { %v1134_v54 = vshrl.u32 %v1132_v53, 16  ;;  %v1133_v55 = vand.u32 65535, %v1132_v53 }
0x1457   : > { %v1136_v56 = vcvt.s32.f32 %v1134_v54  ;;  %v1135_v57 = vcvt.s32.f32 %v1133_v55 }
0x1459   : > { %1139 = vadd.xlane.f32.xlu0 %v1136_v56  ;;  %1137 = vadd.xlane.f32.xlu1 %v1135_v57 }
0x145d   : > { %1146 = vmax.xlane.f32.xlu0 %v1145_v58 }
0x14e2   : > { %v1140_v59 = vpop.xlane.xlu0 %1139  ;;  %v1138_v60 = vpop.xlane.xlu1 %1137 }
0x14e3   : > { %v1142_v61 = vcvt.f32.s32 %v1140_v59  ;;  %v1141_v63 = vcvt.f32.s32 %v1138_v60 }
0x14e5   : > { %v1143_v62 = vshll.u32 %v1142_v61, 16 }
0x14e6   : > { %v1147_v1 = vpop.xlane.xlu0 %1146 }
0x14e7   : > { %v1144_v0 = vadd.s32 %v1143_v62, %v1141_v63 }
0x14e9   : > { %vm1148_vm0 = vcmp.ge.s32.totalorder %v1144_v0, 96 }
0x14ea   : > { %v1149_v24 = vsel %vm1148_vm0, %v1147_v1, %v1129_v52 }
0x14eb   : > { %v1150_v2 = vadd.f32 %v1149_v24, %v1129_v52 }
0x14ed   : > { %v1151_v3 = vmul.f32 0.5, %v1150_v2 }
0x14ef   : > { %v1152_v4 = vmax.f32 %v1151_v3, 1e-37 }
0x14f1   : > { %1415 = vrcp.f32 %v1152_v4 }
0x14fe   : > { %v1416_v5 = vpop.eup %1415 }
0x14ff   : > { %v1154_v6 = vmul.f32 %v1416_v5, %v1152_v4 }
0x1501   : > { %v1155_v7 = vsub.f32 2.0, %v1154_v6 }
0x1503   : > { %v1156_v8 = vmul.f32 %v1416_v5, %v1155_v7 }
0x1505   : > { %v1157_v9 = vmul.f32 %v1156_v8, %v1815_v23 }
0x1507   : > { %1158 = vst [vmem:[%s314_s23] sm:$0xff] %v1157_v9 }
0x1508   : > { %1538 = shalt.err (!%p1535_p1)
}
0x1509   : > { %s1539_s6 = scalar_lea.hbm %s1171_s29, 128  ;;  %s1543_s1 = scalar_lea.hbm %s1928_s4, 256 }
0x150a   : > { %p1540_p2 = scmp.ne.s32.totalorder %s1171_s29, %s1539_s6  ;;  %p1544_p11 = scmp.lt.s32.totalorder %s1171_s29, %s1928_s4 }
0x150b   : > { %p1545_p0 = scmp.lt.s32.totalorder %s1543_s1, %s1539_s6 }
0x150c   : > { %p1541_p6 = pnand %p1540_p2, %p1746_p9 }
0x150d   : > { %p1546_p12 = por %p1545_p0, %p1544_p11 }
0x150e   : > { %p1542_p8 = pneg %p1541_p6 }
0x1510   : > { %p1547_p4 = pnand %p1546_p12, %p1542_p8 }
0x1512   : > { %1550 = shalt.err (!%p1547_p4)
}
0x1513   : > { %1333 = dma.vmem_to_hbm [thread:$0]  (%p1746_p9), %s1174_s14, 128, %s1171_s29, %s1160_s11  }
0x1514 PF: > { %s1185_s10 = sand.u32 1, %s1597_s15   ;;  %p1945_p3 = scmp.ne.s32.totalorder %s1933_s24, 0 }
0x1515   : > { %p1946_p7 = scmp.ge.s32.totalorder %s1617_s20, 2  ;;  %s1186_s26 = scalar_lea.sflag [#allocation4], %s1185_s10 }
0x1517   : > { %p1350_p13 = pnand %p1946_p7, %p1945_p3 }
0x1519   : > { %p1351_p5 = pneg %p1350_p13 }
0x151b   : > { %1592 = dma.done.wait (%p1351_p5), %s1186_s26, 128  }
0x151c   : > { %1594 = vsyncadd (%p1351_p5), %s1186_s26, 4294967168  ;;  %s24_s20 = sadd.s32 1, %s1617_s20   ;;  %s1947_s15 = smov %s1601_s16 }
0x151d   : > { %p21_p10 = scmp.ge.s32.totalorder %s24_s20, 4   ;;  %s1948_s16 = smov %s1605_s17 }
0x151e   : > { %s1949_s17 = smov %s1755_s30  ;;  %s1950_s18 = smov %s1613_s19 }
0x151f   : > { %s1951_s19 = smov %s1953_s13  ;;  %23 = sbr.rel (!%p21_p10) target bundleno = 12 (0xc), region = 104 }
0x1524   :  { %1191 = vsyncpa [#allocation3], 1 }
0x1525   :  { %1193 = vsyncpa [#allocation3 + $0x1], 1 }
0x1526   :  { %1194 = vsyncpa [#allocation6], 1 }
0x1527   :  { %1196 = vsyncpa [#allocation6 + $0x1], 1 }
0x1528   :  { %1197 = vsyncpa [#allocation9], 1 }
0x1529   :  { %1198 = vsyncpa [#allocation4], 1 }
0x152a   :  { %1200 = vsyncpa [#allocation4 + $0x1], 1 }

// kernel: tpu_custom_call.1
= control target key start
LH: loop header
LB: loop body
LE: loop exit
PB: predicated region body
PF: predicated region fallthrough
CT: control target
= control target key end

     0   :  { %s1924_s0 = inlined_call_operand.hbm [shape: f32[16,24], index: 0, kind: input, shape index: {}]   ;;  %s1925_s1 = inlined_call_operand.hbm [shape: f32[16,24], index: 1, kind: input, shape index: {}]   ;;  %s1926_s2 = inlined_call_operand.hbm [shape: f32[24,256], index: 2, kind: input, shape index: {}]   ;;  %s1927_s3 = inlined_call_operand.hbm [shape: f32[24,256], index: 3, kind: input, shape index: {}]   ;;  %s1928_s4 = inlined_call_operand.hbm [shape: f32[16,128], index: 4, kind: output, shape index: {}]  }
   0x1   :  { %1930 = sst [smem:[#allocation16_spill]] %s1924_s0 }
   0x2   :  { %1931 = sst [smem:[#allocation17_spill]] %s1925_s1 }
   0x3   :  { %9 = vsyncpa [#allocation3], 0 }
   0x4   :  { %11 = vsyncpa [#allocation3 + $0x1], 0 }
   0x5   :  { %12 = vsyncpa [#allocation6], 0 }
   0x6   :  { %14 = vsyncpa [#allocation6 + $0x1], 0 }
   0x7   :  { %15 = vsyncpa [#allocation9], 0 }
   0x8   :  { %16 = vsyncpa [#allocation4], 0 }
   0x9   :  { %18 = vsyncpa [#allocation4 + $0x1], 0  ;;  %s1655_s15 = smov 0   ;;  %s1657_s16 = smov 0  }
   0xa   :  { %s1659_s17 = smov 0   ;;  %s1661_s18 = smov 0  }
   0xb   :  { %s1663_s19 = smov 0   ;;  %s1665_s20 = smov 0  }
   0xc LB: > { %s1686_s21 = sadd.s32 4294967295, %s1617_s20   ;;  %s1300_s22 = sadd.s32 4294967294, %s1617_s20   ;;  %s1617_s20 = sphi %s1665_s20, %s24_s20   ;;  %s1613_s19 = sphi %s1663_s19, %s1951_s19   ;;  %s1609_s18 = sphi %s1661_s18, %s1950_s18   ;;  %s1605_s17 = sphi %s1659_s17, %s1949_s17   ;;  %s1601_s16 = sphi %s1657_s16, %s1948_s16   ;;  %s1597_s15 = sphi %s1655_s15, %s1947_s15  }
   0xd   : > { %p58_p0 = scmp.ne.s32.totalorder %s1601_s16, %s1597_s15  ;;  %p1929_p1 = scmp.eq.s32.totalorder %s1686_s21, 0 }
   0xe   : > { %p168_p3 = scmp.eq.s32.totalorder %s1300_s22, 1  ;;  %p1301_p5 = scmp.ge.s32.totalorder %s1617_s20, 1 }
   0xf   : > { %p1695_p4 = por %p1929_p1, %p58_p0  ;;  %p175_p7 = scmp.lt.s32.totalorder %s1617_s20, 3 }
  0x10   : > { %p1700_p6 = por %p168_p3, %p58_p0  ;;  %s1619_s26 = smov [#allocation7]  }
  0x11   : > { %p1705_p8 = pnand %p1301_p5, %p175_p7  ;;  %s191_s27 = sshll.u32 %s1619_s26, 4  ;;  %s192_s27 = int_to_ptr.vmem [resolvable:$true] %s191_s27 }
  0x12   : > { %s1933_s24 = scalar_select %p1700_p6, 1, 0 }
  0x13   : > { %p1335_p9 = pneg %p1705_p8  ;;  %s1620_s29 = smov [#allocation8]  }
  0x14   : > { %s208_s30 = sshll.u32 %s1620_s29, 4  ;;  %s1428_s5 = scalar_lea.vmem %s192_s27, 768  ;;  %s209_s30 = int_to_ptr.vmem [resolvable:$true] %s208_s30 }
  0x15   : > { %p1714_p11 = pnand %p1335_p9, %p1929_p1  ;;  %p1429_p13 = scmp.ne.s32.totalorder %s192_s27, %s1428_s5 }
  0x16   : > { %p1436_p5 = scmp.lt.s32.totalorder %s192_s27, %s192_s27  ;;  %p1437_p7 = scmp.lt.s32.totalorder %s1428_s5, %s1428_s5 }
  0x17   : > { %p1419_p12 = pneg %p1714_p11 }
  0x18   : > { %p1438_p10 = por %p1437_p7, %p1436_p5 }
  0x19   : > { %p1431_p0 = pnand %p1429_p13, %p1419_p12 }
  0x1b   : > { %p1432_p3 = pneg %p1431_p0 }
  0x1d   : > { %p1439_p9 = pnand %p1438_p10, %p1432_p3 }
  0x1f   : > { %1442 = shalt.err (!%p1439_p9)
}
  0x20   : > { %s1621_s6 = smov 256   ;;  %s1622_s7 = smov 16  }
  0x21   : > { %1338 = dma.hbm_to_vmem [thread:$0]  (!%p1714_p11), %s1926_s2, 768, %s192_s27, [#allocation6], %s1621_s6, %s1621_s6, %s1622_s7  }
  0x22   : > { %s1454_s10 = scalar_lea.vmem %s209_s30, 768  ;;  %p1462_p2 = scmp.lt.s32.totalorder %s209_s30, %s209_s30 }
  0x23   : > { %p1455_p1 = scmp.ne.s32.totalorder %s209_s30, %s1454_s10  ;;  %p1463_p6 = scmp.lt.s32.totalorder %s1454_s10, %s1454_s10 }
  0x25   : > { %p1457_p13 = pnand %p1455_p1, %p1419_p12  ;;  %p1464_p5 = por %p1463_p6, %p1462_p2 }
  0x27   : > { %p1458_p0 = pneg %p1457_p13 }
  0x29   : > { %p1465_p10 = pnand %p1464_p5, %p1458_p0 }
  0x2b   : > { %1468 = shalt.err (!%p1465_p10)
}
  0x2c   : > { %1341 = dma.hbm_to_vmem [thread:$0]  (!%p1714_p11), %s1927_s3, 768, %s209_s30, [#allocation9], %s1621_s6, %s1621_s6, %s1622_s7  }
  0x2d   : > { %s36_s13 = sadd.s32 1, %s1613_s19  ;;  %s45_s14 = sadd.s32 1, %s1605_s17 }
  0x2e   : > { %p38_p1 = scmp.ge.s32.totalorder %s36_s13, 2  ;;  %p52_p2 = scmp.ne.s32.totalorder %s1605_s17, %s1601_s16 }
  0x2f   : > { %p53_p6 = scmp.eq.s32.totalorder %s1617_s20, 0  ;;  %p1355_p12 = scmp.lt.s32.totalorder %s1617_s20, 2 }
  0x30   : > { %s1953_s13 = smov (%p38_p1, %s36_s13), 0  ;;  %p1936_p7 = scmp.eq.s32.totalorder %s1686_s21, 1 }
  0x31   : > { %p54_p3 = por %p53_p6, %p52_p2  ;;  %s40_s26 = ssub.s32 %s1613_s19, %s1953_s13 }
  0x32   : > { %p1746_p9 = por %p1936_p7, %p52_p2  ;;  %s222_s27 = sand.u32 1, %s1605_s17  }
  0x33   : > { %p43_p13 = scmp.eq.s32.totalorder %s40_s26, 0  ;;  %s1305_s28 = sshll.u32 %s222_s27, 3 }
  0x34   : > { %s1306_s29 = sshll.u32 %s1613_s19, 7  ;;  %s1938_s0 = sld [smem:[#allocation16_spill]] }
  0x35   : > { %s1755_s30 = scalar_select %p43_p13, %s1605_s17, %s45_s14  }
  0x36   : > { %s226_s8 = scalar_lea.vmem [#allocation2], %s1305_s28  ;;  %p1762_p11 = pnand %p1355_p12, %p54_p3 }
  0x37   : > { %s234_s9 = sshll.u32 %s226_s8, 4  ;;  %s1940_s1 = sld [smem:[#allocation17_spill]]  ;;  %s235_s9 = int_to_ptr.vmem [resolvable:$true] %s234_s9 }
  0x38   : > { %s223_s14 = scalar_lea.sflag [#allocation3], %s222_s27  ;;  %p1471_p0 = pneg %p1762_p11 }
  0x39   : > { %s1482_s5 = scalar_lea.vmem %s235_s9, 128  ;;  %s1623_s6 = smov [#allocation2]  }
  0x3a   : > { %s232_s7 = scalar_lea.hbm %s1938_s0, %s1306_s29  ;;  %p1483_p5 = scmp.ne.s32.totalorder %s235_s9, %s1482_s5 }
  0x3b   : > { %s1487_s8 = sshll.u32 %s1623_s6, 4  ;;  %s1488_s8 = int_to_ptr.vmem [resolvable:$false] %s1487_s8 }
  0x3c   : > { %p1485_p10 = pnand %p1483_p5, %p1471_p0  ;;  %s1489_s0 = scalar_lea.vmem %s1488_s8, 256 }
  0x3d   : > { %s1769_s26 = scalar_lea.hbm %s1940_s1, %s1306_s29  ;;  %p1490_p2 = scmp.lt.s32.totalorder %s235_s9, %s1488_s8 }
  0x3e   : > { %p1486_p1 = pneg %p1485_p10  ;;  %p1491_p6 = scmp.lt.s32.totalorder %s1489_s0, %s1482_s5 }
  0x40   : > { %p1492_p12 = por %p1491_p6, %p1490_p2 }
  0x42   : > { %p1493_p3 = pnand %p1492_p12, %p1486_p1 }
  0x44   : > { %1496 = shalt.err (!%p1493_p3)
}
  0x45   : > { %1345 = dma.hbm_to_vmem [thread:$0]  (!%p1762_p11), %s232_s7, 128, %s235_s9, %s223_s14  }
  0x46   : > { %s241_s27 = sand.u32 1, %s1617_s20   ;;  %s245_s29 = scalar_lea.vmem [#allocation5], %s1305_s28 }
  0x47   : > { %s253_s11 = sshll.u32 %s245_s29, 4  ;;  %s242_s12 = scalar_lea.sflag [#allocation6], %s241_s27  ;;  %s254_s11 = int_to_ptr.vmem [resolvable:$true] %s253_s11 }
  0x48   : > { %s1510_s1 = scalar_lea.vmem %s254_s11, 128  ;;  %s1624_s0 = smov [#allocation5]  }
  0x49   : > { %p1511_p7 = scmp.ne.s32.totalorder %s254_s11, %s1510_s1  ;;  %s1515_s5 = sshll.u32 %s1624_s0, 4  ;;  %s1516_s5 = int_to_ptr.vmem [resolvable:$false] %s1515_s5 }
  0x4a   : > { %s1517_s6 = scalar_lea.vmem %s1516_s5, 256  ;;  %p1518_p10 = scmp.lt.s32.totalorder %s254_s11, %s1516_s5 }
  0x4b   : > { %p1513_p13 = pnand %p1511_p7, %p1471_p0  ;;  %p1519_p1 = scmp.lt.s32.totalorder %s1517_s6, %s1510_s1 }
  0x4d   : > { %p1514_p5 = pneg %p1513_p13  ;;  %p1520_p2 = por %p1519_p1, %p1518_p10 }
  0x4f   : > { %p1521_p6 = pnand %p1520_p2, %p1514_p5 }
  0x51   : > { %1524 = shalt.err (!%p1521_p6)
}
  0x52   : > { %1348 = dma.hbm_to_vmem [thread:$0]  (!%p1762_p11), %s1769_s26, 128, %s254_s11, %s242_s12  }
  0x53   : > { %262 = sbr.rel (%p1705_p8) target bundleno = 5396 (0x1514), region = 36  ;;  %s1788_s28 = sand.u32 (!%p1705_p8), 1, %s1601_s16  }
  0x54   : > { %s1791_s7 = sshll.u32 (!%p1705_p8), %s1788_s28, 3  ;;  %s265_s1 = scalar_lea.sflag (!%p1705_p8), [#allocation3], %s1788_s28 }
  0x55   : > { %s268_s9 = scalar_lea.vmem (!%p1705_p8), [#allocation2], %s1791_s7 }
  0x58   : > { %1576 = dma.done.wait (%p1695_p4), %s265_s1, 128  }
  0x59   : > { %1578 = vsyncadd (%p1695_p4), %s265_s1, 4294967168  ;;  %s273_s25 = sand.u32 1, %s1686_s21   ;;  %s277_s26 = scalar_lea.vmem [#allocation5], %s1791_s7 }
  0x5a   : > { %s274_s10 = scalar_lea.sflag [#allocation6], %s273_s25 }
  0x5b   : > { %1580 = dma.done.wait (%p1695_p4), %s274_s10, 128  }
  0x5c   : > { %1582 = vsyncadd (%p1695_p4), %s274_s10, 4294967168  ;;  %p1941_p8 = scmp.eq.s32.totalorder %s1686_s21, 0 }
  0x5e   : > { %1584 = dma.done.wait (%p1941_p8), [#allocation6], 768   ;;  %p1942_p11 = pmov %p1941_p8 }
  0x5f   : > { %p1943_p0 = pmov %p1941_p8 }
  0x60   : > { %1586 = vsyncadd (%p1942_p11), [#allocation6], 4294966528 }
  0x61   : > { %1588 = dma.done.wait (%p1943_p0), [#allocation9], 768   ;;  %p1944_p12 = pmov %p1943_p0 }
  0x62   : > { %v1625_v0 = vmov 0.0   ;;  %v330_v1 = vld [vmem:[#allocation8 + $0x28] sm:$0xff]  ;;  %v323_v2 = vld [vmem:[#allocation7 + $0x28] sm:$0xff]  ;;  %v329_v3 = vld [vmem:[#allocation8 + $0x20] sm:$0xff]  ;;  %vm331_vm0 = vcmask 195584   ;;  %v1626_v24 = vmov 0  }
  0x63   : > { %1590 = vsyncadd (%p1944_p12), [#allocation9], 4294966528  ;;  %399 = vmatprep.mubr.f32.mxu0 %v1625_v0  ;;  %473 = vmatprep.mubr.f32.mxu1 %v1625_v0  ;;  %v322_v4 = vld [vmem:[#allocation7 + $0x20] sm:$0xff]  ;;  %v328_v5 = vld [vmem:[#allocation8 + $0x18] sm:$0xff]  ;;  %v1627_v36 = vmov 1073741824   ;;  %s1318_s21 = sshll.u32 %s1609_s18, 7 }
  0x64   : > { %361 = vmatprep.subr.mxu0 %v330_v1  ;;  %435 = vmatprep.subr.mxu1 %v323_v2  ;;  %v321_v6 = vld [vmem:[#allocation7 + $0x18] sm:$0xff]  ;;  %v327_v7 = vld [vmem:[#allocation8 + $0x10] sm:$0xff]  ;;  %v320_v8 = vld [vmem:[#allocation7 + $0x10] sm:$0xff]  ;;  %v1628_v38 = vmov 2147483647   ;;  %s314_s23 = scalar_lea.vmem [#allocation10], %s1791_s7  ;;  %s1171_s29 = scalar_lea.hbm %s1928_s4, %s1318_s21 }
  0x65   : > { %362 = vmatpush1.msra.mxu0 %v329_v3  ;;  %436 = vmatpush1.msra.mxu1 %v322_v4  ;;  %v326_v9 = vld [vmem:[#allocation8 + $0x8] sm:$0xff]  ;;  %v319_v10 = vld [vmem:[#allocation7 + $0x8] sm:$0xff]  ;;  %v325_v11 = vld [vmem:[#allocation8] sm:$0xff]  ;;  %s1173_s14 = sshll.u32 %s314_s23, 4  ;;  %s1160_s11 = scalar_lea.sflag [#allocation4], %s1788_s28  ;;  %s1174_s14 = int_to_ptr.vmem [resolvable:$true] %s1173_s14 }
  0x66   : > { %363 = vmatprep.subr.mxu0 %v328_v5  ;;  %437 = vmatprep.subr.mxu1 %v321_v6  ;;  %v318_v12 = vld [vmem:[#allocation7] sm:$0xff]  ;;  %v324_v13 = vld [vmem:[%s277_s26] sm:$0xff]  ;;  %s1525_s12 = scalar_lea.vmem %s1174_s14, 128  ;;  %s1629_s0 = smov [#allocation10]  }
  0x67   : > { %364 = vmatpush1.msra.mxu0 %v327_v7  ;;  %438 = vmatpush1.msra.mxu1 %v320_v8  ;;  %v317_v14 = vld [vmem:[%s268_s9] sm:$0xff]  ;;  %p1526_p4 = scmp.ne.s32.totalorder %s1174_s14, %s1525_s12  ;;  %s1529_s5 = sshll.u32 %s1629_s0, 4  ;;  %s1530_s5 = int_to_ptr.vmem [resolvable:$false] %s1529_s5 }
  0x68   : > { %365 = vmatprep.subr.mxu0 %v326_v9  ;;  %439 = vmatprep.subr.mxu1 %v319_v10  ;;  %s1531_s18 = scalar_lea.vmem %s1530_s5, 256  ;;  %p1532_p13 = scmp.lt.s32.totalorder %s1174_s14, %s1530_s5 }
  0x69   : > { %366 = vmatpush1.msra.mxu0 %v325_v11  ;;  %440 = vmatpush1.msra.mxu1 %v318_v12  ;;  %p1527_p3 = pnand %p1526_p4, %p1746_p9  ;;  %p1533_p5 = scmp.lt.s32.totalorder %s1531_s18, %s1525_s12 }
  0x6a   : > { %1315 = vmatmul.mubr.msk.f32.vlgmr.msra.gmra.mxu0 %vm331_vm0, %v324_v13  ;;  %1316 = vmatmul.mubr.msk.f32.vlgmr.msra.gmra.mxu1 %vm331_vm0, %v317_v14 }
  0x6b   : > { %p1528_p7 = pneg %p1527_p3  ;;  %p1534_p10 = por %p1533_p5, %p1532_p13 }
  0x6d   : > { %p1535_p1 = pnand %p1534_p10, %p1528_p7 }
 0x12a   : > { %v401_v15 = vpop.f32.mrf.mxu0  ;;  %v475_v16 = vpop.f32.mrf.mxu1 }
 0x12b   : > { %v476_v17 = vadd.f32 %v475_v16, %v401_v15 }
 0x12c   : > { %v403_v18 = vpop.f32.mrf.mxu0  ;;  %v477_v19 = vpop.f32.mrf.mxu1 }
 0x12d   : > { %v478_v20 = vadd.f32 %v477_v19, %v403_v18  ;;  %v480_v21 = vmul.f32 %v476_v17, %v476_v17 }
 0x12f   : > { %v481_v22 = vmul.f32 %v478_v20, %v478_v20 }
 0x131   : > { %v1815_v23 = vadd.f32 %v481_v22, %v480_v21 }
 0x133   : > { %vm484_vm1 = vcmp.le.s32.totalorder %v1815_v23, 1073741823 }
 0x134   : > { %v485_v25 = vsel %vm484_vm1, 1, %v1626_v24 }
 0x135   : > { %v487_v26 = vshrl.u32 %v485_v25, 16  ;;  %v486_v28 = vand.u32 65535, %v485_v25 }
 0x137   : > { %v489_v27 = vcvt.s32.f32 %v487_v26  ;;  %v488_v29 = vcvt.s32.f32 %v486_v28 }
 0x139   : > { %492 = vadd.xlane.f32.xlu0 %v489_v27 }
 0x13d   : > { %490 = vadd.xlane.f32.xlu0 %v488_v29 }
 0x1c2   : > { %v493_v30 = vpop.xlane.xlu0 %492 }
 0x1c3   : > { %v495_v31 = vcvt.f32.s32 %v493_v30 }
 0x1c5   : > { %v496_v33 = vshll.u32 %v495_v31, 16 }
 0x1c6   : > { %v491_v32 = vpop.xlane.xlu0 %490 }
 0x1c7   : > { %v494_v34 = vcvt.f32.s32 %v491_v32 }
 0x1c9   : > { %v497_v35 = vadd.s32 %v496_v33, %v494_v34 }
 0x1cb   : > { %vm498_vm2 = vcmp.ge.s32.totalorder %v497_v35, 97 }
 0x1cc   : > { %v499_v37 = vsel %vm498_vm2, 0, %v1627_v36  ;;  %v500_v39 = vsel %vm498_vm2, 1073741823, %v1628_v38 }
 0x1cd   : > { %v501_v40 = vsub.s32 %v500_v39, %v499_v37 }
 0x1cf   : > { %v502_v41 = vshra.s32 %v501_v40, 1 }
 0x1d1   : > { %v503_v42 = vadd.s32 %v502_v41, %v499_v37 }
 0x1d3   : > { %vm504_vm3 = vcmp.le.s32.totalorder %v1815_v23, %v503_v42  ;;  %v519_v54 = vadd.s32 1, %v503_v42 }
 0x1d4   : > { %v505_v43 = vsel %vm504_vm3, 1, %v1626_v24 }
 0x1d5   : > { %v507_v44 = vshrl.u32 %v505_v43, 16  ;;  %v506_v46 = vand.u32 65535, %v505_v43 }
 0x1d7   : > { %v509_v45 = vcvt.s32.f32 %v507_v44  ;;  %v508_v47 = vcvt.s32.f32 %v506_v46 }
 0x1d9   : > { %512 = vadd.xlane.f32.xlu1 %v509_v45 }
 0x1dd   : > { %510 = vadd.xlane.f32.xlu1 %v508_v47 }
 0x262   : > { %v513_v48 = vpop.xlane.xlu1 %512 }
 0x263   : > { %v515_v49 = vcvt.f32.s32 %v513_v48 }
 0x265   : > { %v516_v51 = vshll.u32 %v515_v49, 16 }
 0x266   : > { %v511_v50 = vpop.xlane.xlu1 %510 }
 0x267   : > { %v514_v52 = vcvt.f32.s32 %v511_v50 }
 0x269   : > { %v517_v53 = vadd.s32 %v516_v51, %v514_v52 }
 0x26b   : > { %vm518_vm4 = vcmp.ge.s32.totalorder %v517_v53, 97 }
 0x26c   : > { %v520_v55 = vsel %vm518_vm4, %v499_v37, %v519_v54  ;;  %v521_v56 = vsel %vm518_vm4, %v503_v42, %v500_v39 }
 0x26d   : > { %v522_v57 = vsub.s32 %v521_v56, %v520_v55 }
 0x26f   : > { %v523_v58 = vshra.s32 %v522_v57, 1 }
 0x271   : > { %v524_v59 = vadd.s32 %v523_v58, %v520_v55 }
 0x273   : > { %vm525_vm5 = vcmp.le.s32.totalorder %v1815_v23, %v524_v59  ;;  %v540_v7 = vadd.s32 1, %v524_v59 }
 0x274   : > { %v526_v60 = vsel %vm525_vm5, 1, %v1626_v24 }
 0x275   : > { %v528_v61 = vshrl.u32 %v526_v60, 16  ;;  %v527_v62 = vand.u32 65535, %v526_v60 }
 0x277   : > { %v530_v63 = vcvt.s32.f32 %v528_v61  ;;  %v529_v0 = vcvt.s32.f32 %v527_v62 }
 0x279   : > { %533 = vadd.xlane.f32.xlu0 %v530_v63  ;;  %531 = vadd.xlane.f32.xlu1 %v529_v0 }
 0x302   : > { %v534_v1 = vpop.xlane.xlu0 %533  ;;  %v532_v2 = vpop.xlane.xlu1 %531 }
 0x303   : > { %v536_v3 = vcvt.f32.s32 %v534_v1  ;;  %v535_v5 = vcvt.f32.s32 %v532_v2 }
 0x305   : > { %v537_v4 = vshll.u32 %v536_v3, 16 }
 0x307   : > { %v538_v6 = vadd.s32 %v537_v4, %v535_v5 }
 0x309   : > { %vm539_vm6 = vcmp.ge.s32.totalorder %v538_v6, 97 }
 0x30a   : > { %v541_v8 = vsel %vm539_vm6, %v520_v55, %v540_v7  ;;  %v542_v9 = vsel %vm539_vm6, %v524_v59, %v521_v56 }
 0x30b   : > { %v543_v10 = vsub.s32 %v542_v9, %v541_v8 }
 0x30d   : > { %v544_v11 = vshra.s32 %v543_v10, 1 }
 0x30f   : > { %v545_v12 = vadd.s32 %v544_v11, %v541_v8 }
 0x311   : > { %vm546_vm7 = vcmp.le.s32.totalorder %v1815_v23, %v545_v12  ;;  %v561_v26 = vadd.s32 1, %v545_v12 }
 0x312   : > { %v547_v13 = vsel %vm546_vm7, 1, %v1626_v24 }
 0x313   : > { %v549_v14 = vshrl.u32 %v547_v13, 16  ;;  %v548_v15 = vand.u32 65535, %v547_v13 }
 0x315   : > { %v551_v16 = vcvt.s32.f32 %v549_v14  ;;  %v550_v17 = vcvt.s32.f32 %v548_v15 }
 0x317   : > { %554 = vadd.xlane.f32.xlu0 %v551_v16  ;;  %552 = vadd.xlane.f32.xlu1 %v550_v17 }
 0x3a0   : > { %v555_v18 = vpop.xlane.xlu0 %554  ;;  %v553_v19 = vpop.xlane.xlu1 %552 }
 0x3a1   : > { %v557_v20 = vcvt.f32.s32 %v555_v18  ;;  %v556_v22 = vcvt.f32.s32 %v553_v19 }
 0x3a3   : > { %v558_v21 = vshll.u32 %v557_v20, 16 }
 0x3a5   : > { %v559_v25 = vadd.s32 %v558_v21, %v556_v22 }
 0x3a7   : > { %vm560_vm8 = vcmp.ge.s32.totalorder %v559_v25, 97 }
 0x3a8   : > { %v562_v27 = vsel %vm560_vm8, %v541_v8, %v561_v26  ;;  %v563_v28 = vsel %vm560_vm8, %v545_v12, %v542_v9 }
 0x3a9   : > { %v564_v29 = vsub.s32 %v563_v28, %v562_v27 }
 0x3ab   : > { %v565_v30 = vshra.s32 %v564_v29, 1 }
 0x3ad   : > { %v566_v31 = vadd.s32 %v565_v30, %v562_v27 }
 0x3af   : > { %vm567_vm9 = vcmp.le.s32.totalorder %v1815_v23, %v566_v31  ;;  %v582_v43 = vadd.s32 1, %v566_v31 }
 0x3b0   : > { %v568_v32 = vsel %vm567_vm9, 1, %v1626_v24 }
 0x3b1   : > { %v570_v33 = vshrl.u32 %v568_v32, 16  ;;  %v569_v34 = vand.u32 65535, %v568_v32 }
 0x3b3   : > { %v572_v35 = vcvt.s32.f32 %v570_v33  ;;  %v571_v36 = vcvt.s32.f32 %v569_v34 }
 0x3b5   : > { %575 = vadd.xlane.f32.xlu0 %v572_v35  ;;  %573 = vadd.xlane.f32.xlu1 %v571_v36 }
 0x43e   : > { %v576_v37 = vpop.xlane.xlu0 %575  ;;  %v574_v38 = vpop.xlane.xlu1 %573 }
 0x43f   : > { %v578_v39 = vcvt.f32.s32 %v576_v37  ;;  %v577_v41 = vcvt.f32.s32 %v574_v38 }
 0x441   : > { %v579_v40 = vshll.u32 %v578_v39, 16 }
 0x443   : > { %v580_v42 = vadd.s32 %v579_v40, %v577_v41 }
 0x445   : > { %vm581_vm10 = vcmp.ge.s32.totalorder %v580_v42, 97 }
 0x446   : > { %v583_v44 = vsel %vm581_vm10, %v562_v27, %v582_v43  ;;  %v584_v45 = vsel %vm581_vm10, %v566_v31, %v563_v28 }
 0x447   : > { %v585_v46 = vsub.s32 %v584_v45, %v583_v44 }
 0x449   : > { %v586_v47 = vshra.s32 %v585_v46, 1 }
 0x44b   : > { %v587_v48 = vadd.s32 %v586_v47, %v583_v44 }
 0x44d   : > { %vm588_vm11 = vcmp.le.s32.totalorder %v1815_v23, %v587_v48  ;;  %v603_v60 = vadd.s32 1, %v587_v48 }
 0x44e   : > { %v589_v49 = vsel %vm588_vm11, 1, %v1626_v24 }
 0x44f   : > { %v591_v50 = vshrl.u32 %v589_v49, 16  ;;  %v590_v51 = vand.u32 65535, %v589_v49 }
 0x451   : > { %v593_v52 = vcvt.s32.f32 %v591_v50  ;;  %v592_v53 = vcvt.s32.f32 %v590_v51 }
 0x453   : > { %596 = vadd.xlane.f32.xlu0 %v593_v52  ;;  %594 = vadd.xlane.f32.xlu1 %v592_v53 }
 0x4dc   : > { %v597_v54 = vpop.xlane.xlu0 %596  ;;  %v595_v55 = vpop.xlane.xlu1 %594 }
 0x4dd   : > { %v599_v56 = vcvt.f32.s32 %v597_v54  ;;  %v598_v58 = vcvt.f32.s32 %v595_v55 }
 0x4df   : > { %v600_v57 = vshll.u32 %v599_v56, 16 }
 0x4e1   : > { %v601_v59 = vadd.s32 %v600_v57, %v598_v58 }
 0x4e3   : > { %vm602_vm12 = vcmp.ge.s32.totalorder %v601_v59, 97 }
 0x4e4   : > { %v604_v61 = vsel %vm602_vm12, %v583_v44, %v603_v60  ;;  %v605_v62 = vsel %vm602_vm12, %v587_v48, %v584_v45 }
 0x4e5   : > { %v606_v63 = vsub.s32 %v605_v62, %v604_v61 }
 0x4e7   : > { %v607_v0 = vshra.s32 %v606_v63, 1 }
 0x4e9   : > { %v608_v1 = vadd.s32 %v607_v0, %v604_v61 }
 0x4eb   : > { %vm609_vm13 = vcmp.le.s32.totalorder %v1815_v23, %v608_v1  ;;  %v624_v13 = vadd.s32 1, %v608_v1 }
 0x4ec   : > { %v610_v2 = vsel %vm609_vm13, 1, %v1626_v24 }
 0x4ed   : > { %v612_v3 = vshrl.u32 %v610_v2, 16  ;;  %v611_v4 = vand.u32 65535, %v610_v2 }
 0x4ef   : > { %v614_v5 = vcvt.s32.f32 %v612_v3  ;;  %v613_v6 = vcvt.s32.f32 %v611_v4 }
 0x4f1   : > { %617 = vadd.xlane.f32.xlu0 %v614_v5  ;;  %615 = vadd.xlane.f32.xlu1 %v613_v6 }
 0x57a   : > { %v618_v7 = vpop.xlane.xlu0 %617  ;;  %v616_v8 = vpop.xlane.xlu1 %615 }
 0x57b   : > { %v620_v9 = vcvt.f32.s32 %v618_v7  ;;  %v619_v11 = vcvt.f32.s32 %v616_v8 }
 0x57d   : > { %v621_v10 = vshll.u32 %v620_v9, 16 }
 0x57f   : > { %v622_v12 = vadd.s32 %v621_v10, %v619_v11 }
 0x581   : > { %vm623_vm14 = vcmp.ge.s32.totalorder %v622_v12, 97 }
 0x582   : > { %v625_v14 = vsel %vm623_vm14, %v604_v61, %v624_v13  ;;  %v626_v15 = vsel %vm623_vm14, %v608_v1, %v605_v62 }
 0x583   : > { %v627_v16 = vsub.s32 %v626_v15, %v625_v14 }
 0x585   : > { %v628_v17 = vshra.s32 %v627_v16, 1 }
 0x587   : > { %v629_v18 = vadd.s32 %v628_v17, %v625_v14 }
 0x589   : > { %vm630_vm15 = vcmp.le.s32.totalorder %v1815_v23, %v629_v18  ;;  %v645_v32 = vadd.s32 1, %v629_v18 }
 0x58a   : > { %v631_v19 = vsel %vm630_vm15, 1, %v1626_v24 }
 0x58b   : > { %v633_v20 = vshrl.u32 %v631_v19, 16  ;;  %v632_v21 = vand.u32 65535, %v631_v19 }
 0x58d   : > { %v635_v22 = vcvt.s32.f32 %v633_v20  ;;  %v634_v25 = vcvt.s32.f32 %v632_v21 }
 0x58f   : > { %638 = vadd.xlane.f32.xlu0 %v635_v22  ;;  %636 = vadd.xlane.f32.xlu1 %v634_v25 }
 0x618   : > { %v639_v26 = vpop.xlane.xlu0 %638  ;;  %v637_v27 = vpop.xlane.xlu1 %636 }
 0x619   : > { %v641_v28 = vcvt.f32.s32 %v639_v26  ;;  %v640_v30 = vcvt.f32.s32 %v637_v27 }
 0x61b   : > { %v642_v29 = vshll.u32 %v641_v28, 16 }
 0x61d   : > { %v643_v31 = vadd.s32 %v642_v29, %v640_v30 }
 0x61f   : > { %vm644_vm0 = vcmp.ge.s32.totalorder %v643_v31, 97 }
 0x620   : > { %v646_v33 = vsel %vm644_vm0, %v625_v14, %v645_v32  ;;  %v647_v34 = vsel %vm644_vm0, %v629_v18, %v626_v15 }
 0x621   : > { %v648_v35 = vsub.s32 %v647_v34, %v646_v33 }
 0x623   : > { %v649_v36 = vshra.s32 %v648_v35, 1 }
 0x625   : > { %v650_v37 = vadd.s32 %v649_v36, %v646_v33 }
 0x627   : > { %vm651_vm1 = vcmp.le.s32.totalorder %v1815_v23, %v650_v37  ;;  %v666_v49 = vadd.s32 1, %v650_v37 }
 0x628   : > { %v652_v38 = vsel %vm651_vm1, 1, %v1626_v24 }
 0x629   : > { %v654_v39 = vshrl.u32 %v652_v38, 16  ;;  %v653_v40 = vand.u32 65535, %v652_v38 }
 0x62b   : > { %v656_v41 = vcvt.s32.f32 %v654_v39  ;;  %v655_v42 = vcvt.s32.f32 %v653_v40 }
 0x62d   : > { %659 = vadd.xlane.f32.xlu0 %v656_v41  ;;  %657 = vadd.xlane.f32.xlu1 %v655_v42 }
 0x6b6   : > { %v660_v43 = vpop.xlane.xlu0 %659  ;;  %v658_v44 = vpop.xlane.xlu1 %657 }
 0x6b7   : > { %v662_v45 = vcvt.f32.s32 %v660_v43  ;;  %v661_v47 = vcvt.f32.s32 %v658_v44 }
 0x6b9   : > { %v663_v46 = vshll.u32 %v662_v45, 16 }
 0x6bb   : > { %v664_v48 = vadd.s32 %v663_v46, %v661_v47 }
 0x6bd   : > { %vm665_vm2 = vcmp.ge.s32.totalorder %v664_v48, 97 }
 0x6be   : > { %v667_v50 = vsel %vm665_vm2, %v646_v33, %v666_v49  ;;  %v668_v51 = vsel %vm665_vm2, %v650_v37, %v647_v34 }
 0x6bf   : > { %v669_v52 = vsub.s32 %v668_v51, %v667_v50 }
 0x6c1   : > { %v670_v53 = vshra.s32 %v669_v52, 1 }
 0x6c3   : > { %v671_v54 = vadd.s32 %v670_v53, %v667_v50 }
 0x6c5   : > { %vm672_vm3 = vcmp.le.s32.totalorder %v1815_v23, %v671_v54  ;;  %v687_v2 = vadd.s32 1, %v671_v54 }
 0x6c6   : > { %v673_v55 = vsel %vm672_vm3, 1, %v1626_v24 }
 0x6c7   : > { %v675_v56 = vshrl.u32 %v673_v55, 16  ;;  %v674_v57 = vand.u32 65535, %v673_v55 }
 0x6c9   : > { %v677_v58 = vcvt.s32.f32 %v675_v56  ;;  %v676_v59 = vcvt.s32.f32 %v674_v57 }
 0x6cb   : > { %680 = vadd.xlane.f32.xlu0 %v677_v58  ;;  %678 = vadd.xlane.f32.xlu1 %v676_v59 }
 0x754   : > { %v681_v60 = vpop.xlane.xlu0 %680  ;;  %v679_v61 = vpop.xlane.xlu1 %678 }
 0x755   : > { %v683_v62 = vcvt.f32.s32 %v681_v60  ;;  %v682_v0 = vcvt.f32.s32 %v679_v61 }
 0x757   : > { %v684_v63 = vshll.u32 %v683_v62, 16 }
 0x759   : > { %v685_v1 = vadd.s32 %v684_v63, %v682_v0 }
 0x75b   : > { %vm686_vm4 = vcmp.ge.s32.totalorder %v685_v1, 97 }
 0x75c   : > { %v688_v3 = vsel %vm686_vm4, %v667_v50, %v687_v2  ;;  %v689_v4 = vsel %vm686_vm4, %v671_v54, %v668_v51 }
 0x75d   : > { %v690_v5 = vsub.s32 %v689_v4, %v688_v3 }
 0x75f   : > { %v691_v6 = vshra.s32 %v690_v5, 1 }
 0x761   : > { %v692_v7 = vadd.s32 %v691_v6, %v688_v3 }
 0x763   : > { %vm693_vm5 = vcmp.le.s32.totalorder %v1815_v23, %v692_v7  ;;  %v708_v19 = vadd.s32 1, %v692_v7 }
 0x764   : > { %v694_v8 = vsel %vm693_vm5, 1, %v1626_v24 }
 0x765   : > { %v696_v9 = vshrl.u32 %v694_v8, 16  ;;  %v695_v10 = vand.u32 65535, %v694_v8 }
 0x767   : > { %v698_v11 = vcvt.s32.f32 %v696_v9  ;;  %v697_v12 = vcvt.s32.f32 %v695_v10 }
 0x769   : > { %701 = vadd.xlane.f32.xlu0 %v698_v11  ;;  %699 = vadd.xlane.f32.xlu1 %v697_v12 }
 0x7f2   : > { %v702_v13 = vpop.xlane.xlu0 %701  ;;  %v700_v14 = vpop.xlane.xlu1 %699 }
 0x7f3   : > { %v704_v15 = vcvt.f32.s32 %v702_v13  ;;  %v703_v17 = vcvt.f32.s32 %v700_v14 }
 0x7f5   : > { %v705_v16 = vshll.u32 %v704_v15, 16 }
 0x7f7   : > { %v706_v18 = vadd.s32 %v705_v16, %v703_v17 }
 0x7f9   : > { %vm707_vm6 = vcmp.ge.s32.totalorder %v706_v18, 97 }
 0x7fa   : > { %v709_v20 = vsel %vm707_vm6, %v688_v3, %v708_v19  ;;  %v710_v21 = vsel %vm707_vm6, %v692_v7, %v689_v4 }
 0x7fb   : > { %v711_v22 = vsub.s32 %v710_v21, %v709_v20 }
 0x7fd   : > { %v712_v25 = vshra.s32 %v711_v22, 1 }
 0x7ff   : > { %v713_v26 = vadd.s32 %v712_v25, %v709_v20 }
 0x801   : > { %vm714_vm7 = vcmp.le.s32.totalorder %v1815_v23, %v713_v26  ;;  %v729_v38 = vadd.s32 1, %v713_v26 }
 0x802   : > { %v715_v27 = vsel %vm714_vm7, 1, %v1626_v24 }
 0x803   : > { %v717_v28 = vshrl.u32 %v715_v27, 16  ;;  %v716_v29 = vand.u32 65535, %v715_v27 }
 0x805   : > { %v719_v30 = vcvt.s32.f32 %v717_v28  ;;  %v718_v31 = vcvt.s32.f32 %v716_v29 }
 0x807   : > { %722 = vadd.xlane.f32.xlu0 %v719_v30  ;;  %720 = vadd.xlane.f32.xlu1 %v718_v31 }
 0x890   : > { %v723_v32 = vpop.xlane.xlu0 %722  ;;  %v721_v33 = vpop.xlane.xlu1 %720 }
 0x891   : > { %v725_v34 = vcvt.f32.s32 %v723_v32  ;;  %v724_v36 = vcvt.f32.s32 %v721_v33 }
 0x893   : > { %v726_v35 = vshll.u32 %v725_v34, 16 }
 0x895   : > { %v727_v37 = vadd.s32 %v726_v35, %v724_v36 }
 0x897   : > { %vm728_vm8 = vcmp.ge.s32.totalorder %v727_v37, 97 }
 0x898   : > { %v730_v39 = vsel %vm728_vm8, %v709_v20, %v729_v38  ;;  %v731_v40 = vsel %vm728_vm8, %v713_v26, %v710_v21 }
 0x899   : > { %v732_v41 = vsub.s32 %v731_v40, %v730_v39 }
 0x89b   : > { %v733_v42 = vshra.s32 %v732_v41, 1 }
 0x89d   : > { %v734_v43 = vadd.s32 %v733_v42, %v730_v39 }
 0x89f   : > { %vm735_vm9 = vcmp.le.s32.totalorder %v1815_v23, %v734_v43  ;;  %v750_v55 = vadd.s32 1, %v734_v43 }
 0x8a0   : > { %v736_v44 = vsel %vm735_vm9, 1, %v1626_v24 }
 0x8a1   : > { %v738_v45 = vshrl.u32 %v736_v44, 16  ;;  %v737_v46 = vand.u32 65535, %v736_v44 }
 0x8a3   : > { %v740_v47 = vcvt.s32.f32 %v738_v45  ;;  %v739_v48 = vcvt.s32.f32 %v737_v46 }
 0x8a5   : > { %743 = vadd.xlane.f32.xlu0 %v740_v47  ;;  %741 = vadd.xlane.f32.xlu1 %v739_v48 }
 0x92e   : > { %v744_v49 = vpop.xlane.xlu0 %743  ;;  %v742_v50 = vpop.xlane.xlu1 %741 }
 0x92f   : > { %v746_v51 = vcvt.f32.s32 %v744_v49  ;;  %v745_v53 = vcvt.f32.s32 %v742_v50 }
 0x931   : > { %v747_v52 = vshll.u32 %v746_v51, 16 }
 0x933   : > { %v748_v54 = vadd.s32 %v747_v52, %v745_v53 }
 0x935   : > { %vm749_vm10 = vcmp.ge.s32.totalorder %v748_v54, 97 }
 0x936   : > { %v751_v56 = vsel %vm749_vm10, %v730_v39, %v750_v55  ;;  %v752_v57 = vsel %vm749_vm10, %v734_v43, %v731_v40 }
 0x937   : > { %v753_v58 = vsub.s32 %v752_v57, %v751_v56 }
 0x939   : > { %v754_v59 = vshra.s32 %v753_v58, 1 }
 0x93b   : > { %v755_v60 = vadd.s32 %v754_v59, %v751_v56 }
 0x93d   : > { %vm756_vm11 = vcmp.le.s32.totalorder %v1815_v23, %v755_v60  ;;  %v771_v8 = vadd.s32 1, %v755_v60 }
 0x93e   : > { %v757_v61 = vsel %vm756_vm11, 1, %v1626_v24 }
 0x93f   : > { %v759_v62 = vshrl.u32 %v757_v61, 16  ;;  %v758_v63 = vand.u32 65535, %v757_v61 }
 0x941   : > { %v761_v0 = vcvt.s32.f32 %v759_v62  ;;  %v760_v1 = vcvt.s32.f32 %v758_v63 }
 0x943   : > { %764 = vadd.xlane.f32.xlu0 %v761_v0  ;;  %762 = vadd.xlane.f32.xlu1 %v760_v1 }
 0x9cc   : > { %v765_v2 = vpop.xlane.xlu0 %764  ;;  %v763_v3 = vpop.xlane.xlu1 %762 }
 0x9cd   : > { %v767_v4 = vcvt.f32.s32 %v765_v2  ;;  %v766_v6 = vcvt.f32.s32 %v763_v3 }
 0x9cf   : > { %v768_v5 = vshll.u32 %v767_v4, 16 }
 0x9d1   : > { %v769_v7 = vadd.s32 %v768_v5, %v766_v6 }
 0x9d3   : > { %vm770_vm12 = vcmp.ge.s32.totalorder %v769_v7, 97 }
 0x9d4   : > { %v772_v9 = vsel %vm770_vm12, %v751_v56, %v771_v8  ;;  %v773_v10 = vsel %vm770_vm12, %v755_v60, %v752_v57 }
 0x9d5   : > { %v774_v11 = vsub.s32 %v773_v10, %v772_v9 }
 0x9d7   : > { %v775_v12 = vshra.s32 %v774_v11, 1 }
 0x9d9   : > { %v776_v13 = vadd.s32 %v775_v12, %v772_v9 }
 0x9db   : > { %vm777_vm13 = vcmp.le.s32.totalorder %v1815_v23, %v776_v13  ;;  %v792_v27 = vadd.s32 1, %v776_v13 }
 0x9dc   : > { %v778_v14 = vsel %vm777_vm13, 1, %v1626_v24 }
 0x9dd   : > { %v780_v15 = vshrl.u32 %v778_v14, 16  ;;  %v779_v16 = vand.u32 65535, %v778_v14 }
 0x9df   : > { %v782_v17 = vcvt.s32.f32 %v780_v15  ;;  %v781_v18 = vcvt.s32.f32 %v779_v16 }
 0x9e1   : > { %785 = vadd.xlane.f32.xlu0 %v782_v17  ;;  %783 = vadd.xlane.f32.xlu1 %v781_v18 }
 0xa6a   : > { %v786_v19 = vpop.xlane.xlu0 %785  ;;  %v784_v20 = vpop.xlane.xlu1 %783 }
 0xa6b   : > { %v788_v21 = vcvt.f32.s32 %v786_v19  ;;  %v787_v25 = vcvt.f32.s32 %v784_v20 }
 0xa6d   : > { %v789_v22 = vshll.u32 %v788_v21, 16 }
 0xa6f   : > { %v790_v26 = vadd.s32 %v789_v22, %v787_v25 }
 0xa71   : > { %vm791_vm14 = vcmp.ge.s32.totalorder %v790_v26, 97 }
 0xa72   : > { %v793_v28 = vsel %vm791_vm14, %v772_v9, %v792_v27  ;;  %v794_v29 = vsel %vm791_vm14, %v776_v13, %v773_v10 }
 0xa73   : > { %v795_v30 = vsub.s32 %v794_v29, %v793_v28 }
 0xa75   : > { %v796_v31 = vshra.s32 %v795_v30, 1 }
 0xa77   : > { %v797_v32 = vadd.s32 %v796_v31, %v793_v28 }
 0xa79   : > { %vm798_vm15 = vcmp.le.s32.totalorder %v1815_v23, %v797_v32  ;;  %v813_v44 = vadd.s32 1, %v797_v32 }
 0xa7a   : > { %v799_v33 = vsel %vm798_vm15, 1, %v1626_v24 }
 0xa7b   : > { %v801_v34 = vshrl.u32 %v799_v33, 16  ;;  %v800_v35 = vand.u32 65535, %v799_v33 }
 0xa7d   : > { %v803_v36 = vcvt.s32.f32 %v801_v34  ;;  %v802_v37 = vcvt.s32.f32 %v800_v35 }
 0xa7f   : > { %806 = vadd.xlane.f32.xlu0 %v803_v36  ;;  %804 = vadd.xlane.f32.xlu1 %v802_v37 }
 0xb08   : > { %v807_v38 = vpop.xlane.xlu0 %806  ;;  %v805_v39 = vpop.xlane.xlu1 %804 }
 0xb09   : > { %v809_v40 = vcvt.f32.s32 %v807_v38  ;;  %v808_v42 = vcvt.f32.s32 %v805_v39 }
 0xb0b   : > { %v810_v41 = vshll.u32 %v809_v40, 16 }
 0xb0d   : > { %v811_v43 = vadd.s32 %v810_v41, %v808_v42 }
 0xb0f   : > { %vm812_vm0 = vcmp.ge.s32.totalorder %v811_v43, 97 }
 0xb10   : > { %v814_v45 = vsel %vm812_vm0, %v793_v28, %v813_v44  ;;  %v815_v46 = vsel %vm812_vm0, %v797_v32, %v794_v29 }
 0xb11   : > { %v816_v47 = vsub.s32 %v815_v46, %v814_v45 }
 0xb13   : > { %v817_v48 = vshra.s32 %v816_v47, 1 }
 0xb15   : > { %v818_v49 = vadd.s32 %v817_v48, %v814_v45 }
 0xb17   : > { %vm819_vm1 = vcmp.le.s32.totalorder %v1815_v23, %v818_v49  ;;  %v834_v61 = vadd.s32 1, %v818_v49 }
 0xb18   : > { %v820_v50 = vsel %vm819_vm1, 1, %v1626_v24 }
 0xb19   : > { %v822_v51 = vshrl.u32 %v820_v50, 16  ;;  %v821_v52 = vand.u32 65535, %v820_v50 }
 0xb1b   : > { %v824_v53 = vcvt.s32.f32 %v822_v51  ;;  %v823_v54 = vcvt.s32.f32 %v821_v52 }
 0xb1d   : > { %827 = vadd.xlane.f32.xlu0 %v824_v53  ;;  %825 = vadd.xlane.f32.xlu1 %v823_v54 }
 0xba6   : > { %v828_v55 = vpop.xlane.xlu0 %827  ;;  %v826_v56 = vpop.xlane.xlu1 %825 }
 0xba7   : > { %v830_v57 = vcvt.f32.s32 %v828_v55  ;;  %v829_v59 = vcvt.f32.s32 %v826_v56 }
 0xba9   : > { %v831_v58 = vshll.u32 %v830_v57, 16 }
 0xbab   : > { %v832_v60 = vadd.s32 %v831_v58, %v829_v59 }
 0xbad   : > { %vm833_vm2 = vcmp.ge.s32.totalorder %v832_v60, 97 }
 0xbae   : > { %v835_v62 = vsel %vm833_vm2, %v814_v45, %v834_v61  ;;  %v836_v63 = vsel %vm833_vm2, %v818_v49, %v815_v46 }
 0xbaf   : > { %v837_v0 = vsub.s32 %v836_v63, %v835_v62 }
 0xbb1   : > { %v838_v1 = vshra.s32 %v837_v0, 1 }
 0xbb3   : > { %v839_v2 = vadd.s32 %v838_v1, %v835_v62 }
 0xbb5   : > { %vm840_vm3 = vcmp.le.s32.totalorder %v1815_v23, %v839_v2  ;;  %v855_v14 = vadd.s32 1, %v839_v2 }
 0xbb6   : > { %v841_v3 = vsel %vm840_vm3, 1, %v1626_v24 }
 0xbb7   : > { %v843_v4 = vshrl.u32 %v841_v3, 16  ;;  %v842_v5 = vand.u32 65535, %v841_v3 }
 0xbb9   : > { %v845_v6 = vcvt.s32.f32 %v843_v4  ;;  %v844_v7 = vcvt.s32.f32 %v842_v5 }
 0xbbb   : > { %848 = vadd.xlane.f32.xlu0 %v845_v6  ;;  %846 = vadd.xlane.f32.xlu1 %v844_v7 }
 0xc44   : > { %v849_v8 = vpop.xlane.xlu0 %848  ;;  %v847_v9 = vpop.xlane.xlu1 %846 }
 0xc45   : > { %v851_v10 = vcvt.f32.s32 %v849_v8  ;;  %v850_v12 = vcvt.f32.s32 %v847_v9 }
 0xc47   : > { %v852_v11 = vshll.u32 %v851_v10, 16 }
 0xc49   : > { %v853_v13 = vadd.s32 %v852_v11, %v850_v12 }
 0xc4b   : > { %vm854_vm4 = vcmp.ge.s32.totalorder %v853_v13, 97 }
 0xc4c   : > { %v856_v15 = vsel %vm854_vm4, %v835_v62, %v855_v14  ;;  %v857_v16 = vsel %vm854_vm4, %v839_v2, %v836_v63 }
 0xc4d   : > { %v858_v17 = vsub.s32 %v857_v16, %v856_v15 }
 0xc4f   : > { %v859_v18 = vshra.s32 %v858_v17, 1 }
 0xc51   : > { %v860_v19 = vadd.s32 %v859_v18, %v856_v15 }
 0xc53   : > { %vm861_vm5 = vcmp.le.s32.totalorder %v1815_v23, %v860_v19  ;;  %v876_v33 = vadd.s32 1, %v860_v19 }
 0xc54   : > { %v862_v20 = vsel %vm861_vm5, 1, %v1626_v24 }
 0xc55   : > { %v864_v21 = vshrl.u32 %v862_v20, 16  ;;  %v863_v22 = vand.u32 65535, %v862_v20 }
 0xc57   : > { %v866_v25 = vcvt.s32.f32 %v864_v21  ;;  %v865_v26 = vcvt.s32.f32 %v863_v22 }
 0xc59   : > { %869 = vadd.xlane.f32.xlu0 %v866_v25  ;;  %867 = vadd.xlane.f32.xlu1 %v865_v26 }
 0xce2   : > { %v870_v27 = vpop.xlane.xlu0 %869  ;;  %v868_v28 = vpop.xlane.xlu1 %867 }
 0xce3   : > { %v872_v29 = vcvt.f32.s32 %v870_v27  ;;  %v871_v31 = vcvt.f32.s32 %v868_v28 }
 0xce5   : > { %v873_v30 = vshll.u32 %v872_v29, 16 }
 0xce7   : > { %v874_v32 = vadd.s32 %v873_v30, %v871_v31 }
 0xce9   : > { %vm875_vm6 = vcmp.ge.s32.totalorder %v874_v32, 97 }
 0xcea   : > { %v877_v34 = vsel %vm875_vm6, %v856_v15, %v876_v33  ;;  %v878_v35 = vsel %vm875_vm6, %v860_v19, %v857_v16 }
 0xceb   : > { %v879_v36 = vsub.s32 %v878_v35, %v877_v34 }
 0xced   : > { %v880_v37 = vshra.s32 %v879_v36, 1 }
 0xcef   : > { %v881_v38 = vadd.s32 %v880_v37, %v877_v34 }
 0xcf1   : > { %vm882_vm7 = vcmp.le.s32.totalorder %v1815_v23, %v881_v38  ;;  %v897_v50 = vadd.s32 1, %v881_v38 }
 0xcf2   : > { %v883_v39 = vsel %vm882_vm7, 1, %v1626_v24 }
 0xcf3   : > { %v885_v40 = vshrl.u32 %v883_v39, 16  ;;  %v884_v41 = vand.u32 65535, %v883_v39 }
 0xcf5   : > { %v887_v42 = vcvt.s32.f32 %v885_v40  ;;  %v886_v43 = vcvt.s32.f32 %v884_v41 }
 0xcf7   : > { %890 = vadd.xlane.f32.xlu0 %v887_v42  ;;  %888 = vadd.xlane.f32.xlu1 %v886_v43 }
 0xd80   : > { %v891_v44 = vpop.xlane.xlu0 %890  ;;  %v889_v45 = vpop.xlane.xlu1 %888 }
 0xd81   : > { %v893_v46 = vcvt.f32.s32 %v891_v44  ;;  %v892_v48 = vcvt.f32.s32 %v889_v45 }
 0xd83   : > { %v894_v47 = vshll.u32 %v893_v46, 16 }
 0xd85   : > { %v895_v49 = vadd.s32 %v894_v47, %v892_v48 }
 0xd87   : > { %vm896_vm8 = vcmp.ge.s32.totalorder %v895_v49, 97 }
 0xd88   : > { %v898_v51 = vsel %vm896_vm8, %v877_v34, %v897_v50  ;;  %v899_v52 = vsel %vm896_vm8, %v881_v38, %v878_v35 }
 0xd89   : > { %v900_v53 = vsub.s32 %v899_v52, %v898_v51 }
 0xd8b   : > { %v901_v54 = vshra.s32 %v900_v53, 1 }
 0xd8d   : > { %v902_v55 = vadd.s32 %v901_v54, %v898_v51 }
 0xd8f   : > { %vm903_vm9 = vcmp.le.s32.totalorder %v1815_v23, %v902_v55  ;;  %v918_v3 = vadd.s32 1, %v902_v55 }
 0xd90   : > { %v904_v56 = vsel %vm903_vm9, 1, %v1626_v24 }
 0xd91   : > { %v906_v57 = vshrl.u32 %v904_v56, 16  ;;  %v905_v58 = vand.u32 65535, %v904_v56 }
 0xd93   : > { %v908_v59 = vcvt.s32.f32 %v906_v57  ;;  %v907_v60 = vcvt.s32.f32 %v905_v58 }
 0xd95   : > { %911 = vadd.xlane.f32.xlu0 %v908_v59  ;;  %909 = vadd.xlane.f32.xlu1 %v907_v60 }
 0xe1e   : > { %v912_v61 = vpop.xlane.xlu0 %911  ;;  %v910_v62 = vpop.xlane.xlu1 %909 }
 0xe1f   : > { %v914_v63 = vcvt.f32.s32 %v912_v61  ;;  %v913_v1 = vcvt.f32.s32 %v910_v62 }
 0xe21   : > { %v915_v0 = vshll.u32 %v914_v63, 16 }
 0xe23   : > { %v916_v2 = vadd.s32 %v915_v0, %v913_v1 }
 0xe25   : > { %vm917_vm10 = vcmp.ge.s32.totalorder %v916_v2, 97 }
 0xe26   : > { %v919_v4 = vsel %vm917_vm10, %v898_v51, %v918_v3  ;;  %v920_v5 = vsel %vm917_vm10, %v902_v55, %v899_v52 }
 0xe27   : > { %v921_v6 = vsub.s32 %v920_v5, %v919_v4 }
 0xe29   : > { %v922_v7 = vshra.s32 %v921_v6, 1 }
 0xe2b   : > { %v923_v8 = vadd.s32 %v922_v7, %v919_v4 }
 0xe2d   : > { %vm924_vm11 = vcmp.le.s32.totalorder %v1815_v23, %v923_v8  ;;  %v939_v20 = vadd.s32 1, %v923_v8 }
 0xe2e   : > { %v925_v9 = vsel %vm924_vm11, 1, %v1626_v24 }
 0xe2f   : > { %v927_v10 = vshrl.u32 %v925_v9, 16  ;;  %v926_v11 = vand.u32 65535, %v925_v9 }
 0xe31   : > { %v929_v12 = vcvt.s32.f32 %v927_v10  ;;  %v928_v13 = vcvt.s32.f32 %v926_v11 }
 0xe33   : > { %932 = vadd.xlane.f32.xlu0 %v929_v12  ;;  %930 = vadd.xlane.f32.xlu1 %v928_v13 }
 0xebc   : > { %v933_v14 = vpop.xlane.xlu0 %932  ;;  %v931_v15 = vpop.xlane.xlu1 %930 }
 0xebd   : > { %v935_v16 = vcvt.f32.s32 %v933_v14  ;;  %v934_v18 = vcvt.f32.s32 %v931_v15 }
 0xebf   : > { %v936_v17 = vshll.u32 %v935_v16, 16 }
 0xec1   : > { %v937_v19 = vadd.s32 %v936_v17, %v934_v18 }
 0xec3   : > { %vm938_vm12 = vcmp.ge.s32.totalorder %v937_v19, 97 }
 0xec4   : > { %v940_v21 = vsel %vm938_vm12, %v919_v4, %v939_v20  ;;  %v941_v22 = vsel %vm938_vm12, %v923_v8, %v920_v5 }
 0xec5   : > { %v942_v25 = vsub.s32 %v941_v22, %v940_v21 }
 0xec7   : > { %v943_v26 = vshra.s32 %v942_v25, 1 }
 0xec9   : > { %v944_v27 = vadd.s32 %v943_v26, %v940_v21 }
 0xecb   : > { %vm945_vm13 = vcmp.le.s32.totalorder %v1815_v23, %v944_v27  ;;  %v960_v39 = vadd.s32 1, %v944_v27 }
 0xecc   : > { %v946_v28 = vsel %vm945_vm13, 1, %v1626_v24 }
 0xecd   : > { %v948_v29 = vshrl.u32 %v946_v28, 16  ;;  %v947_v30 = vand.u32 65535, %v946_v28 }
 0xecf   : > { %v950_v31 = vcvt.s32.f32 %v948_v29  ;;  %v949_v32 = vcvt.s32.f32 %v947_v30 }
 0xed1   : > { %953 = vadd.xlane.f32.xlu0 %v950_v31  ;;  %951 = vadd.xlane.f32.xlu1 %v949_v32 }
 0xf5a   : > { %v954_v33 = vpop.xlane.xlu0 %953  ;;  %v952_v34 = vpop.xlane.xlu1 %951 }
 0xf5b   : > { %v956_v35 = vcvt.f32.s32 %v954_v33  ;;  %v955_v37 = vcvt.f32.s32 %v952_v34 }
 0xf5d   : > { %v957_v36 = vshll.u32 %v956_v35, 16 }
 0xf5f   : > { %v958_v38 = vadd.s32 %v957_v36, %v955_v37 }
 0xf61   : > { %vm959_vm14 = vcmp.ge.s32.totalorder %v958_v38, 97 }
 0xf62   : > { %v961_v40 = vsel %vm959_vm14, %v940_v21, %v960_v39  ;;  %v962_v41 = vsel %vm959_vm14, %v944_v27, %v941_v22 }
 0xf63   : > { %v963_v42 = vsub.s32 %v962_v41, %v961_v40 }
 0xf65   : > { %v964_v43 = vshra.s32 %v963_v42, 1 }
 0xf67   : > { %v965_v44 = vadd.s32 %v964_v43, %v961_v40 }
 0xf69   : > { %vm966_vm15 = vcmp.le.s32.totalorder %v1815_v23, %v965_v44  ;;  %v981_v56 = vadd.s32 1, %v965_v44 }
 0xf6a   : > { %v967_v45 = vsel %vm966_vm15, 1, %v1626_v24 }
 0xf6b   : > { %v969_v46 = vshrl.u32 %v967_v45, 16  ;;  %v968_v47 = vand.u32 65535, %v967_v45 }
 0xf6d   : > { %v971_v48 = vcvt.s32.f32 %v969_v46  ;;  %v970_v49 = vcvt.s32.f32 %v968_v47 }
 0xf6f   : > { %974 = vadd.xlane.f32.xlu0 %v971_v48  ;;  %972 = vadd.xlane.f32.xlu1 %v970_v49 }
 0xff8   : > { %v975_v50 = vpop.xlane.xlu0 %974  ;;  %v973_v51 = vpop.xlane.xlu1 %972 }
 0xff9   : > { %v977_v52 = vcvt.f32.s32 %v975_v50  ;;  %v976_v54 = vcvt.f32.s32 %v973_v51 }
 0xffb   : > { %v978_v53 = vshll.u32 %v977_v52, 16 }
 0xffd   : > { %v979_v55 = vadd.s32 %v978_v53, %v976_v54 }
 0xfff   : > { %vm980_vm0 = vcmp.ge.s32.totalorder %v979_v55, 97 }
0x1000   : > { %v982_v57 = vsel %vm980_vm0, %v961_v40, %v981_v56  ;;  %v983_v58 = vsel %vm980_vm0, %v965_v44, %v962_v41 }
0x1001   : > { %v984_v59 = vsub.s32 %v983_v58, %v982_v57 }
0x1003   : > { %v985_v60 = vshra.s32 %v984_v59, 1 }
0x1005   : > { %v986_v61 = vadd.s32 %v985_v60, %v982_v57 }
0x1007   : > { %vm987_vm1 = vcmp.le.s32.totalorder %v1815_v23, %v986_v61  ;;  %v1002_v9 = vadd.s32 1, %v986_v61 }
0x1008   : > { %v988_v62 = vsel %vm987_vm1, 1, %v1626_v24 }
0x1009   : > { %v990_v63 = vshrl.u32 %v988_v62, 16  ;;  %v989_v0 = vand.u32 65535, %v988_v62 }
0x100b   : > { %v992_v1 = vcvt.s32.f32 %v990_v63  ;;  %v991_v2 = vcvt.s32.f32 %v989_v0 }
0x100d   : > { %995 = vadd.xlane.f32.xlu0 %v992_v1  ;;  %993 = vadd.xlane.f32.xlu1 %v991_v2 }
0x1096   : > { %v996_v3 = vpop.xlane.xlu0 %995  ;;  %v994_v4 = vpop.xlane.xlu1 %993 }
0x1097   : > { %v998_v5 = vcvt.f32.s32 %v996_v3  ;;  %v997_v7 = vcvt.f32.s32 %v994_v4 }
0x1099   : > { %v999_v6 = vshll.u32 %v998_v5, 16 }
0x109b   : > { %v1000_v8 = vadd.s32 %v999_v6, %v997_v7 }
0x109d   : > { %vm1001_vm2 = vcmp.ge.s32.totalorder %v1000_v8, 97 }
0x109e   : > { %v1003_v10 = vsel %vm1001_vm2, %v982_v57, %v1002_v9  ;;  %v1004_v11 = vsel %vm1001_vm2, %v986_v61, %v983_v58 }
0x109f   : > { %v1005_v12 = vsub.s32 %v1004_v11, %v1003_v10 }
0x10a1   : > { %v1006_v13 = vshra.s32 %v1005_v12, 1 }
0x10a3   : > { %v1007_v14 = vadd.s32 %v1006_v13, %v1003_v10 }
0x10a5   : > { %vm1008_vm3 = vcmp.le.s32.totalorder %v1815_v23, %v1007_v14  ;;  %v1023_v28 = vadd.s32 1, %v1007_v14 }
0x10a6   : > { %v1009_v15 = vsel %vm1008_vm3, 1, %v1626_v24 }
0x10a7   : > { %v1011_v16 = vshrl.u32 %v1009_v15, 16  ;;  %v1010_v17 = vand.u32 65535, %v1009_v15 }
0x10a9   : > { %v1013_v18 = vcvt.s32.f32 %v1011_v16  ;;  %v1012_v19 = vcvt.s32.f32 %v1010_v17 }
0x10ab   : > { %1016 = vadd.xlane.f32.xlu0 %v1013_v18  ;;  %1014 = vadd.xlane.f32.xlu1 %v1012_v19 }
0x1134   : > { %v1017_v20 = vpop.xlane.xlu0 %1016  ;;  %v1015_v21 = vpop.xlane.xlu1 %1014 }
0x1135   : > { %v1019_v22 = vcvt.f32.s32 %v1017_v20  ;;  %v1018_v26 = vcvt.f32.s32 %v1015_v21 }
0x1137   : > { %v1020_v25 = vshll.u32 %v1019_v22, 16 }
0x1139   : > { %v1021_v27 = vadd.s32 %v1020_v25, %v1018_v26 }
0x113b   : > { %vm1022_vm4 = vcmp.ge.s32.totalorder %v1021_v27, 97 }
0x113c   : > { %v1024_v29 = vsel %vm1022_vm4, %v1003_v10, %v1023_v28  ;;  %v1025_v30 = vsel %vm1022_vm4, %v1007_v14, %v1004_v11 }
0x113d   : > { %v1026_v31 = vsub.s32 %v1025_v30, %v1024_v29 }
0x113f   : > { %v1027_v32 = vshra.s32 %v1026_v31, 1 }
0x1141   : > { %v1028_v33 = vadd.s32 %v1027_v32, %v1024_v29 }
0x1143   : > { %vm1029_vm5 = vcmp.le.s32.totalorder %v1815_v23, %v1028_v33  ;;  %v1044_v45 = vadd.s32 1, %v1028_v33 }
0x1144   : > { %v1030_v34 = vsel %vm1029_vm5, 1, %v1626_v24 }
0x1145   : > { %v1032_v35 = vshrl.u32 %v1030_v34, 16  ;;  %v1031_v36 = vand.u32 65535, %v1030_v34 }
0x1147   : > { %v1034_v37 = vcvt.s32.f32 %v1032_v35  ;;  %v1033_v38 = vcvt.s32.f32 %v1031_v36 }
0x1149   : > { %1037 = vadd.xlane.f32.xlu0 %v1034_v37  ;;  %1035 = vadd.xlane.f32.xlu1 %v1033_v38 }
0x11d2   : > { %v1038_v39 = vpop.xlane.xlu0 %1037  ;;  %v1036_v40 = vpop.xlane.xlu1 %1035 }
0x11d3   : > { %v1040_v41 = vcvt.f32.s32 %v1038_v39  ;;  %v1039_v43 = vcvt.f32.s32 %v1036_v40 }
0x11d5   : > { %v1041_v42 = vshll.u32 %v1040_v41, 16 }
0x11d7   : > { %v1042_v44 = vadd.s32 %v1041_v42, %v1039_v43 }
0x11d9   : > { %vm1043_vm6 = vcmp.ge.s32.totalorder %v1042_v44, 97 }
0x11da   : > { %v1045_v46 = vsel %vm1043_vm6, %v1024_v29, %v1044_v45  ;;  %v1046_v47 = vsel %vm1043_vm6, %v1028_v33, %v1025_v30 }
0x11db   : > { %v1047_v48 = vsub.s32 %v1046_v47, %v1045_v46 }
0x11dd   : > { %v1048_v49 = vshra.s32 %v1047_v48, 1 }
0x11df   : > { %v1049_v50 = vadd.s32 %v1048_v49, %v1045_v46 }
0x11e1   : > { %vm1050_vm7 = vcmp.le.s32.totalorder %v1815_v23, %v1049_v50  ;;  %v1065_v62 = vadd.s32 1, %v1049_v50 }
0x11e2   : > { %v1051_v51 = vsel %vm1050_vm7, 1, %v1626_v24 }
0x11e3   : > { %v1053_v52 = vshrl.u32 %v1051_v51, 16  ;;  %v1052_v53 = vand.u32 65535, %v1051_v51 }
0x11e5   : > { %v1055_v54 = vcvt.s32.f32 %v1053_v52  ;;  %v1054_v55 = vcvt.s32.f32 %v1052_v53 }
0x11e7   : > { %1058 = vadd.xlane.f32.xlu0 %v1055_v54  ;;  %1056 = vadd.xlane.f32.xlu1 %v1054_v55 }
0x1270   : > { %v1059_v56 = vpop.xlane.xlu0 %1058  ;;  %v1057_v57 = vpop.xlane.xlu1 %1056 }
0x1271   : > { %v1061_v58 = vcvt.f32.s32 %v1059_v56  ;;  %v1060_v60 = vcvt.f32.s32 %v1057_v57 }
0x1273   : > { %v1062_v59 = vshll.u32 %v1061_v58, 16 }
0x1275   : > { %v1063_v61 = vadd.s32 %v1062_v59, %v1060_v60 }
0x1277   : > { %vm1064_vm8 = vcmp.ge.s32.totalorder %v1063_v61, 97 }
0x1278   : > { %v1066_v63 = vsel %vm1064_vm8, %v1045_v46, %v1065_v62  ;;  %v1067_v0 = vsel %vm1064_vm8, %v1049_v50, %v1046_v47 }
0x1279   : > { %v1068_v1 = vsub.s32 %v1067_v0, %v1066_v63 }
0x127b   : > { %v1069_v2 = vshra.s32 %v1068_v1, 1 }
0x127d   : > { %v1070_v3 = vadd.s32 %v1069_v2, %v1066_v63 }
0x127f   : > { %vm1071_vm9 = vcmp.le.s32.totalorder %v1815_v23, %v1070_v3  ;;  %v1086_v15 = vadd.s32 1, %v1070_v3 }
0x1280   : > { %v1072_v4 = vsel %vm1071_vm9, 1, %v1626_v24 }
0x1281   : > { %v1074_v5 = vshrl.u32 %v1072_v4, 16  ;;  %v1073_v6 = vand.u32 65535, %v1072_v4 }
0x1283   : > { %v1076_v7 = vcvt.s32.f32 %v1074_v5  ;;  %v1075_v8 = vcvt.s32.f32 %v1073_v6 }
0x1285   : > { %1079 = vadd.xlane.f32.xlu0 %v1076_v7  ;;  %1077 = vadd.xlane.f32.xlu1 %v1075_v8 }
0x130e   : > { %v1080_v9 = vpop.xlane.xlu0 %1079  ;;  %v1078_v10 = vpop.xlane.xlu1 %1077 }
0x130f   : > { %v1082_v11 = vcvt.f32.s32 %v1080_v9  ;;  %v1081_v13 = vcvt.f32.s32 %v1078_v10 }
0x1311   : > { %v1083_v12 = vshll.u32 %v1082_v11, 16 }
0x1313   : > { %v1084_v14 = vadd.s32 %v1083_v12, %v1081_v13 }
0x1315   : > { %vm1085_vm10 = vcmp.ge.s32.totalorder %v1084_v14, 97 }
0x1316   : > { %v1087_v16 = vsel %vm1085_vm10, %v1066_v63, %v1086_v15  ;;  %v1088_v17 = vsel %vm1085_vm10, %v1070_v3, %v1067_v0 }
0x1317   : > { %v1089_v18 = vsub.s32 %v1088_v17, %v1087_v16 }
0x1319   : > { %v1090_v19 = vshra.s32 %v1089_v18, 1 }
0x131b   : > { %v1091_v20 = vadd.s32 %v1090_v19, %v1087_v16 }
0x131d   : > { %vm1092_vm11 = vcmp.le.s32.totalorder %v1815_v23, %v1091_v20  ;;  %v1107_v34 = vadd.s32 1, %v1091_v20 }
0x131e   : > { %v1093_v21 = vsel %vm1092_vm11, 1, %v1626_v24 }
0x131f   : > { %v1095_v22 = vshrl.u32 %v1093_v21, 16  ;;  %v1094_v25 = vand.u32 65535, %v1093_v21 }
0x1321   : > { %v1097_v26 = vcvt.s32.f32 %v1095_v22  ;;  %v1096_v27 = vcvt.s32.f32 %v1094_v25 }
0x1323   : > { %1100 = vadd.xlane.f32.xlu0 %v1097_v26  ;;  %1098 = vadd.xlane.f32.xlu1 %v1096_v27 }
0x13ac   : > { %v1101_v28 = vpop.xlane.xlu0 %1100  ;;  %v1099_v29 = vpop.xlane.xlu1 %1098 }
0x13ad   : > { %v1103_v30 = vcvt.f32.s32 %v1101_v28  ;;  %v1102_v32 = vcvt.f32.s32 %v1099_v29 }
0x13af   : > { %v1104_v31 = vshll.u32 %v1103_v30, 16 }
0x13b1   : > { %v1105_v33 = vadd.s32 %v1104_v31, %v1102_v32 }
0x13b3   : > { %vm1106_vm12 = vcmp.ge.s32.totalorder %v1105_v33, 97 }
0x13b4   : > { %v1108_v35 = vsel %vm1106_vm12, %v1087_v16, %v1107_v34  ;;  %v1109_v36 = vsel %vm1106_vm12, %v1091_v20, %v1088_v17 }
0x13b5   : > { %v1110_v37 = vsub.s32 %v1109_v36, %v1108_v35 }
0x13b7   : > { %v1111_v38 = vshra.s32 %v1110_v37, 1 }
0x13b9   : > { %v1112_v39 = vadd.s32 %v1111_v38, %v1108_v35 }
0x13bb   : > { %vm1113_vm13 = vcmp.le.s32.totalorder %v1815_v23, %v1112_v39  ;;  %v1128_v51 = vadd.s32 1, %v1112_v39 }
0x13bc   : > { %v1114_v40 = vsel %vm1113_vm13, 1, %v1626_v24 }
0x13bd   : > { %v1116_v41 = vshrl.u32 %v1114_v40, 16  ;;  %v1115_v42 = vand.u32 65535, %v1114_v40 }
0x13bf   : > { %v1118_v43 = vcvt.s32.f32 %v1116_v41  ;;  %v1117_v44 = vcvt.s32.f32 %v1115_v42 }
0x13c1   : > { %1121 = vadd.xlane.f32.xlu0 %v1118_v43  ;;  %1119 = vadd.xlane.f32.xlu1 %v1117_v44 }
0x144a   : > { %v1122_v45 = vpop.xlane.xlu0 %1121  ;;  %v1120_v46 = vpop.xlane.xlu1 %1119 }
0x144b   : > { %v1124_v47 = vcvt.f32.s32 %v1122_v45  ;;  %v1123_v49 = vcvt.f32.s32 %v1120_v46 }
0x144d   : > { %v1125_v48 = vshll.u32 %v1124_v47, 16 }
0x144f   : > { %v1126_v50 = vadd.s32 %v1125_v48, %v1123_v49 }
0x1451   : > { %vm1127_vm14 = vcmp.ge.s32.totalorder %v1126_v50, 97 }
0x1452   : > { %v1129_v52 = vsel %vm1127_vm14, %v1108_v35, %v1128_v51 }
0x1453   : > { %vm1131_vm15 = vcmp.lt.f32.partialorder %v1815_v23, %v1129_v52 }
0x1454   : > { %v1132_v53 = vsel %vm1131_vm15, 1, %v1626_v24  ;;  %v1145_v58 = vsel %vm1131_vm15, %v1815_v23, 0.0 }
0x1455   : > { %v1134_v54 = vshrl.u32 %v1132_v53, 16  ;;  %v1133_v55 = vand.u32 65535, %v1132_v53 }
0x1457   : > { %v1136_v56 = vcvt.s32.f32 %v1134_v54  ;;  %v1135_v57 = vcvt.s32.f32 %v1133_v55 }
0x1459   : > { %1139 = vadd.xlane.f32.xlu0 %v1136_v56  ;;  %1137 = vadd.xlane.f32.xlu1 %v1135_v57 }
0x145d   : > { %1146 = vmax.xlane.f32.xlu0 %v1145_v58 }
0x14e2   : > { %v1140_v59 = vpop.xlane.xlu0 %1139  ;;  %v1138_v60 = vpop.xlane.xlu1 %1137 }
0x14e3   : > { %v1142_v61 = vcvt.f32.s32 %v1140_v59  ;;  %v1141_v63 = vcvt.f32.s32 %v1138_v60 }
0x14e5   : > { %v1143_v62 = vshll.u32 %v1142_v61, 16 }
0x14e6   : > { %v1147_v1 = vpop.xlane.xlu0 %1146 }
0x14e7   : > { %v1144_v0 = vadd.s32 %v1143_v62, %v1141_v63 }
0x14e9   : > { %vm1148_vm0 = vcmp.ge.s32.totalorder %v1144_v0, 96 }
0x14ea   : > { %v1149_v24 = vsel %vm1148_vm0, %v1147_v1, %v1129_v52 }
0x14eb   : > { %v1150_v2 = vadd.f32 %v1149_v24, %v1129_v52 }
0x14ed   : > { %v1151_v3 = vmul.f32 0.5, %v1150_v2 }
0x14ef   : > { %v1152_v4 = vmax.f32 %v1151_v3, 1e-37 }
0x14f1   : > { %1415 = vrcp.f32 %v1152_v4 }
0x14fe   : > { %v1416_v5 = vpop.eup %1415 }
0x14ff   : > { %v1154_v6 = vmul.f32 %v1416_v5, %v1152_v4 }
0x1501   : > { %v1155_v7 = vsub.f32 2.0, %v1154_v6 }
0x1503   : > { %v1156_v8 = vmul.f32 %v1416_v5, %v1155_v7 }
0x1505   : > { %v1157_v9 = vmul.f32 %v1156_v8, %v1815_v23 }
0x1507   : > { %1158 = vst [vmem:[%s314_s23] sm:$0xff] %v1157_v9 }
0x1508   : > { %1538 = shalt.err (!%p1535_p1)
}
0x1509   : > { %s1539_s6 = scalar_lea.hbm %s1171_s29, 128  ;;  %s1543_s1 = scalar_lea.hbm %s1928_s4, 256 }
0x150a   : > { %p1540_p2 = scmp.ne.s32.totalorder %s1171_s29, %s1539_s6  ;;  %p1544_p11 = scmp.lt.s32.totalorder %s1171_s29, %s1928_s4 }
0x150b   : > { %p1545_p0 = scmp.lt.s32.totalorder %s1543_s1, %s1539_s6 }
0x150c   : > { %p1541_p6 = pnand %p1540_p2, %p1746_p9 }
0x150d   : > { %p1546_p12 = por %p1545_p0, %p1544_p11 }
0x150e   : > { %p1542_p8 = pneg %p1541_p6 }
0x1510   : > { %p1547_p4 = pnand %p1546_p12, %p1542_p8 }
0x1512   : > { %1550 = shalt.err (!%p1547_p4)
}
0x1513   : > { %1333 = dma.vmem_to_hbm [thread:$0]  (%p1746_p9), %s1174_s14, 128, %s1171_s29, %s1160_s11  }
0x1514 PF: > { %s1185_s10 = sand.u32 1, %s1597_s15   ;;  %p1945_p3 = scmp.ne.s32.totalorder %s1933_s24, 0 }
0x1515   : > { %p1946_p7 = scmp.ge.s32.totalorder %s1617_s20, 2  ;;  %s1186_s26 = scalar_lea.sflag [#allocation4], %s1185_s10 }
0x1517   : > { %p1350_p13 = pnand %p1946_p7, %p1945_p3 }
0x1519   : > { %p1351_p5 = pneg %p1350_p13 }
0x151b   : > { %1592 = dma.done.wait (%p1351_p5), %s1186_s26, 128  }
0x151c   : > { %1594 = vsyncadd (%p1351_p5), %s1186_s26, 4294967168  ;;  %s24_s20 = sadd.s32 1, %s1617_s20   ;;  %s1947_s15 = smov %s1601_s16 }
0x151d   : > { %p21_p10 = scmp.ge.s32.totalorder %s24_s20, 4   ;;  %s1948_s16 = smov %s1605_s17 }
0x151e   : > { %s1949_s17 = smov %s1755_s30  ;;  %s1950_s18 = smov %s1613_s19 }
0x151f   : > { %s1951_s19 = smov %s1953_s13  ;;  %23 = sbr.rel (!%p21_p10) target bundleno = 12 (0xc), region = 104 }
0x1524   :  { %1191 = vsyncpa [#allocation3], 1 }
0x1525   :  { %1193 = vsyncpa [#allocation3 + $0x1], 1 }
0x1526   :  { %1194 = vsyncpa [#allocation6], 1 }
0x1527   :  { %1196 = vsyncpa [#allocation6 + $0x1], 1 }
0x1528   :  { %1197 = vsyncpa [#allocation9], 1 }
0x1529   :  { %1198 = vsyncpa [#allocation4], 1 }
0x152a   :  { %1200 = vsyncpa [#allocation4 + $0x1], 1 }

</bundles_post_ra>
